<compile_context>
chip_gen: v7x
topology: tpu7x:2x2x1
jax: 0.10.0
libtpu: 0.0.40
codegen_flags: <defaults>
</compile_context>

<pallas_src>
import functools
import math

import jax
import jax.numpy as jnp
from jax import lax
from jax.experimental import pallas as pl
from jax.experimental.pallas import tpu as pltpu


def _channel_attention_kernel(
    x_ref,      # [rows, HWp]     f32   (rows = block_b * C)
    agg_w_ref,  # [HWp, E]        bf16  (aggregator weight, transposed, zero-padded rows)
    wqkvg_ref,  # [E, 2E + nh]    bf16  (fused [Wq*scale | Wk | Wvg])
    cbias_ref,  # [C, 2E + nh]    f32   (aggregator bias + pos_embed folded through proj)
    gb_ref,     # [1, 1]          f32   (bo @ gate_w + gate_b)
    out_ref,    # [rows, HWp]     f32
    *,
    num_heads: int,
    head_dim: int,
    embed_dim: int,
    channels: int,
    block_b: int,
):
    nh, hd, E, C = num_heads, head_dim, embed_dim, channels
    rows = block_b * C

    x = x_ref[...]                                                    # [rows, HWp]

    # 1) aggregator (HW -> E): one sublane-dense block-wide MXU pass (bf16 in, f32 acc).
    xe = jnp.dot(x.astype(jnp.bfloat16), agg_w_ref[...],
                 preferred_element_type=jnp.float32)                  # [rows, E]

    # 2) fused q|k|vg projection, also block-wide.  The per-channel bias (aggregator
    #    bias + pos_embed folded through the projection) is added afterwards with a
    #    broadcast over the batch dim of the [block_b, C, .] view.
    qkvg = jnp.dot(xe.astype(jnp.bfloat16), wqkvg_ref[...],
                   preferred_element_type=jnp.float32)                # [rows, 2E+nh]
    qkvg = qkvg.reshape(block_b, C, 2 * E + nh) + cbias_ref[...]      # [bb, C, 2E+nh]

    # 3) channel self-attention: static loop over heads (nh iterations, bounded and
    #    independent of block_b), each head batched over all block_b batch elements.
    #    Only the gate contribution p @ vg_h is kept (out-proj folded into vg).
    gate = jnp.zeros((block_b, C, 1), jnp.float32)
    for h in range(nh):
        q_h = qkvg[:, :, h * hd:(h + 1) * hd]                         # [bb, C, hd]
        k_h = qkvg[:, :, E + h * hd:E + (h + 1) * hd]                 # [bb, C, hd]
        vg_h = qkvg[:, :, 2 * E + h:2 * E + h + 1]                    # [bb, C, 1]

        s = lax.dot_general(
            q_h.astype(jnp.bfloat16), k_h.astype(jnp.bfloat16),
            dimension_numbers=(((2,), (2,)), ((0,), (0,))),
            preferred_element_type=jnp.float32)                       # [bb, C, C]
        s = s - jnp.max(s, axis=-1, keepdims=True)
        p = jnp.exp(s)
        p = p / jnp.sum(p, axis=-1, keepdims=True)                    # exact f32 softmax

        gate = gate + lax.dot_general(
            p, vg_h,
            dimension_numbers=(((2,), (1,)), ((0,), (0,))),
            preferred_element_type=jnp.float32)                       # [bb, C, 1]

    gate2 = gate.reshape(rows, 1) + gb_ref[...]                       # [rows, 1]

    # 4) scale the original rows: one lane-dense store of the whole tile.
    out_ref[...] = x * gate2


def _round_up(v, m):
    return (v + m - 1) // m * m


def _choose_block_b(batch, channels, hw_p, embed_dim, num_heads, vmem_budget):
    """Pick how many batch elements each grid step processes.

    The x/out blocks are (block_b*C, HWp) tiles of the 2-D [B*C, HWp] view, so
    block_b*C must be a multiple of 8 (sublane tile) unless the block covers the
    whole row dimension.  The kernel is HBM-bound, so block_b is made as large as
    the VMEM budget allows (no minimum grid-step count); when the batch axis does
    get split, an even step count is preferred so v7x's two TensorCores sharing the
    "parallel" axis stay balanced.
    """
    q8 = 8 // math.gcd(channels, 8)           # block_b granularity for 8-row alignment
    if batch <= q8:
        return batch                           # single full-array block (always legal)
    ntot = 2 * embed_dim + num_heads
    # f32 bytes per batch element resident in VMEM: double-buffered x & out tiles
    # plus the xe / qkvg / softmax intermediates (rough upper bound).
    per_b = channels * (4 * hw_p + embed_dim + 2 * ntot + 2 * channels + 16) * 4
    bb = (max(vmem_budget, per_b * q8) // per_b) // q8 * q8
    bb = max(q8, bb)
    if bb >= batch:
        return batch
    steps = -(-batch // bb)
    if steps % 2:                              # prefer an even number of grid steps
        bb_even = _round_up(-(-batch // (steps + 1)), q8)
        if 0 < bb_even < batch:
            bb = bb_even
    return bb


def channel_attention(x, params, *, num_heads):
    """x: [B, C, H, W] float32 -> [B, C, H, W] (ChannelAttention forward, mask_ratio=0)."""
    B, C, H, W = x.shape
    HW = H * W
    HWp = _round_up(HW, 128)                   # lane-dense last dim for x / out
    E = params["agg_w"].shape[1]
    nh = num_heads
    assert E % nh == 0, "embed_dim must be divisible by num_heads"
    hd = E // nh
    ntot = 2 * E + nh
    n_rows = B * C

    # ---- VMEM budget (v5e/v6e: 128 MiB physical, v7x: 64 MiB) ----
    try:
        vmem_cap = int(pltpu.get_tpu_info().vmem_capacity_bytes)
    except Exception:
        vmem_cap = 64 * 1024 * 1024            # conservative: fits every generation
    const_bytes = HWp * E * 2 + E * ntot * 2 + C * ntot * 4 + 4096
    vmem_budget = vmem_cap * 3 // 4 - 2 * const_bytes
    bb = _choose_block_b(B, C, HWp, E, nh, vmem_budget)
    rows_blk = bb * C
    grid = (pl.cdiv(n_rows, rows_blk),)

    # ---- input: 2-D [B*C, HWp] lane-dense view of x ----
    x2 = x.reshape(n_rows, HW).astype(jnp.float32)
    if HWp != HW:
        x2 = jnp.pad(x2, ((0, 0), (0, HWp - HW)))

    # ---- weight pre-packing (XLA side, done once, exact f32) ----
    scale = 1.0 / math.sqrt(hd)
    agg_w = params["agg_w"].astype(jnp.float32)                      # [HW, E]
    if HWp != HW:
        agg_w = jnp.pad(agg_w, ((0, HWp - HW), (0, 0)))
    # out-projection + gate folded: gate = o @ (Wo @ gw) + (bo @ gw + gb)
    wg_eff = params["wo"] @ params["gate_w"]                          # [E, 1]
    gb_eff = (params["bo"] @ params["gate_w"] + params["gate_b"])     # [1, 1]
    wg_h = wg_eff.reshape(nh, hd)                                     # [nh, hd]
    # per-head fold of the v projection with the (folded) gate vector
    wvg = jnp.einsum("end,nd->en", params["wv"].reshape(E, nh, hd), wg_h)    # [E, nh]
    bvg = jnp.einsum("nd,nd->n", params["bv"].reshape(nh, hd), wg_h)[None]   # [1, nh]
    # fused projection: q (pre-scaled) | k | vg
    wqkvg = jnp.concatenate([params["wq"] * scale, params["wk"], wvg], axis=1)  # [E, ntot]
    bqkvg = jnp.concatenate([params["bq"] * scale, params["bk"], bvg], axis=1)  # [1, ntot]
    # aggregator bias + pos_embed folded *through* the projection -> per-channel bias
    cbias = ((params["agg_b"] + params["pos"]) @ wqkvg + bqkvg).astype(jnp.float32)  # [C, ntot]

    agg_w_bf = agg_w.astype(jnp.bfloat16)
    wqkvg_bf = wqkvg.astype(jnp.bfloat16)
    gb_eff = gb_eff.astype(jnp.float32)

    kernel = functools.partial(
        _channel_attention_kernel,
        num_heads=nh, head_dim=hd, embed_dim=E, channels=C, block_b=bb)

    flops = (2 * B * C * HWp * E               # aggregator
             + 2 * B * C * E * ntot            # fused q|k|vg projection
             + 2 * B * nh * C * C * hd         # scores
             + 2 * B * nh * C * C              # gate contraction
             + B * C * HWp)                    # final scaling
    cost = pl.CostEstimate(
        flops=int(flops),
        transcendentals=int(B * nh * C * C),
        bytes_accessed=int(2 * n_rows * HWp * 4 + agg_w_bf.size * 2
                           + wqkvg_bf.size * 2 + cbias.size * 4 + 4))

    def _const_index_map(ndim):
        return lambda i: (0,) * ndim

    def _build(single_buffer_consts):
        def const_spec(shape):
            if single_buffer_consts:
                return pl.BlockSpec(shape, _const_index_map(len(shape)),
                                    pipeline_mode=pl.Buffered(1))
            return pl.BlockSpec(shape, _const_index_map(len(shape)))

        return pl.pallas_call(
            kernel,
            out_shape=jax.ShapeDtypeStruct((n_rows, HWp), jnp.float32),
            grid_spec=pltpu.PrefetchScalarGridSpec(
                num_scalar_prefetch=0,
                grid=grid,
                in_specs=[
                    pl.BlockSpec((rows_blk, HWp), lambda i: (i, 0)),  # x row block
                    const_spec((HWp, E)),                             # aggregator weight
                    const_spec((E, ntot)),                            # fused q|k|vg weight
                    const_spec((C, ntot)),                            # per-channel bias
                    const_spec((1, 1)),                               # folded gate bias
                ],
                out_specs=pl.BlockSpec((rows_blk, HWp), lambda i: (i, 0)),
            ),
            compiler_params=pltpu.CompilerParams(
                dimension_semantics=("parallel",),
                vmem_limit_bytes=int(vmem_cap * 7 // 8),
            ),
            cost_estimate=cost,
        )

    args = (x2, agg_w_bf, wqkvg_bf, cbias, gb_eff)
    try:
        out2 = _build(True)(*args)
    except Exception:
        # pl.Buffered(1) on constant inputs is a pure VMEM optimisation; fall back to
        # default double-buffering if this JAX build rejects it.
        out2 = _build(False)(*args)

    if HWp != HW:
        out2 = out2[:, :HW]
    return out2.reshape(B, C, H, W)


def channel_attention_reference(x, params, *, num_heads):
    """Pure-JAX (f32) reference mirroring torch.nn.MultiheadAttention semantics."""
    B, C, H, W = x.shape
    HW = H * W
    E = params["agg_w"].shape[1]
    hd = E // num_heads

    xf = x.reshape(B, C, HW)
    xe = xf @ params["agg_w"] + params["agg_b"] + params["pos"][None]     # [B,C,E]

    q = xe @ params["wq"] + params["bq"]
    k = xe @ params["wk"] + params["bk"]
    v = xe @ params["wv"] + params["bv"]

    def split(t):  # [B,C,E] -> [B,nh,C,hd]
        return t.reshape(B, C, num_heads, hd).transpose(0, 2, 1, 3)

    qh, kh, vh = split(q), split(k), split(v)
    s = jnp.einsum("bhqd,bhkd->bhqk", qh, kh) / math.sqrt(hd)
    p = jax.nn.softmax(s, axis=-1)
    o = jnp.einsum("bhqk,bhkd->bhqd", p, vh)                              # [B,nh,C,hd]
    o = o.transpose(0, 2, 1, 3).reshape(B, C, E)
    attn = o @ params["wo"] + params["bo"]                                # [B,C,E]
    gate = attn @ params["gate_w"] + params["gate_b"]                     # [B,C,1]
    return x * gate[..., None]


def make_params(key, *, in_chans, embed_dim, hw):
    ks = jax.random.split(key, 12)
    n = lambda k, shape, std=0.02: (std * jax.random.normal(k, shape)).astype(jnp.float32)
    return {
        "agg_w": n(ks[0], (hw, embed_dim)),           # aggregator.weight^T
        "agg_b": n(ks[1], (1, embed_dim)),
        "pos":   n(ks[2], (in_chans, embed_dim)),     # trunc_normal(std=0.02) stand-in
        "wq":    n(ks[3], (embed_dim, embed_dim)),    # in_proj (q)^T
        "bq":    n(ks[4], (1, embed_dim)),
        "wk":    n(ks[5], (embed_dim, embed_dim)),
        "bk":    n(ks[6], (1, embed_dim)),
        "wv":    n(ks[7], (embed_dim, embed_dim)),
        "bv":    n(ks[8], (1, embed_dim)),
        "wo":    n(ks[9], (embed_dim, embed_dim)),    # out_proj.weight^T
        "bo":    n(ks[10], (1, embed_dim)),
        "gate_w": n(ks[11], (embed_dim, 1)),
        "gate_b": jnp.zeros((1, 1), jnp.float32),
    }


if __name__ == "__main__":
    B, C, H, W = 2, 4, 16, 16
    EMBED_DIM, NUM_HEADS = 32, 8

    key = jax.random.PRNGKey(0)
    kx, kp = jax.random.split(key)
    x = jax.random.normal(kx, (B, C, H, W), dtype=jnp.float32)
    params = make_params(kp, in_chans=C, embed_dim=EMBED_DIM, hw=H * W)

    out = channel_attention(x, params, num_heads=NUM_HEADS)
    out = jax.block_until_ready(out)

    ref = channel_attention_reference(x, params, num_heads=NUM_HEADS)
    assert out.shape == (B, C, H, W)
    # bf16 matmul operands vs an f32 reference (softmax divide is now exact f32,
    # so the tolerance is tighter than the previous approx-reciprocal version).
    assert jnp.allclose(out, ref, rtol=2e-2, atol=5e-4), "mismatch vs JAX reference"

    print("KERNEL_OK")
</pallas_src>

<mosaic_0001>
module attributes {stable_mosaic.version = 11 : i64} {
  func.func @_channel_attention_kernel(%arg0: i32, %arg1: memref<8x256xf32, #tpu.memory_space<vmem>>, %arg2: memref<256x32xbf16, #tpu.memory_space<vmem>>, %arg3: memref<32x72xbf16, #tpu.memory_space<vmem>>, %arg4: memref<4x72xf32, #tpu.memory_space<vmem>>, %arg5: memref<1x1xf32, #tpu.memory_space<vmem>>, %arg6: memref<8x256xf32, #tpu.memory_space<vmem>>) attributes {dimension_semantics = [#tpu.dimension_semantics<parallel>], iteration_bounds = array<i64: 1>, scalar_prefetch = 0 : i64, scratch_operands = 0 : i64, tpu.core_type = #tpu.core_type<tc>, window_params = [{transform_indices = @transform_0, window_bounds = array<i64: 8, 256>}, {pipeline_mode = #tpu.pipeline_mode<synchronous>, transform_indices = @transform_1, window_bounds = array<i64: 256, 32>}, {pipeline_mode = #tpu.pipeline_mode<synchronous>, transform_indices = @transform_2, window_bounds = array<i64: 32, 72>}, {pipeline_mode = #tpu.pipeline_mode<synchronous>, transform_indices = @transform_3, window_bounds = array<i64: 4, 72>}, {pipeline_mode = #tpu.pipeline_mode<synchronous>, transform_indices = @transform_4, window_bounds = array<i64: 1, 1>}, {transform_indices = @transform_5, window_bounds = array<i64: 8, 256>}]} {
    %c0 = arith.constant 0 : index
    %c0_0 = arith.constant 0 : index
    %0 = vector.load %arg1[%c0, %c0_0] : memref<8x256xf32, #tpu.memory_space<vmem>>, vector<8x256xf32>
    %1 = arith.truncf %0 : vector<8x256xf32> to vector<8x256xbf16>
    %c0_1 = arith.constant 0 : index
    %c0_2 = arith.constant 0 : index
    %2 = vector.load %arg2[%c0_1, %c0_2] : memref<256x32xbf16, #tpu.memory_space<vmem>>, vector<256x32xbf16>
    %cst = arith.constant dense<0.000000e+00> : vector<8x32xf32>
    %3 = tpu.matmul %1, %2, %cst {dimension_numbers = #tpu.dot_dimension_numbers<[1], [0], [0], [1], [0, 0, 1, 1], [], []>} : vector<8x256xbf16>, vector<256x32xbf16>, vector<8x32xf32> -> vector<8x32xf32>
    %4 = arith.truncf %3 : vector<8x32xf32> to vector<8x32xbf16>
    %c0_3 = arith.constant 0 : index
    %c0_4 = arith.constant 0 : index
    %5 = vector.load %arg3[%c0_3, %c0_4] : memref<32x72xbf16, #tpu.memory_space<vmem>>, vector<32x72xbf16>
    %cst_5 = arith.constant dense<0.000000e+00> : vector<8x72xf32>
    %6 = tpu.matmul %4, %5, %cst_5 {dimension_numbers = #tpu.dot_dimension_numbers<[1], [0], [0], [1], [0, 0, 1, 1], [], []>} : vector<8x32xbf16>, vector<32x72xbf16>, vector<8x72xf32> -> vector<8x72xf32>
    %7 = vector.shape_cast %6 : vector<8x72xf32> to vector<2x4x72xf32>
    %c0_6 = arith.constant 0 : index
    %c0_7 = arith.constant 0 : index
    %8 = vector.load %arg4[%c0_6, %c0_7] : memref<4x72xf32, #tpu.memory_space<vmem>>, vector<4x72xf32>
    %9 = vector.shape_cast %8 : vector<4x72xf32> to vector<1x4x72xf32>
    %10 = vector.broadcast %9 : vector<1x4x72xf32> to vector<2x4x72xf32>
    %11 = arith.addf %7, %10 : vector<2x4x72xf32>
    %cst_8 = arith.constant 0.000000e+00 : f32
    %12 = vector.broadcast %cst_8 : f32 to vector<2x4x1xf32>
    %13 = vector.extract_strided_slice %11 {offsets = [0, 0, 0], sizes = [2, 4, 4], strides = [1, 1, 1]} : vector<2x4x72xf32> to vector<2x4x4xf32>
    %14 = vector.extract_strided_slice %11 {offsets = [0, 0, 32], sizes = [2, 4, 4], strides = [1, 1, 1]} : vector<2x4x72xf32> to vector<2x4x4xf32>
    %15 = vector.extract_strided_slice %11 {offsets = [0, 0, 64], sizes = [2, 4, 1], strides = [1, 1, 1]} : vector<2x4x72xf32> to vector<2x4x1xf32>
    %16 = arith.truncf %13 : vector<2x4x4xf32> to vector<2x4x4xbf16>
    %17 = arith.truncf %14 : vector<2x4x4xf32> to vector<2x4x4xbf16>
    %cst_9 = arith.constant dense<0.000000e+00> : vector<2x4x4xf32>
    %18 = tpu.matmul %16, %17, %cst_9 {dimension_numbers = #tpu.dot_dimension_numbers<[2], [2], [1], [1], [0, 0, 0, 1, 1, 1], [0], [0]>} : vector<2x4x4xbf16>, vector<2x4x4xbf16>, vector<2x4x4xf32> -> vector<2x4x4xf32>
    %cst_10 = arith.constant dense<0xFF800000> : vector<2x4xf32>
    %19 = vector.multi_reduction <maximumf>, %18, %cst_10 [2] : vector<2x4x4xf32> to vector<2x4xf32>
    %20 = vector.shape_cast %19 : vector<2x4xf32> to vector<2x4x1xf32>
    %21 = vector.broadcast %20 : vector<2x4x1xf32> to vector<2x4x4xf32>
    %22 = arith.subf %18, %21 : vector<2x4x4xf32>
    %23 = math.exp %22 : vector<2x4x4xf32>
    %cst_11 = arith.constant dense<0.000000e+00> : vector<2x4xf32>
    %24 = vector.multi_reduction <add>, %23, %cst_11 [2] : vector<2x4x4xf32> to vector<2x4xf32>
    %25 = vector.shape_cast %24 : vector<2x4xf32> to vector<2x4x1xf32>
    %26 = vector.broadcast %25 : vector<2x4x1xf32> to vector<2x4x4xf32>
    %27 = arith.divf %23, %26 : vector<2x4x4xf32>
    %cst_12 = arith.constant dense<0.000000e+00> : vector<2x4x1xf32>
    %28 = tpu.matmul %27, %15, %cst_12 {dimension_numbers = #tpu.dot_dimension_numbers<[2], [1], [1], [2], [0, 0, 0, 1, 1, 2], [0], [0]>} : vector<2x4x4xf32>, vector<2x4x1xf32>, vector<2x4x1xf32> -> vector<2x4x1xf32>
    %29 = arith.addf %12, %28 : vector<2x4x1xf32>
    %30 = vector.extract_strided_slice %11 {offsets = [0, 0, 4], sizes = [2, 4, 4], strides = [1, 1, 1]} : vector<2x4x72xf32> to vector<2x4x4xf32>
    %31 = vector.extract_strided_slice %11 {offsets = [0, 0, 36], sizes = [2, 4, 4], strides = [1, 1, 1]} : vector<2x4x72xf32> to vector<2x4x4xf32>
    %32 = vector.extract_strided_slice %11 {offsets = [0, 0, 65], sizes = [2, 4, 1], strides = [1, 1, 1]} : vector<2x4x72xf32> to vector<2x4x1xf32>
    %33 = arith.truncf %30 : vector<2x4x4xf32> to vector<2x4x4xbf16>
    %34 = arith.truncf %31 : vector<2x4x4xf32> to vector<2x4x4xbf16>
    %cst_13 = arith.constant dense<0.000000e+00> : vector<2x4x4xf32>
    %35 = tpu.matmul %33, %34, %cst_13 {dimension_numbers = #tpu.dot_dimension_numbers<[2], [2], [1], [1], [0, 0, 0, 1, 1, 1], [0], [0]>} : vector<2x4x4xbf16>, vector<2x4x4xbf16>, vector<2x4x4xf32> -> vector<2x4x4xf32>
    %cst_14 = arith.constant dense<0xFF800000> : vector<2x4xf32>
    %36 = vector.multi_reduction <maximumf>, %35, %cst_14 [2] : vector<2x4x4xf32> to vector<2x4xf32>
    %37 = vector.shape_cast %36 : vector<2x4xf32> to vector<2x4x1xf32>
    %38 = vector.broadcast %37 : vector<2x4x1xf32> to vector<2x4x4xf32>
    %39 = arith.subf %35, %38 : vector<2x4x4xf32>
    %40 = math.exp %39 : vector<2x4x4xf32>
    %cst_15 = arith.constant dense<0.000000e+00> : vector<2x4xf32>
    %41 = vector.multi_reduction <add>, %40, %cst_15 [2] : vector<2x4x4xf32> to vector<2x4xf32>
    %42 = vector.shape_cast %41 : vector<2x4xf32> to vector<2x4x1xf32>
    %43 = vector.broadcast %42 : vector<2x4x1xf32> to vector<2x4x4xf32>
    %44 = arith.divf %40, %43 : vector<2x4x4xf32>
    %cst_16 = arith.constant dense<0.000000e+00> : vector<2x4x1xf32>
    %45 = tpu.matmul %44, %32, %cst_16 {dimension_numbers = #tpu.dot_dimension_numbers<[2], [1], [1], [2], [0, 0, 0, 1, 1, 2], [0], [0]>} : vector<2x4x4xf32>, vector<2x4x1xf32>, vector<2x4x1xf32> -> vector<2x4x1xf32>
    %46 = arith.addf %29, %45 : vector<2x4x1xf32>
    %47 = vector.extract_strided_slice %11 {offsets = [0, 0, 8], sizes = [2, 4, 4], strides = [1, 1, 1]} : vector<2x4x72xf32> to vector<2x4x4xf32>
    %48 = vector.extract_strided_slice %11 {offsets = [0, 0, 40], sizes = [2, 4, 4], strides = [1, 1, 1]} : vector<2x4x72xf32> to vector<2x4x4xf32>
    %49 = vector.extract_strided_slice %11 {offsets = [0, 0, 66], sizes = [2, 4, 1], strides = [1, 1, 1]} : vector<2x4x72xf32> to vector<2x4x1xf32>
    %50 = arith.truncf %47 : vector<2x4x4xf32> to vector<2x4x4xbf16>
    %51 = arith.truncf %48 : vector<2x4x4xf32> to vector<2x4x4xbf16>
    %cst_17 = arith.constant dense<0.000000e+00> : vector<2x4x4xf32>
    %52 = tpu.matmul %50, %51, %cst_17 {dimension_numbers = #tpu.dot_dimension_numbers<[2], [2], [1], [1], [0, 0, 0, 1, 1, 1], [0], [0]>} : vector<2x4x4xbf16>, vector<2x4x4xbf16>, vector<2x4x4xf32> -> vector<2x4x4xf32>
    %cst_18 = arith.constant dense<0xFF800000> : vector<2x4xf32>
    %53 = vector.multi_reduction <maximumf>, %52, %cst_18 [2] : vector<2x4x4xf32> to vector<2x4xf32>
    %54 = vector.shape_cast %53 : vector<2x4xf32> to vector<2x4x1xf32>
    %55 = vector.broadcast %54 : vector<2x4x1xf32> to vector<2x4x4xf32>
    %56 = arith.subf %52, %55 : vector<2x4x4xf32>
    %57 = math.exp %56 : vector<2x4x4xf32>
    %cst_19 = arith.constant dense<0.000000e+00> : vector<2x4xf32>
    %58 = vector.multi_reduction <add>, %57, %cst_19 [2] : vector<2x4x4xf32> to vector<2x4xf32>
    %59 = vector.shape_cast %58 : vector<2x4xf32> to vector<2x4x1xf32>
    %60 = vector.broadcast %59 : vector<2x4x1xf32> to vector<2x4x4xf32>
    %61 = arith.divf %57, %60 : vector<2x4x4xf32>
    %cst_20 = arith.constant dense<0.000000e+00> : vector<2x4x1xf32>
    %62 = tpu.matmul %61, %49, %cst_20 {dimension_numbers = #tpu.dot_dimension_numbers<[2], [1], [1], [2], [0, 0, 0, 1, 1, 2], [0], [0]>} : vector<2x4x4xf32>, vector<2x4x1xf32>, vector<2x4x1xf32> -> vector<2x4x1xf32>
    %63 = arith.addf %46, %62 : vector<2x4x1xf32>
    %64 = vector.extract_strided_slice %11 {offsets = [0, 0, 12], sizes = [2, 4, 4], strides = [1, 1, 1]} : vector<2x4x72xf32> to vector<2x4x4xf32>
    %65 = vector.extract_strided_slice %11 {offsets = [0, 0, 44], sizes = [2, 4, 4], strides = [1, 1, 1]} : vector<2x4x72xf32> to vector<2x4x4xf32>
    %66 = vector.extract_strided_slice %11 {offsets = [0, 0, 67], sizes = [2, 4, 1], strides = [1, 1, 1]} : vector<2x4x72xf32> to vector<2x4x1xf32>
    %67 = arith.truncf %64 : vector<2x4x4xf32> to vector<2x4x4xbf16>
    %68 = arith.truncf %65 : vector<2x4x4xf32> to vector<2x4x4xbf16>
    %cst_21 = arith.constant dense<0.000000e+00> : vector<2x4x4xf32>
    %69 = tpu.matmul %67, %68, %cst_21 {dimension_numbers = #tpu.dot_dimension_numbers<[2], [2], [1], [1], [0, 0, 0, 1, 1, 1], [0], [0]>} : vector<2x4x4xbf16>, vector<2x4x4xbf16>, vector<2x4x4xf32> -> vector<2x4x4xf32>
    %cst_22 = arith.constant dense<0xFF800000> : vector<2x4xf32>
    %70 = vector.multi_reduction <maximumf>, %69, %cst_22 [2] : vector<2x4x4xf32> to vector<2x4xf32>
    %71 = vector.shape_cast %70 : vector<2x4xf32> to vector<2x4x1xf32>
    %72 = vector.broadcast %71 : vector<2x4x1xf32> to vector<2x4x4xf32>
    %73 = arith.subf %69, %72 : vector<2x4x4xf32>
    %74 = math.exp %73 : vector<2x4x4xf32>
    %cst_23 = arith.constant dense<0.000000e+00> : vector<2x4xf32>
    %75 = vector.multi_reduction <add>, %74, %cst_23 [2] : vector<2x4x4xf32> to vector<2x4xf32>
    %76 = vector.shape_cast %75 : vector<2x4xf32> to vector<2x4x1xf32>
    %77 = vector.broadcast %76 : vector<2x4x1xf32> to vector<2x4x4xf32>
    %78 = arith.divf %74, %77 : vector<2x4x4xf32>
    %cst_24 = arith.constant dense<0.000000e+00> : vector<2x4x1xf32>
    %79 = tpu.matmul %78, %66, %cst_24 {dimension_numbers = #tpu.dot_dimension_numbers<[2], [1], [1], [2], [0, 0, 0, 1, 1, 2], [0], [0]>} : vector<2x4x4xf32>, vector<2x4x1xf32>, vector<2x4x1xf32> -> vector<2x4x1xf32>
    %80 = arith.addf %63, %79 : vector<2x4x1xf32>
    %81 = vector.extract_strided_slice %11 {offsets = [0, 0, 16], sizes = [2, 4, 4], strides = [1, 1, 1]} : vector<2x4x72xf32> to vector<2x4x4xf32>
    %82 = vector.extract_strided_slice %11 {offsets = [0, 0, 48], sizes = [2, 4, 4], strides = [1, 1, 1]} : vector<2x4x72xf32> to vector<2x4x4xf32>
    %83 = vector.extract_strided_slice %11 {offsets = [0, 0, 68], sizes = [2, 4, 1], strides = [1, 1, 1]} : vector<2x4x72xf32> to vector<2x4x1xf32>
    %84 = arith.truncf %81 : vector<2x4x4xf32> to vector<2x4x4xbf16>
    %85 = arith.truncf %82 : vector<2x4x4xf32> to vector<2x4x4xbf16>
    %cst_25 = arith.constant dense<0.000000e+00> : vector<2x4x4xf32>
    %86 = tpu.matmul %84, %85, %cst_25 {dimension_numbers = #tpu.dot_dimension_numbers<[2], [2], [1], [1], [0, 0, 0, 1, 1, 1], [0], [0]>} : vector<2x4x4xbf16>, vector<2x4x4xbf16>, vector<2x4x4xf32> -> vector<2x4x4xf32>
    %cst_26 = arith.constant dense<0xFF800000> : vector<2x4xf32>
    %87 = vector.multi_reduction <maximumf>, %86, %cst_26 [2] : vector<2x4x4xf32> to vector<2x4xf32>
    %88 = vector.shape_cast %87 : vector<2x4xf32> to vector<2x4x1xf32>
    %89 = vector.broadcast %88 : vector<2x4x1xf32> to vector<2x4x4xf32>
    %90 = arith.subf %86, %89 : vector<2x4x4xf32>
    %91 = math.exp %90 : vector<2x4x4xf32>
    %cst_27 = arith.constant dense<0.000000e+00> : vector<2x4xf32>
    %92 = vector.multi_reduction <add>, %91, %cst_27 [2] : vector<2x4x4xf32> to vector<2x4xf32>
    %93 = vector.shape_cast %92 : vector<2x4xf32> to vector<2x4x1xf32>
    %94 = vector.broadcast %93 : vector<2x4x1xf32> to vector<2x4x4xf32>
    %95 = arith.divf %91, %94 : vector<2x4x4xf32>
    %cst_28 = arith.constant dense<0.000000e+00> : vector<2x4x1xf32>
    %96 = tpu.matmul %95, %83, %cst_28 {dimension_numbers = #tpu.dot_dimension_numbers<[2], [1], [1], [2], [0, 0, 0, 1, 1, 2], [0], [0]>} : vector<2x4x4xf32>, vector<2x4x1xf32>, vector<2x4x1xf32> -> vector<2x4x1xf32>
    %97 = arith.addf %80, %96 : vector<2x4x1xf32>
    %98 = vector.extract_strided_slice %11 {offsets = [0, 0, 20], sizes = [2, 4, 4], strides = [1, 1, 1]} : vector<2x4x72xf32> to vector<2x4x4xf32>
    %99 = vector.extract_strided_slice %11 {offsets = [0, 0, 52], sizes = [2, 4, 4], strides = [1, 1, 1]} : vector<2x4x72xf32> to vector<2x4x4xf32>
    %100 = vector.extract_strided_slice %11 {offsets = [0, 0, 69], sizes = [2, 4, 1], strides = [1, 1, 1]} : vector<2x4x72xf32> to vector<2x4x1xf32>
    %101 = arith.truncf %98 : vector<2x4x4xf32> to vector<2x4x4xbf16>
    %102 = arith.truncf %99 : vector<2x4x4xf32> to vector<2x4x4xbf16>
    %cst_29 = arith.constant dense<0.000000e+00> : vector<2x4x4xf32>
    %103 = tpu.matmul %101, %102, %cst_29 {dimension_numbers = #tpu.dot_dimension_numbers<[2], [2], [1], [1], [0, 0, 0, 1, 1, 1], [0], [0]>} : vector<2x4x4xbf16>, vector<2x4x4xbf16>, vector<2x4x4xf32> -> vector<2x4x4xf32>
    %cst_30 = arith.constant dense<0xFF800000> : vector<2x4xf32>
    %104 = vector.multi_reduction <maximumf>, %103, %cst_30 [2] : vector<2x4x4xf32> to vector<2x4xf32>
    %105 = vector.shape_cast %104 : vector<2x4xf32> to vector<2x4x1xf32>
    %106 = vector.broadcast %105 : vector<2x4x1xf32> to vector<2x4x4xf32>
    %107 = arith.subf %103, %106 : vector<2x4x4xf32>
    %108 = math.exp %107 : vector<2x4x4xf32>
    %cst_31 = arith.constant dense<0.000000e+00> : vector<2x4xf32>
    %109 = vector.multi_reduction <add>, %108, %cst_31 [2] : vector<2x4x4xf32> to vector<2x4xf32>
    %110 = vector.shape_cast %109 : vector<2x4xf32> to vector<2x4x1xf32>
    %111 = vector.broadcast %110 : vector<2x4x1xf32> to vector<2x4x4xf32>
    %112 = arith.divf %108, %111 : vector<2x4x4xf32>
    %cst_32 = arith.constant dense<0.000000e+00> : vector<2x4x1xf32>
    %113 = tpu.matmul %112, %100, %cst_32 {dimension_numbers = #tpu.dot_dimension_numbers<[2], [1], [1], [2], [0, 0, 0, 1, 1, 2], [0], [0]>} : vector<2x4x4xf32>, vector<2x4x1xf32>, vector<2x4x1xf32> -> vector<2x4x1xf32>
    %114 = arith.addf %97, %113 : vector<2x4x1xf32>
    %115 = vector.extract_strided_slice %11 {offsets = [0, 0, 24], sizes = [2, 4, 4], strides = [1, 1, 1]} : vector<2x4x72xf32> to vector<2x4x4xf32>
    %116 = vector.extract_strided_slice %11 {offsets = [0, 0, 56], sizes = [2, 4, 4], strides = [1, 1, 1]} : vector<2x4x72xf32> to vector<2x4x4xf32>
    %117 = vector.extract_strided_slice %11 {offsets = [0, 0, 70], sizes = [2, 4, 1], strides = [1, 1, 1]} : vector<2x4x72xf32> to vector<2x4x1xf32>
    %118 = arith.truncf %115 : vector<2x4x4xf32> to vector<2x4x4xbf16>
    %119 = arith.truncf %116 : vector<2x4x4xf32> to vector<2x4x4xbf16>
    %cst_33 = arith.constant dense<0.000000e+00> : vector<2x4x4xf32>
    %120 = tpu.matmul %118, %119, %cst_33 {dimension_numbers = #tpu.dot_dimension_numbers<[2], [2], [1], [1], [0, 0, 0, 1, 1, 1], [0], [0]>} : vector<2x4x4xbf16>, vector<2x4x4xbf16>, vector<2x4x4xf32> -> vector<2x4x4xf32>
    %cst_34 = arith.constant dense<0xFF800000> : vector<2x4xf32>
    %121 = vector.multi_reduction <maximumf>, %120, %cst_34 [2] : vector<2x4x4xf32> to vector<2x4xf32>
    %122 = vector.shape_cast %121 : vector<2x4xf32> to vector<2x4x1xf32>
    %123 = vector.broadcast %122 : vector<2x4x1xf32> to vector<2x4x4xf32>
    %124 = arith.subf %120, %123 : vector<2x4x4xf32>
    %125 = math.exp %124 : vector<2x4x4xf32>
    %cst_35 = arith.constant dense<0.000000e+00> : vector<2x4xf32>
    %126 = vector.multi_reduction <add>, %125, %cst_35 [2] : vector<2x4x4xf32> to vector<2x4xf32>
    %127 = vector.shape_cast %126 : vector<2x4xf32> to vector<2x4x1xf32>
    %128 = vector.broadcast %127 : vector<2x4x1xf32> to vector<2x4x4xf32>
    %129 = arith.divf %125, %128 : vector<2x4x4xf32>
    %cst_36 = arith.constant dense<0.000000e+00> : vector<2x4x1xf32>
    %130 = tpu.matmul %129, %117, %cst_36 {dimension_numbers = #tpu.dot_dimension_numbers<[2], [1], [1], [2], [0, 0, 0, 1, 1, 2], [0], [0]>} : vector<2x4x4xf32>, vector<2x4x1xf32>, vector<2x4x1xf32> -> vector<2x4x1xf32>
    %131 = arith.addf %114, %130 : vector<2x4x1xf32>
    %132 = vector.extract_strided_slice %11 {offsets = [0, 0, 28], sizes = [2, 4, 4], strides = [1, 1, 1]} : vector<2x4x72xf32> to vector<2x4x4xf32>
    %133 = vector.extract_strided_slice %11 {offsets = [0, 0, 60], sizes = [2, 4, 4], strides = [1, 1, 1]} : vector<2x4x72xf32> to vector<2x4x4xf32>
    %134 = vector.extract_strided_slice %11 {offsets = [0, 0, 71], sizes = [2, 4, 1], strides = [1, 1, 1]} : vector<2x4x72xf32> to vector<2x4x1xf32>
    %135 = arith.truncf %132 : vector<2x4x4xf32> to vector<2x4x4xbf16>
    %136 = arith.truncf %133 : vector<2x4x4xf32> to vector<2x4x4xbf16>
    %cst_37 = arith.constant dense<0.000000e+00> : vector<2x4x4xf32>
    %137 = tpu.matmul %135, %136, %cst_37 {dimension_numbers = #tpu.dot_dimension_numbers<[2], [2], [1], [1], [0, 0, 0, 1, 1, 1], [0], [0]>} : vector<2x4x4xbf16>, vector<2x4x4xbf16>, vector<2x4x4xf32> -> vector<2x4x4xf32>
    %cst_38 = arith.constant dense<0xFF800000> : vector<2x4xf32>
    %138 = vector.multi_reduction <maximumf>, %137, %cst_38 [2] : vector<2x4x4xf32> to vector<2x4xf32>
    %139 = vector.shape_cast %138 : vector<2x4xf32> to vector<2x4x1xf32>
    %140 = vector.broadcast %139 : vector<2x4x1xf32> to vector<2x4x4xf32>
    %141 = arith.subf %137, %140 : vector<2x4x4xf32>
    %142 = math.exp %141 : vector<2x4x4xf32>
    %cst_39 = arith.constant dense<0.000000e+00> : vector<2x4xf32>
    %143 = vector.multi_reduction <add>, %142, %cst_39 [2] : vector<2x4x4xf32> to vector<2x4xf32>
    %144 = vector.shape_cast %143 : vector<2x4xf32> to vector<2x4x1xf32>
    %145 = vector.broadcast %144 : vector<2x4x1xf32> to vector<2x4x4xf32>
    %146 = arith.divf %142, %145 : vector<2x4x4xf32>
    %cst_40 = arith.constant dense<0.000000e+00> : vector<2x4x1xf32>
    %147 = tpu.matmul %146, %134, %cst_40 {dimension_numbers = #tpu.dot_dimension_numbers<[2], [1], [1], [2], [0, 0, 0, 1, 1, 2], [0], [0]>} : vector<2x4x4xf32>, vector<2x4x1xf32>, vector<2x4x1xf32> -> vector<2x4x1xf32>
    %148 = arith.addf %131, %147 : vector<2x4x1xf32>
    %149 = vector.shape_cast %148 : vector<2x4x1xf32> to vector<8x1xf32>
    %c0_41 = arith.constant 0 : index
    %c0_42 = arith.constant 0 : index
    %150 = vector.load %arg5[%c0_41, %c0_42] : memref<1x1xf32, #tpu.memory_space<vmem>>, vector<1x1xf32>
    %151 = vector.broadcast %150 : vector<1x1xf32> to vector<8x1xf32>
    %152 = arith.addf %149, %151 : vector<8x1xf32>
    %153 = vector.broadcast %152 : vector<8x1xf32> to vector<8x256xf32>
    %154 = arith.mulf %0, %153 : vector<8x256xf32>
    %c0_43 = arith.constant 0 : index
    %c0_44 = arith.constant 0 : index
    %155 = vector.load %arg6[%c0_43, %c0_44] : memref<8x256xf32, #tpu.memory_space<vmem>>, vector<8x256xf32>
    tpu.vector_store %arg6[%c0_43, %c0_44], %154 {strides = array<i32>} : memref<8x256xf32, #tpu.memory_space<vmem>>, vector<8x256xf32>,
    return
  }
  func.func @transform_0(%arg0: i32) -> (i32, i32) {
    %c0_i32 = arith.constant 0 : i32
    %c0_i32_0 = arith.constant 0 : i32
    return %arg0, %c0_i32 : i32, i32
  }
  func.func @transform_1(%arg0: i32) -> (i32, i32) {
    %c0_i32 = arith.constant 0 : i32
    %c0_i32_0 = arith.constant 0 : i32
    %c0_i32_1 = arith.constant 0 : i32
    return %c0_i32, %c0_i32_0 : i32, i32
  }
  func.func @transform_2(%arg0: i32) -> (i32, i32) {
    %c0_i32 = arith.constant 0 : i32
    %c0_i32_0 = arith.constant 0 : i32
    %c0_i32_1 = arith.constant 0 : i32
    return %c0_i32, %c0_i32_0 : i32, i32
  }
  func.func @transform_3(%arg0: i32) -> (i32, i32) {
    %c0_i32 = arith.constant 0 : i32
    %c0_i32_0 = arith.constant 0 : i32
    %c0_i32_1 = arith.constant 0 : i32
    return %c0_i32, %c0_i32_0 : i32, i32
  }
  func.func @transform_4(%arg0: i32) -> (i32, i32) {
    %c0_i32 = arith.constant 0 : i32
    %c0_i32_0 = arith.constant 0 : i32
    %c0_i32_1 = arith.constant 0 : i32
    return %c0_i32, %c0_i32_0 : i32, i32
  }
  func.func @transform_5(%arg0: i32) -> (i32, i32) {
    %c0_i32 = arith.constant 0 : i32
    %c0_i32_0 = arith.constant 0 : i32
    return %arg0, %c0_i32 : i32, i32
  }
}

module attributes {stable_mosaic.version = 11 : i64} {
  func.func @_channel_attention_kernel(%arg0: i32, %arg1: memref<8x256xf32, #tpu.memory_space<vmem>>, %arg2: memref<256x32xbf16, #tpu.memory_space<vmem>>, %arg3: memref<32x72xbf16, #tpu.memory_space<vmem>>, %arg4: memref<4x72xf32, #tpu.memory_space<vmem>>, %arg5: memref<1x1xf32, #tpu.memory_space<vmem>>, %arg6: memref<8x256xf32, #tpu.memory_space<vmem>>) attributes {dimension_semantics = [#tpu.dimension_semantics<parallel>], iteration_bounds = array<i64: 1>, scalar_prefetch = 0 : i64, scratch_operands = 0 : i64, tpu.core_type = #tpu.core_type<tc>, window_params = [{transform_indices = @transform_0, window_bounds = array<i64: 8, 256>}, {pipeline_mode = #tpu.pipeline_mode<synchronous>, transform_indices = @transform_1, window_bounds = array<i64: 256, 32>}, {pipeline_mode = #tpu.pipeline_mode<synchronous>, transform_indices = @transform_2, window_bounds = array<i64: 32, 72>}, {pipeline_mode = #tpu.pipeline_mode<synchronous>, transform_indices = @transform_3, window_bounds = array<i64: 4, 72>}, {pipeline_mode = #tpu.pipeline_mode<synchronous>, transform_indices = @transform_4, window_bounds = array<i64: 1, 1>}, {transform_indices = @transform_5, window_bounds = array<i64: 8, 256>}]} {
    %c0 = arith.constant 0 : index
    %c0_0 = arith.constant 0 : index
    %0 = vector.load %arg1[%c0, %c0_0] : memref<8x256xf32, #tpu.memory_space<vmem>>, vector<8x256xf32>
    %1 = arith.truncf %0 : vector<8x256xf32> to vector<8x256xbf16>
    %c0_1 = arith.constant 0 : index
    %c0_2 = arith.constant 0 : index
    %2 = vector.load %arg2[%c0_1, %c0_2] : memref<256x32xbf16, #tpu.memory_space<vmem>>, vector<256x32xbf16>
    %cst = arith.constant dense<0.000000e+00> : vector<8x32xf32>
    %3 = tpu.matmul %1, %2, %cst {dimension_numbers = #tpu.dot_dimension_numbers<[1], [0], [0], [1], [0, 0, 1, 1], [], []>} : vector<8x256xbf16>, vector<256x32xbf16>, vector<8x32xf32> -> vector<8x32xf32>
    %4 = arith.truncf %3 : vector<8x32xf32> to vector<8x32xbf16>
    %c0_3 = arith.constant 0 : index
    %c0_4 = arith.constant 0 : index
    %5 = vector.load %arg3[%c0_3, %c0_4] : memref<32x72xbf16, #tpu.memory_space<vmem>>, vector<32x72xbf16>
    %cst_5 = arith.constant dense<0.000000e+00> : vector<8x72xf32>
    %6 = tpu.matmul %4, %5, %cst_5 {dimension_numbers = #tpu.dot_dimension_numbers<[1], [0], [0], [1], [0, 0, 1, 1], [], []>} : vector<8x32xbf16>, vector<32x72xbf16>, vector<8x72xf32> -> vector<8x72xf32>
    %7 = vector.shape_cast %6 : vector<8x72xf32> to vector<2x4x72xf32>
    %c0_6 = arith.constant 0 : index
    %c0_7 = arith.constant 0 : index
    %8 = vector.load %arg4[%c0_6, %c0_7] : memref<4x72xf32, #tpu.memory_space<vmem>>, vector<4x72xf32>
    %9 = vector.shape_cast %8 : vector<4x72xf32> to vector<1x4x72xf32>
    %10 = vector.broadcast %9 : vector<1x4x72xf32> to vector<2x4x72xf32>
    %11 = arith.addf %7, %10 : vector<2x4x72xf32>
    %cst_8 = arith.constant 0.000000e+00 : f32
    %12 = vector.broadcast %cst_8 : f32 to vector<2x4x1xf32>
    %13 = vector.extract_strided_slice %11 {offsets = [0, 0, 0], sizes = [2, 4, 4], strides = [1, 1, 1]} : vector<2x4x72xf32> to vector<2x4x4xf32>
    %14 = vector.extract_strided_slice %11 {offsets = [0, 0, 32], sizes = [2, 4, 4], strides = [1, 1, 1]} : vector<2x4x72xf32> to vector<2x4x4xf32>
    %15 = vector.extract_strided_slice %11 {offsets = [0, 0, 64], sizes = [2, 4, 1], strides = [1, 1, 1]} : vector<2x4x72xf32> to vector<2x4x1xf32>
    %16 = arith.truncf %13 : vector<2x4x4xf32> to vector<2x4x4xbf16>
    %17 = arith.truncf %14 : vector<2x4x4xf32> to vector<2x4x4xbf16>
    %cst_9 = arith.constant dense<0.000000e+00> : vector<2x4x4xf32>
    %18 = tpu.matmul %16, %17, %cst_9 {dimension_numbers = #tpu.dot_dimension_numbers<[2], [2], [1], [1], [0, 0, 0, 1, 1, 1], [0], [0]>} : vector<2x4x4xbf16>, vector<2x4x4xbf16>, vector<2x4x4xf32> -> vector<2x4x4xf32>
    %cst_10 = arith.constant dense<0xFF800000> : vector<2x4xf32>
    %19 = vector.multi_reduction <maximumf>, %18, %cst_10 [2] : vector<2x4x4xf32> to vector<2x4xf32>
    %20 = vector.shape_cast %19 : vector<2x4xf32> to vector<2x4x1xf32>
    %21 = vector.broadcast %20 : vector<2x4x1xf32> to vector<2x4x4xf32>
    %22 = arith.subf %18, %21 : vector<2x4x4xf32>
    %23 = math.exp %22 : vector<2x4x4xf32>
    %cst_11 = arith.constant dense<0.000000e+00> : vector<2x4xf32>
    %24 = vector.multi_reduction <add>, %23, %cst_11 [2] : vector<2x4x4xf32> to vector<2x4xf32>
    %25 = vector.shape_cast %24 : vector<2x4xf32> to vector<2x4x1xf32>
    %26 = vector.broadcast %25 : vector<2x4x1xf32> to vector<2x4x4xf32>
    %27 = arith.divf %23, %26 : vector<2x4x4xf32>
    %cst_12 = arith.constant dense<0.000000e+00> : vector<2x4x1xf32>
    %28 = tpu.matmul %27, %15, %cst_12 {dimension_numbers = #tpu.dot_dimension_numbers<[2], [1], [1], [2], [0, 0, 0, 1, 1, 2], [0], [0]>} : vector<2x4x4xf32>, vector<2x4x1xf32>, vector<2x4x1xf32> -> vector<2x4x1xf32>
    %29 = arith.addf %12, %28 : vector<2x4x1xf32>
    %30 = vector.extract_strided_slice %11 {offsets = [0, 0, 4], sizes = [2, 4, 4], strides = [1, 1, 1]} : vector<2x4x72xf32> to vector<2x4x4xf32>
    %31 = vector.extract_strided_slice %11 {offsets = [0, 0, 36], sizes = [2, 4, 4], strides = [1, 1, 1]} : vector<2x4x72xf32> to vector<2x4x4xf32>
    %32 = vector.extract_strided_slice %11 {offsets = [0, 0, 65], sizes = [2, 4, 1], strides = [1, 1, 1]} : vector<2x4x72xf32> to vector<2x4x1xf32>
    %33 = arith.truncf %30 : vector<2x4x4xf32> to vector<2x4x4xbf16>
    %34 = arith.truncf %31 : vector<2x4x4xf32> to vector<2x4x4xbf16>
    %cst_13 = arith.constant dense<0.000000e+00> : vector<2x4x4xf32>
    %35 = tpu.matmul %33, %34, %cst_13 {dimension_numbers = #tpu.dot_dimension_numbers<[2], [2], [1], [1], [0, 0, 0, 1, 1, 1], [0], [0]>} : vector<2x4x4xbf16>, vector<2x4x4xbf16>, vector<2x4x4xf32> -> vector<2x4x4xf32>
    %cst_14 = arith.constant dense<0xFF800000> : vector<2x4xf32>
    %36 = vector.multi_reduction <maximumf>, %35, %cst_14 [2] : vector<2x4x4xf32> to vector<2x4xf32>
    %37 = vector.shape_cast %36 : vector<2x4xf32> to vector<2x4x1xf32>
    %38 = vector.broadcast %37 : vector<2x4x1xf32> to vector<2x4x4xf32>
    %39 = arith.subf %35, %38 : vector<2x4x4xf32>
    %40 = math.exp %39 : vector<2x4x4xf32>
    %cst_15 = arith.constant dense<0.000000e+00> : vector<2x4xf32>
    %41 = vector.multi_reduction <add>, %40, %cst_15 [2] : vector<2x4x4xf32> to vector<2x4xf32>
    %42 = vector.shape_cast %41 : vector<2x4xf32> to vector<2x4x1xf32>
    %43 = vector.broadcast %42 : vector<2x4x1xf32> to vector<2x4x4xf32>
    %44 = arith.divf %40, %43 : vector<2x4x4xf32>
    %cst_16 = arith.constant dense<0.000000e+00> : vector<2x4x1xf32>
    %45 = tpu.matmul %44, %32, %cst_16 {dimension_numbers = #tpu.dot_dimension_numbers<[2], [1], [1], [2], [0, 0, 0, 1, 1, 2], [0], [0]>} : vector<2x4x4xf32>, vector<2x4x1xf32>, vector<2x4x1xf32> -> vector<2x4x1xf32>
    %46 = arith.addf %29, %45 : vector<2x4x1xf32>
    %47 = vector.extract_strided_slice %11 {offsets = [0, 0, 8], sizes = [2, 4, 4], strides = [1, 1, 1]} : vector<2x4x72xf32> to vector<2x4x4xf32>
    %48 = vector.extract_strided_slice %11 {offsets = [0, 0, 40], sizes = [2, 4, 4], strides = [1, 1, 1]} : vector<2x4x72xf32> to vector<2x4x4xf32>
    %49 = vector.extract_strided_slice %11 {offsets = [0, 0, 66], sizes = [2, 4, 1], strides = [1, 1, 1]} : vector<2x4x72xf32> to vector<2x4x1xf32>
    %50 = arith.truncf %47 : vector<2x4x4xf32> to vector<2x4x4xbf16>
    %51 = arith.truncf %48 : vector<2x4x4xf32> to vector<2x4x4xbf16>
    %cst_17 = arith.constant dense<0.000000e+00> : vector<2x4x4xf32>
    %52 = tpu.matmul %50, %51, %cst_17 {dimension_numbers = #tpu.dot_dimension_numbers<[2], [2], [1], [1], [0, 0, 0, 1, 1, 1], [0], [0]>} : vector<2x4x4xbf16>, vector<2x4x4xbf16>, vector<2x4x4xf32> -> vector<2x4x4xf32>
    %cst_18 = arith.constant dense<0xFF800000> : vector<2x4xf32>
    %53 = vector.multi_reduction <maximumf>, %52, %cst_18 [2] : vector<2x4x4xf32> to vector<2x4xf32>
    %54 = vector.shape_cast %53 : vector<2x4xf32> to vector<2x4x1xf32>
    %55 = vector.broadcast %54 : vector<2x4x1xf32> to vector<2x4x4xf32>
    %56 = arith.subf %52, %55 : vector<2x4x4xf32>
    %57 = math.exp %56 : vector<2x4x4xf32>
    %cst_19 = arith.constant dense<0.000000e+00> : vector<2x4xf32>
    %58 = vector.multi_reduction <add>, %57, %cst_19 [2] : vector<2x4x4xf32> to vector<2x4xf32>
    %59 = vector.shape_cast %58 : vector<2x4xf32> to vector<2x4x1xf32>
    %60 = vector.broadcast %59 : vector<2x4x1xf32> to vector<2x4x4xf32>
    %61 = arith.divf %57, %60 : vector<2x4x4xf32>
    %cst_20 = arith.constant dense<0.000000e+00> : vector<2x4x1xf32>
    %62 = tpu.matmul %61, %49, %cst_20 {dimension_numbers = #tpu.dot_dimension_numbers<[2], [1], [1], [2], [0, 0, 0, 1, 1, 2], [0], [0]>} : vector<2x4x4xf32>, vector<2x4x1xf32>, vector<2x4x1xf32> -> vector<2x4x1xf32>
    %63 = arith.addf %46, %62 : vector<2x4x1xf32>
    %64 = vector.extract_strided_slice %11 {offsets = [0, 0, 12], sizes = [2, 4, 4], strides = [1, 1, 1]} : vector<2x4x72xf32> to vector<2x4x4xf32>
    %65 = vector.extract_strided_slice %11 {offsets = [0, 0, 44], sizes = [2, 4, 4], strides = [1, 1, 1]} : vector<2x4x72xf32> to vector<2x4x4xf32>
    %66 = vector.extract_strided_slice %11 {offsets = [0, 0, 67], sizes = [2, 4, 1], strides = [1, 1, 1]} : vector<2x4x72xf32> to vector<2x4x1xf32>
    %67 = arith.truncf %64 : vector<2x4x4xf32> to vector<2x4x4xbf16>
    %68 = arith.truncf %65 : vector<2x4x4xf32> to vector<2x4x4xbf16>
    %cst_21 = arith.constant dense<0.000000e+00> : vector<2x4x4xf32>
    %69 = tpu.matmul %67, %68, %cst_21 {dimension_numbers = #tpu.dot_dimension_numbers<[2], [2], [1], [1], [0, 0, 0, 1, 1, 1], [0], [0]>} : vector<2x4x4xbf16>, vector<2x4x4xbf16>, vector<2x4x4xf32> -> vector<2x4x4xf32>
    %cst_22 = arith.constant dense<0xFF800000> : vector<2x4xf32>
    %70 = vector.multi_reduction <maximumf>, %69, %cst_22 [2] : vector<2x4x4xf32> to vector<2x4xf32>
    %71 = vector.shape_cast %70 : vector<2x4xf32> to vector<2x4x1xf32>
    %72 = vector.broadcast %71 : vector<2x4x1xf32> to vector<2x4x4xf32>
    %73 = arith.subf %69, %72 : vector<2x4x4xf32>
    %74 = math.exp %73 : vector<2x4x4xf32>
    %cst_23 = arith.constant dense<0.000000e+00> : vector<2x4xf32>
    %75 = vector.multi_reduction <add>, %74, %cst_23 [2] : vector<2x4x4xf32> to vector<2x4xf32>
    %76 = vector.shape_cast %75 : vector<2x4xf32> to vector<2x4x1xf32>
    %77 = vector.broadcast %76 : vector<2x4x1xf32> to vector<2x4x4xf32>
    %78 = arith.divf %74, %77 : vector<2x4x4xf32>
    %cst_24 = arith.constant dense<0.000000e+00> : vector<2x4x1xf32>
    %79 = tpu.matmul %78, %66, %cst_24 {dimension_numbers = #tpu.dot_dimension_numbers<[2], [1], [1], [2], [0, 0, 0, 1, 1, 2], [0], [0]>} : vector<2x4x4xf32>, vector<2x4x1xf32>, vector<2x4x1xf32> -> vector<2x4x1xf32>
    %80 = arith.addf %63, %79 : vector<2x4x1xf32>
    %81 = vector.extract_strided_slice %11 {offsets = [0, 0, 16], sizes = [2, 4, 4], strides = [1, 1, 1]} : vector<2x4x72xf32> to vector<2x4x4xf32>
    %82 = vector.extract_strided_slice %11 {offsets = [0, 0, 48], sizes = [2, 4, 4], strides = [1, 1, 1]} : vector<2x4x72xf32> to vector<2x4x4xf32>
    %83 = vector.extract_strided_slice %11 {offsets = [0, 0, 68], sizes = [2, 4, 1], strides = [1, 1, 1]} : vector<2x4x72xf32> to vector<2x4x1xf32>
    %84 = arith.truncf %81 : vector<2x4x4xf32> to vector<2x4x4xbf16>
    %85 = arith.truncf %82 : vector<2x4x4xf32> to vector<2x4x4xbf16>
    %cst_25 = arith.constant dense<0.000000e+00> : vector<2x4x4xf32>
    %86 = tpu.matmul %84, %85, %cst_25 {dimension_numbers = #tpu.dot_dimension_numbers<[2], [2], [1], [1], [0, 0, 0, 1, 1, 1], [0], [0]>} : vector<2x4x4xbf16>, vector<2x4x4xbf16>, vector<2x4x4xf32> -> vector<2x4x4xf32>
    %cst_26 = arith.constant dense<0xFF800000> : vector<2x4xf32>
    %87 = vector.multi_reduction <maximumf>, %86, %cst_26 [2] : vector<2x4x4xf32> to vector<2x4xf32>
    %88 = vector.shape_cast %87 : vector<2x4xf32> to vector<2x4x1xf32>
    %89 = vector.broadcast %88 : vector<2x4x1xf32> to vector<2x4x4xf32>
    %90 = arith.subf %86, %89 : vector<2x4x4xf32>
    %91 = math.exp %90 : vector<2x4x4xf32>
    %cst_27 = arith.constant dense<0.000000e+00> : vector<2x4xf32>
    %92 = vector.multi_reduction <add>, %91, %cst_27 [2] : vector<2x4x4xf32> to vector<2x4xf32>
    %93 = vector.shape_cast %92 : vector<2x4xf32> to vector<2x4x1xf32>
    %94 = vector.broadcast %93 : vector<2x4x1xf32> to vector<2x4x4xf32>
    %95 = arith.divf %91, %94 : vector<2x4x4xf32>
    %cst_28 = arith.constant dense<0.000000e+00> : vector<2x4x1xf32>
    %96 = tpu.matmul %95, %83, %cst_28 {dimension_numbers = #tpu.dot_dimension_numbers<[2], [1], [1], [2], [0, 0, 0, 1, 1, 2], [0], [0]>} : vector<2x4x4xf32>, vector<2x4x1xf32>, vector<2x4x1xf32> -> vector<2x4x1xf32>
    %97 = arith.addf %80, %96 : vector<2x4x1xf32>
    %98 = vector.extract_strided_slice %11 {offsets = [0, 0, 20], sizes = [2, 4, 4], strides = [1, 1, 1]} : vector<2x4x72xf32> to vector<2x4x4xf32>
    %99 = vector.extract_strided_slice %11 {offsets = [0, 0, 52], sizes = [2, 4, 4], strides = [1, 1, 1]} : vector<2x4x72xf32> to vector<2x4x4xf32>
    %100 = vector.extract_strided_slice %11 {offsets = [0, 0, 69], sizes = [2, 4, 1], strides = [1, 1, 1]} : vector<2x4x72xf32> to vector<2x4x1xf32>
    %101 = arith.truncf %98 : vector<2x4x4xf32> to vector<2x4x4xbf16>
    %102 = arith.truncf %99 : vector<2x4x4xf32> to vector<2x4x4xbf16>
    %cst_29 = arith.constant dense<0.000000e+00> : vector<2x4x4xf32>
    %103 = tpu.matmul %101, %102, %cst_29 {dimension_numbers = #tpu.dot_dimension_numbers<[2], [2], [1], [1], [0, 0, 0, 1, 1, 1], [0], [0]>} : vector<2x4x4xbf16>, vector<2x4x4xbf16>, vector<2x4x4xf32> -> vector<2x4x4xf32>
    %cst_30 = arith.constant dense<0xFF800000> : vector<2x4xf32>
    %104 = vector.multi_reduction <maximumf>, %103, %cst_30 [2] : vector<2x4x4xf32> to vector<2x4xf32>
    %105 = vector.shape_cast %104 : vector<2x4xf32> to vector<2x4x1xf32>
    %106 = vector.broadcast %105 : vector<2x4x1xf32> to vector<2x4x4xf32>
    %107 = arith.subf %103, %106 : vector<2x4x4xf32>
    %108 = math.exp %107 : vector<2x4x4xf32>
    %cst_31 = arith.constant dense<0.000000e+00> : vector<2x4xf32>
    %109 = vector.multi_reduction <add>, %108, %cst_31 [2] : vector<2x4x4xf32> to vector<2x4xf32>
    %110 = vector.shape_cast %109 : vector<2x4xf32> to vector<2x4x1xf32>
    %111 = vector.broadcast %110 : vector<2x4x1xf32> to vector<2x4x4xf32>
    %112 = arith.divf %108, %111 : vector<2x4x4xf32>
    %cst_32 = arith.constant dense<0.000000e+00> : vector<2x4x1xf32>
    %113 = tpu.matmul %112, %100, %cst_32 {dimension_numbers = #tpu.dot_dimension_numbers<[2], [1], [1], [2], [0, 0, 0, 1, 1, 2], [0], [0]>} : vector<2x4x4xf32>, vector<2x4x1xf32>, vector<2x4x1xf32> -> vector<2x4x1xf32>
    %114 = arith.addf %97, %113 : vector<2x4x1xf32>
    %115 = vector.extract_strided_slice %11 {offsets = [0, 0, 24], sizes = [2, 4, 4], strides = [1, 1, 1]} : vector<2x4x72xf32> to vector<2x4x4xf32>
    %116 = vector.extract_strided_slice %11 {offsets = [0, 0, 56], sizes = [2, 4, 4], strides = [1, 1, 1]} : vector<2x4x72xf32> to vector<2x4x4xf32>
    %117 = vector.extract_strided_slice %11 {offsets = [0, 0, 70], sizes = [2, 4, 1], strides = [1, 1, 1]} : vector<2x4x72xf32> to vector<2x4x1xf32>
    %118 = arith.truncf %115 : vector<2x4x4xf32> to vector<2x4x4xbf16>
    %119 = arith.truncf %116 : vector<2x4x4xf32> to vector<2x4x4xbf16>
    %cst_33 = arith.constant dense<0.000000e+00> : vector<2x4x4xf32>
    %120 = tpu.matmul %118, %119, %cst_33 {dimension_numbers = #tpu.dot_dimension_numbers<[2], [2], [1], [1], [0, 0, 0, 1, 1, 1], [0], [0]>} : vector<2x4x4xbf16>, vector<2x4x4xbf16>, vector<2x4x4xf32> -> vector<2x4x4xf32>
    %cst_34 = arith.constant dense<0xFF800000> : vector<2x4xf32>
    %121 = vector.multi_reduction <maximumf>, %120, %cst_34 [2] : vector<2x4x4xf32> to vector<2x4xf32>
    %122 = vector.shape_cast %121 : vector<2x4xf32> to vector<2x4x1xf32>
    %123 = vector.broadcast %122 : vector<2x4x1xf32> to vector<2x4x4xf32>
    %124 = arith.subf %120, %123 : vector<2x4x4xf32>
    %125 = math.exp %124 : vector<2x4x4xf32>
    %cst_35 = arith.constant dense<0.000000e+00> : vector<2x4xf32>
    %126 = vector.multi_reduction <add>, %125, %cst_35 [2] : vector<2x4x4xf32> to vector<2x4xf32>
    %127 = vector.shape_cast %126 : vector<2x4xf32> to vector<2x4x1xf32>
    %128 = vector.broadcast %127 : vector<2x4x1xf32> to vector<2x4x4xf32>
    %129 = arith.divf %125, %128 : vector<2x4x4xf32>
    %cst_36 = arith.constant dense<0.000000e+00> : vector<2x4x1xf32>
    %130 = tpu.matmul %129, %117, %cst_36 {dimension_numbers = #tpu.dot_dimension_numbers<[2], [1], [1], [2], [0, 0, 0, 1, 1, 2], [0], [0]>} : vector<2x4x4xf32>, vector<2x4x1xf32>, vector<2x4x1xf32> -> vector<2x4x1xf32>
    %131 = arith.addf %114, %130 : vector<2x4x1xf32>
    %132 = vector.extract_strided_slice %11 {offsets = [0, 0, 28], sizes = [2, 4, 4], strides = [1, 1, 1]} : vector<2x4x72xf32> to vector<2x4x4xf32>
    %133 = vector.extract_strided_slice %11 {offsets = [0, 0, 60], sizes = [2, 4, 4], strides = [1, 1, 1]} : vector<2x4x72xf32> to vector<2x4x4xf32>
    %134 = vector.extract_strided_slice %11 {offsets = [0, 0, 71], sizes = [2, 4, 1], strides = [1, 1, 1]} : vector<2x4x72xf32> to vector<2x4x1xf32>
    %135 = arith.truncf %132 : vector<2x4x4xf32> to vector<2x4x4xbf16>
    %136 = arith.truncf %133 : vector<2x4x4xf32> to vector<2x4x4xbf16>
    %cst_37 = arith.constant dense<0.000000e+00> : vector<2x4x4xf32>
    %137 = tpu.matmul %135, %136, %cst_37 {dimension_numbers = #tpu.dot_dimension_numbers<[2], [2], [1], [1], [0, 0, 0, 1, 1, 1], [0], [0]>} : vector<2x4x4xbf16>, vector<2x4x4xbf16>, vector<2x4x4xf32> -> vector<2x4x4xf32>
    %cst_38 = arith.constant dense<0xFF800000> : vector<2x4xf32>
    %138 = vector.multi_reduction <maximumf>, %137, %cst_38 [2] : vector<2x4x4xf32> to vector<2x4xf32>
    %139 = vector.shape_cast %138 : vector<2x4xf32> to vector<2x4x1xf32>
    %140 = vector.broadcast %139 : vector<2x4x1xf32> to vector<2x4x4xf32>
    %141 = arith.subf %137, %140 : vector<2x4x4xf32>
    %142 = math.exp %141 : vector<2x4x4xf32>
    %cst_39 = arith.constant dense<0.000000e+00> : vector<2x4xf32>
    %143 = vector.multi_reduction <add>, %142, %cst_39 [2] : vector<2x4x4xf32> to vector<2x4xf32>
    %144 = vector.shape_cast %143 : vector<2x4xf32> to vector<2x4x1xf32>
    %145 = vector.broadcast %144 : vector<2x4x1xf32> to vector<2x4x4xf32>
    %146 = arith.divf %142, %145 : vector<2x4x4xf32>
    %cst_40 = arith.constant dense<0.000000e+00> : vector<2x4x1xf32>
    %147 = tpu.matmul %146, %134, %cst_40 {dimension_numbers = #tpu.dot_dimension_numbers<[2], [1], [1], [2], [0, 0, 0, 1, 1, 2], [0], [0]>} : vector<2x4x4xf32>, vector<2x4x1xf32>, vector<2x4x1xf32> -> vector<2x4x1xf32>
    %148 = arith.addf %131, %147 : vector<2x4x1xf32>
    %149 = vector.shape_cast %148 : vector<2x4x1xf32> to vector<8x1xf32>
    %c0_41 = arith.constant 0 : index
    %c0_42 = arith.constant 0 : index
    %150 = vector.load %arg5[%c0_41, %c0_42] : memref<1x1xf32, #tpu.memory_space<vmem>>, vector<1x1xf32>
    %151 = vector.broadcast %150 : vector<1x1xf32> to vector<8x1xf32>
    %152 = arith.addf %149, %151 : vector<8x1xf32>
    %153 = vector.broadcast %152 : vector<8x1xf32> to vector<8x256xf32>
    %154 = arith.mulf %0, %153 : vector<8x256xf32>
    %c0_43 = arith.constant 0 : index
    %c0_44 = arith.constant 0 : index
    %155 = vector.load %arg6[%c0_43, %c0_44] : memref<8x256xf32, #tpu.memory_space<vmem>>, vector<8x256xf32>
    tpu.vector_store %arg6[%c0_43, %c0_44], %154 {strides = array<i32>} : memref<8x256xf32, #tpu.memory_space<vmem>>, vector<8x256xf32>,
    return
  }
  func.func @transform_0(%arg0: i32) -> (i32, i32) {
    %c0_i32 = arith.constant 0 : i32
    %c0_i32_0 = arith.constant 0 : i32
    return %arg0, %c0_i32 : i32, i32
  }
  func.func @transform_1(%arg0: i32) -> (i32, i32) {
    %c0_i32 = arith.constant 0 : i32
    %c0_i32_0 = arith.constant 0 : i32
    %c0_i32_1 = arith.constant 0 : i32
    return %c0_i32, %c0_i32_0 : i32, i32
  }
  func.func @transform_2(%arg0: i32) -> (i32, i32) {
    %c0_i32 = arith.constant 0 : i32
    %c0_i32_0 = arith.constant 0 : i32
    %c0_i32_1 = arith.constant 0 : i32
    return %c0_i32, %c0_i32_0 : i32, i32
  }
  func.func @transform_3(%arg0: i32) -> (i32, i32) {
    %c0_i32 = arith.constant 0 : i32
    %c0_i32_0 = arith.constant 0 : i32
    %c0_i32_1 = arith.constant 0 : i32
    return %c0_i32, %c0_i32_0 : i32, i32
  }
  func.func @transform_4(%arg0: i32) -> (i32, i32) {
    %c0_i32 = arith.constant 0 : i32
    %c0_i32_0 = arith.constant 0 : i32
    %c0_i32_1 = arith.constant 0 : i32
    return %c0_i32, %c0_i32_0 : i32, i32
  }
  func.func @transform_5(%arg0: i32) -> (i32, i32) {
    %c0_i32 = arith.constant 0 : i32
    %c0_i32_0 = arith.constant 0 : i32
    return %arg0, %c0_i32 : i32, i32
  }
}

</mosaic_0001>

<bundles_post_ra>
// kernel: tpu_custom_call.1
= control target key start
LH: loop header
LB: loop body
LE: loop exit
PB: predicated region body
PF: predicated region fallthrough
CT: control target
= control target key end

     0   :  { %s3456_s0 = inlined_call_operand.vmem [shape: f32[8,256], index: 0, kind: input, shape index: {}]   ;;  %s3457_s1 = inlined_call_operand.vmem [shape: bf16[256,32], index: 1, kind: input, shape index: {}]   ;;  %s3458_s2 = inlined_call_operand.vmem [shape: bf16[32,72], index: 2, kind: input, shape index: {}]   ;;  %s3459_s3 = inlined_call_operand.vmem [shape: f32[4,72], index: 3, kind: input, shape index: {}]   ;;  %s3460_s4 = inlined_call_operand.<no memory space> [shape: f32[1,1], index: 4, kind: input, shape index: {}]   ;;  %s3461_s5 = inlined_call_operand.hbm [shape: f32[8,256], index: 5, kind: output, shape index: {}]  }
   0x1   :  { %v10_v0 = vstv %s3460_s4 }
   0x2   :  { %11 = vst [vmem:[#allocation2] sm:$0x1] %v10_v0 }
   0x3   :  { %v2918_v1 = vld [vmem:[%s3457_s1 + $0x40] sm:$0xff]   ;;  %v3026_v3 = vmov 0.0   ;;  %v2920_v4 = vld [vmem:[%s3457_s1 + $0x48] sm:$0xff]   ;;  %v2922_v6 = vld [vmem:[%s3457_s1 + $0x50] sm:$0xff]  }
   0x4   :  { %v2919_v2 = vld [vmem:[%s3457_s1] sm:$0xff]   ;;  %2704 = vmatprep.subr.bf16.mxu1 %v3026_v3  ;;  %2615 = vmatprep.subr.bf16.mxu0 %v2918_v1  ;;  %v2921_v5 = vld [vmem:[%s3457_s1 + $0x8] sm:$0xff]   ;;  %v2923_v7 = vld [vmem:[%s3457_s1 + $0x10] sm:$0xff]  }
   0x5   :  { %2616 = vmatpush3.bf16.msra.mxu0 %v2919_v2  ;;  %v2924_v8 = vld [vmem:[%s3457_s1 + $0x58] sm:$0xff]   ;;  %v2926_v10 = vld [vmem:[%s3457_s1 + $0x60] sm:$0xff]   ;;  %v2928_v12 = vld [vmem:[%s3457_s1 + $0x68] sm:$0xff]  }
   0x6   :  { %2617 = vmatprep.subr.bf16.mxu0 %v2920_v4  ;;  %v2925_v9 = vld [vmem:[%s3457_s1 + $0x18] sm:$0xff]   ;;  %v2927_v11 = vld [vmem:[%s3457_s1 + $0x20] sm:$0xff]   ;;  %v25_v13 = vld [vmem:[%s3456_s0 + $0x8] sm:$0xff] }
   0x7   :  { %v27_v14 = vpack.c.bf16 %v25_v13, %v25_v13  ;;  %v2934_v15 = vld [vmem:[%s3458_s2] sm:$0xff]  }
   0x9   :  { %2618 = vmatpush3.bf16.msra.mxu0 %v2921_v5 }
   0xa   :  { %2619 = vmatprep.subr.bf16.mxu0 %v2922_v6 }
   0xd   :  { %2620 = vmatpush3.bf16.msra.mxu0 %v2923_v7 }
   0xe   :  { %2621 = vmatprep.subr.bf16.mxu0 %v2924_v8 }
  0x11   :  { %2622 = vmatpush3.bf16.msra.mxu0 %v2925_v9 }
  0x12   :  { %2623 = vmatprep.subr.bf16.mxu0 %v2926_v10 }
  0x13   :  { %12 = vsyncpa [#allocation4], 0  ;;  %v2929_v16 = vld [vmem:[%s3457_s1 + $0x28] sm:$0xff]   ;;  %188 = vmatprep.mubr.bf16.mxu0 %v27_v14  ;;  %v2930_v17 = vld [vmem:[%s3457_s1 + $0x70] sm:$0xff]   ;;  %2705 = vmatpush3.bf16.msra.mxu1 %v2934_v15  ;;  %vm3027_vm0 = vmmov 0   ;;  %vm213_vm1 = vcmask 261120  }
  0x14   :  { %2706 = vmatprep.subr.bf16.mxu1 %v3026_v3  ;;  %v2931_v18 = vld [vmem:[%s3457_s1 + $0x30] sm:$0xff]   ;;  %v2932_v19 = vld [vmem:[%s3457_s1 + $0x78] sm:$0xff]   ;;  %v24_v21 = vld [vmem:[%s3456_s0] sm:$0xff]  ;;  %2708 = vmatprep.mubr.msk.bf16.mxu1 %vm3027_vm0, %v3026_v3  ;;  %s3028_s8 = smov 92   ;;  %s3029_s9 = smov 96   ;;  %vm268_vm2 = vcmask 31744  }
  0x15   :  { %2624 = vmatpush3.bf16.msra.mxu0 %v2927_v11  ;;  %v2933_v20 = vld [vmem:[%s3457_s1 + $0x38] sm:$0xff]   ;;  %v26_v22 = vpack.c.bf16 %v24_v21, %v24_v21  ;;  %v2935_v23 = vld [vmem:[%s3458_s2 + $0x8] sm:$0xff]   ;;  %v260_v30 = vld [vmem:[%s3459_s3] sm:$0xf]  ;;  %s3030_s3 = smov 124   ;;  %vm364_vm3 = vcmask 27648  }
  0x16   :  { %2625 = vmatprep.subr.bf16.mxu0 %v2928_v12  ;;  %s3031_s10 = smov 63   ;;  %s3032_s11 = smov 64   ;;  %vm515_vm4 = vcmask 1043456  }
  0x17   :  { %2707 = vmatpush3.bf16.msra.mxu1 %v2935_v23  ;;  %s3033_s12 = smov 88   ;;  %s3034_s13 = smov 120  }
  0x18   :  { %2712 = vmatprep.subr.bf16.mxu1 %v3026_v3  ;;  %s3035_s14 = smov 62   ;;  %s3036_s15 = smov 84  }
  0x19   :  { %2626 = vmatpush3.bf16.msra.mxu0 %v2929_v16  ;;  %s3037_s16 = smov 116   ;;  %s3038_s17 = smov 61  }
  0x1a   :  { %2627 = vmatprep.subr.bf16.mxu0 %v2930_v17  ;;  %s3039_s18 = smov 80   ;;  %s3040_s19 = smov 112  }
  0x1b   :  { %s3041_s20 = smov 60   ;;  %s3042_s21 = smov 76  }
  0x1c   :  { %s3043_s22 = smov 108   ;;  %s3044_s23 = smov 59  }
  0x1d   :  { %2628 = vmatpush3.bf16.msra.mxu0 %v2931_v18  ;;  %s3045_s24 = smov 72   ;;  %s3046_s25 = smov 104  }
  0x1e   :  { %2629 = vmatprep.subr.bf16.mxu0 %v2932_v19  ;;  %s3047_s26 = smov 58   ;;  %s3048_s4 = smov 68  }
  0x1f   :  { %s3049_s27 = smov 100   ;;  %s3050_s28 = smov 57  }
  0x20   :  { %s3053_s29 = smov [#allocation3]  }
  0x21   :  { %2630 = vmatpush3.bf16.msra.mxu0 %v2933_v20  ;;  %s2539_s30 = sshll.u32 %s3053_s29, 4  ;;  %s2540_s30 = int_to_ptr.vmem [resolvable:$true] %s2539_s30 }
  0x22   :  { %2730 = vmatprep.subr.bf16.mxu0 %v3026_v3  ;;  %p3007_p1 = scmp.lt.s32.totalorder %s2540_s30, %s2540_s30 }
  0x24   :  { %189 = vmatmul.mubr.bf16.vlgmr.msra.gmra.mrb[0].mxu0 %v26_v22 }
  0x25   :  { %2732 = vmatprep.mubr.msk.bf16.mxu0 %vm3027_vm0, %v3026_v3 }
  0xf7   :  { %v2631_v24 = vpop.f32.mrb[0].mxu0 }
  0xf8   :  { %v2632_v25 = vpop.f32.mrb[1].mxu0 }
  0xf9   :  { %v2633_v26 = vadd.f32 %v2632_v25, %v2631_v24  ;;  %v2634_v27 = vpop.f32.mrb[2].mxu0 }
  0xfa   :  { %v2635_v28 = vpop.f32.mrb[3].mxu0 }
  0xfb   :  { %v196_v29 = vpack.c.bf16 %v2633_v26, %v2633_v26 }
  0xfd   :  { %2709 = vmatmul.mubr.msk.bf16.vlgmr.msra.gmra.mrb[0].mxu1 %vm213_vm1, %v196_v29 }
  0xfe   :  { %2714 = vmatprep.mubr.msk.bf16.mxu1 %vm3027_vm0, %v3026_v3 }
 0x1d0   :  { %v251_v31 = vpop.f32.mrb[0].mxu1 }
 0x1d1   :  { %v258_v32 = vcombine.high %v251_v31, %v251_v31  ;;  %v3160_v33 = vadd.f32 %v260_v30, %v251_v31  ;;  %v2710_v34 = vpop.f32.mrb[1].mxu1 }
 0x1d2   :  { %v254_v35 = vpop.f32.mrb[2].mxu1 }
 0x1d3   :  { %v3162_v36 = vadd.f32 %v260_v30, %v258_v32  ;;  %v3166_v37 = vpack.c.bf16 %v3160_v33, %v3160_v33  ;;  %v2711_v38 = vpop.f32.mrb[3].mxu1 }
 0x1d5   :  { %389 = vrot.lane.b32.xlu1 %v3166_v37, %s3028_s8  ;;  %266 = vrot.lane.b32.xlu0 %v3166_v37, %s3029_s9  ;;  %v3172_v39 = vpack.c.bf16 %v3162_v36, %v3162_v36 }
 0x1d9   :  { %439 = vrot.lane.b32.xlu1 %v3172_v39, %s3028_s8  ;;  %316 = vrot.lane.b32.xlu0 %v3172_v39, %s3029_s9  ;;  %s3002_s8 = scalar_lea.vmem %s2540_s30, 256 }
 0x1da   :  { %p3003_p0 = scmp.ne.s32.totalorder %s2540_s30, %s3002_s8  ;;  %p3008_p2 = scmp.lt.s32.totalorder %s3002_s8, %s3002_s8 }
 0x1dc   :  { %p3009_p3 = por %p3008_p2, %p3007_p1 }
 0x1dd   :  { %437 = vrot.lane.b32.xlu1 %v3172_v39, %s3030_s3  ;;  %387 = vrot.lane.b32.xlu0 %v3166_v37, %s3030_s3 }
 0x1de   :  { %p3010_p4 = pnand %p3009_p3, %p3003_p0 }
 0x247   :  { %v390_v40 = vpop.permute.xlu1 %389  ;;  %v267_v41 = vpop.permute.xlu0 %266 }
 0x248   :  { %v273_v42 = vsel %vm268_vm2, %v267_v41, 0  ;;  %v395_v48 = vsel %vm268_vm2, %v390_v40, 0 }
 0x249   :  { %2713 = vmatpush3.bf16.xpose.msra.mxu1 %v273_v42 }
 0x24a   :  { %2718 = vmatprep.subr.bf16.mxu1 %v3026_v3 }
 0x24b   :  { %v440_v43 = vpop.permute.xlu1 %439  ;;  %v317_v45 = vpop.permute.xlu0 %316 }
 0x24c   :  { %v445_v44 = vsel %vm268_vm2, %v440_v43, 0  ;;  %v322_v46 = vsel %vm268_vm2, %v317_v45, 0 }
 0x24d   :  { %2731 = vmatpush3.bf16.xpose.msra.mxu0 %v445_v44 }
 0x24e   :  { %2746 = vmatprep.subr.mxu0 %v3026_v3 }
 0x24f   :  { %v438_v47 = vpop.permute.xlu1 %437  ;;  %v388_v49 = vpop.permute.xlu0 %387 }
 0x250   :  { %2715 = vmatmul.mubr.msk.bf16.vlgmr.msra.gmra.mrb[4].mxu1 %vm268_vm2, %v3166_v37 }
 0x251   :  { %2719 = vmatpush3.bf16.xpose.msra.mxu1 %v322_v46  ;;  %2720 = vmatprep.mubr.msk.bf16.mxu1 %vm3027_vm0, %v3026_v3 }
 0x252   :  { %2724 = vmatprep.subr.bf16.mxu1 %v3026_v3 }
 0x254   :  { %2733 = vmatmul.mubr.msk.bf16.vlgmr.msra.gmra.mrb[4].mxu0 %vm268_vm2, %v438_v47 }
 0x255   :  { %2748 = vmatprep.mubr.msk.f32.mxu0 %vm3027_vm0, %v3026_v3 }
 0x258   :  { %2721 = vmatmul.mubr.msk.bf16.vlgmr.msra.gmra.mrb[8].mxu1 %vm268_vm2, %v3172_v39 }
 0x259   :  { %2725 = vmatpush3.bf16.xpose.msra.mxu1 %v395_v48  ;;  %2726 = vmatprep.mubr.msk.bf16.mxu1 %vm3027_vm0, %v3026_v3 }
 0x25a   :  { %2736 = vmatprep.subr.mxu1 %v3026_v3 }
 0x260   :  { %2727 = vmatmul.mubr.msk.bf16.vlgmr.msra.gmra.mrb[12].mxu1 %vm268_vm2, %v388_v49 }
 0x261   :  { %2738 = vmatprep.mubr.msk.f32.mxu1 %vm3027_vm0, %v3026_v3 }
 0x323   :  { %v309_v50 = vpop.f32.mrb[4].mxu1 }
 0x324   :  { %v2716_v51 = vpop.f32.mrb[5].mxu1  ;;  %v365_v5 = vsel %vm364_vm3, %v309_v50, -inf }
 0x325   :  { %v312_v52 = vpop.f32.mrb[6].mxu1 }
 0x326   :  { %v2717_v53 = vpop.f32.mrb[7].mxu1 }
 0x327   :  { %v481_v54 = vpop.f32.mrb[4].mxu0 }
 0x328   :  { %v2734_v55 = vpop.f32.mrb[5].mxu0  ;;  %v490_v56 = vsel %vm364_vm3, %v481_v54, -inf }
 0x329   :  { %491 = vmax.xlane.f32.xlu1 %v490_v56  ;;  %v484_v57 = vpop.f32.mrb[6].mxu0 }
 0x32a   :  { %v2735_v58 = vpop.f32.mrb[7].mxu0 }
 0x32b   :  { %v358_v59 = vpop.f32.mrb[8].mxu1 }
 0x32c   :  { %v2722_v60 = vpop.f32.mrb[9].mxu1  ;;  %v368_v6 = vsel %vm364_vm3, %v358_v59, -inf }
 0x32d   :  { %v361_v61 = vpop.f32.mrb[10].mxu1 }
 0x32e   :  { %v2723_v62 = vpop.f32.mrb[11].mxu1 }
 0x333   :  { %v431_v63 = vpop.f32.mrb[12].mxu1 }
 0x334   :  { %v2728_v0 = vpop.f32.mrb[13].mxu1  ;;  %v487_v1 = vsel %vm364_vm3, %v431_v63, -inf }
 0x335   :  { %488 = vmax.xlane.f32.xlu0 %v487_v1  ;;  %v434_v2 = vpop.f32.mrb[14].mxu1 }
 0x336   :  { %v2729_v4 = vpop.f32.mrb[15].mxu1 }
 0x339   :  { %366 = vmax.xlane.f32.xlu0 %v365_v5 }
 0x33a   :  { %510 = vrot.lane.b32.xlu1 %v3160_v33, %s3031_s10 }
 0x33d   :  { %369 = vmax.xlane.f32.xlu0 %v368_v6 }
 0x33e   :  { %666 = vrot.lane.b32.xlu1 %v3160_v33, %s3032_s11 }
 0x353   :  { %589 = vrot.lane.b32.xlu0 %v3162_v36, %s3031_s10 }
 0x3b6   :  { %v492_v7 = vpop.xlane.xlu1 %491 }
 0x3b7   :  { %v494_v8 = vsub.f32 %v481_v54, %v492_v7 }
 0x3b9   :  { %v497_v9 = vmul.f32 1.442695, %v494_v8 }
 0x3ba   :  { %v511_v10 = vpop.permute.xlu1 %510 }
 0x3bb   :  { %2936 = vpow2.f32 %v497_v9  ;;  %2737 = vmatpush3.msk.msra.mxu1 %vm515_vm4, %v511_v10 }
 0x3bc   :  { %2741 = vmatprep.subr.mxu1 %v3026_v3 }
 0x3be   :  { %v667_v11 = vpop.permute.xlu1 %666 }
 0x3bf   :  { %2747 = vmatpush3.msk.msra.mxu0 %vm515_vm4, %v667_v11 }
 0x3c0   :  { %2756 = vmatprep.subr.bf16.mxu0 %v3026_v3 }
 0x3c2   :  { %v489_v12 = vpop.xlane.xlu0 %488 }
 0x3c3   :  { %v493_v14 = vsub.f32 %v431_v63, %v489_v12 }
 0x3c5   :  { %v2937_v13 = vpop.eup %2936  ;;  %v495_v18 = vmul.f32 1.442695, %v493_v14 }
 0x3c6   :  { %v367_v15 = vpop.xlane.xlu0 %366  ;;  %v502_v16 = vsel %vm364_vm3, %v2937_v13, 0.0 }
 0x3c7   :  { %v371_v17 = vsub.f32 %v309_v50, %v367_v15  ;;  %503 = vadd.xlane.f32.xlu0 %v502_v16 }
 0x3c9   :  { %v373_v19 = vmul.f32 1.442695, %v371_v17 }
 0x3ca   :  { %v370_v20 = vpop.xlane.xlu0 %369 }
 0x3cb   :  { %2938 = vpow2.f32 %v373_v19  ;;  %v372_v21 = vsub.f32 %v358_v59, %v370_v20 }
 0x3cc   :  { %2940 = vpow2.f32 %v495_v18 }
 0x3cd   :  { %v375_v22 = vmul.f32 1.442695, %v372_v21 }
 0x3ce   :  { %v590_v29 = vpop.permute.xlu0 %589 }
 0x3cf   :  { %2942 = vpow2.f32 %v375_v22 }
 0x3d5   :  { %v2939_v23 = vpop.eup %2938 }
 0x3d6   :  { %v377_v24 = vsel %vm364_vm3, %v2939_v23, 0.0  ;;  %v2941_v25 = vpop.eup %2940 }
 0x3d7   :  { %378 = vadd.xlane.f32.xlu1 %v377_v24  ;;  %v499_v27 = vsel %vm364_vm3, %v2941_v25, 0.0 }
 0x3d9   :  { %v2943_v26 = vpop.eup %2942 }
 0x3da   :  { %v380_v28 = vsel %vm364_vm3, %v2943_v26, 0.0 }
 0x3db   :  { %500 = vadd.xlane.f32.xlu1 %v499_v27  ;;  %381 = vadd.xlane.f32.xlu0 %v380_v28 }
 0x3ec   :  { %743 = vrot.lane.b32.xlu1 %v3162_v36, %s3032_s11 }
 0x3f0   :  { %872 = vrot.lane.b32.xlu1 %v3172_v39, %s3033_s12 }
 0x3f1   :  { %822 = vrot.lane.b32.xlu0 %v3166_v37, %s3033_s12 }
 0x3f4   :  { %870 = vrot.lane.b32.xlu1 %v3172_v39, %s3034_s13 }
 0x3f5   :  { %820 = vrot.lane.b32.xlu0 %v3166_v37, %s3034_s13 }
 0x454   :  { %v504_v31 = vpop.xlane.xlu0 %503 }
 0x464   :  { %v379_v30 = vpop.xlane.xlu1 %378 }
 0x465   :  { %2944 = vrcp.f32 %v379_v30 }
 0x468   :  { %v501_v32 = vpop.xlane.xlu1 %500  ;;  %v382_v34 = vpop.xlane.xlu0 %381 }
 0x469   :  { %2946 = vrcp.f32 %v501_v32 }
 0x46a   :  { %2948 = vrcp.f32 %v504_v31 }
 0x46b   :  { %2950 = vrcp.f32 %v382_v34 }
 0x46c   :  { %v823_v38 = vpop.permute.xlu0 %822  ;;  %v744_v46 = vpop.permute.xlu1 %743 }
 0x46d   :  { %v828_v41 = vsel %vm268_vm2, %v823_v38, 0 }
 0x46f   :  { %v2945_v35 = vpop.eup %2944 }
 0x470   :  { %v384_v40 = vmul.f32 %v2945_v35, %v2939_v23  ;;  %v821_v48 = vpop.permute.xlu0 %820  ;;  %v873_v50 = vpop.permute.xlu1 %872 }
 0x471   :  { %v878_v51 = vsel %vm268_vm2, %v873_v50, 0 }
 0x472   :  { %2749 = vmatmul.mubr.msk.f32.vlgmr.msra.gmra.mrb[8].mxu0 %vm268_vm2, %v384_v40 }
 0x473   :  { %v2947_v42 = vpop.eup %2946  ;;  %2757 = vmatpush3.bf16.xpose.msra.mxu0 %v828_v41  ;;  %2758 = vmatprep.mubr.msk.bf16.mxu0 %vm3027_vm0, %v3026_v3 }
 0x474   :  { %v506_v43 = vmul.f32 %v2947_v42, %v2941_v25  ;;  %2768 = vmatprep.subr.mxu0 %v3026_v3  ;;  %v2949_v44 = vpop.eup %2948  ;;  %v871_v52 = vpop.permute.xlu1 %870 }
 0x475   :  { %v508_v45 = vmul.f32 %v2949_v44, %v2937_v13  ;;  %v2951_v47 = vpop.eup %2950 }
 0x476   :  { %2739 = vmatmul.mubr.msk.f32.vlgmr.msra.gmra.mrb[16].mxu1 %vm268_vm2, %v506_v43  ;;  %v386_v49 = vmul.f32 %v2951_v47, %v2943_v26 }
 0x477   :  { %2742 = vmatpush3.msk.msra.mxu1 %vm515_vm4, %v590_v29  ;;  %2743 = vmatprep.mubr.msk.f32.mxu1 %vm3027_vm0, %v3026_v3 }
 0x478   :  { %2751 = vmatprep.subr.mxu1 %v3026_v3 }
 0x47a   :  { %2759 = vmatmul.mubr.msk.bf16.vlgmr.msra.gmra.mrb[12].mxu0 %vm268_vm2, %v821_v48  ;;  %2744 = vmatmul.mubr.msk.f32.vlgmr.msra.gmra.mrb[18].mxu1 %vm268_vm2, %v508_v45 }
 0x47b   :  { %2752 = vmatpush3.msk.msra.mxu1 %vm515_vm4, %v744_v46  ;;  %2753 = vmatprep.mubr.msk.f32.mxu1 %vm3027_vm0, %v3026_v3 }
 0x47c   :  { %2762 = vmatprep.subr.bf16.mxu1 %v3026_v3  ;;  %2770 = vmatprep.mubr.msk.f32.mxu0 %vm3027_vm0, %v3026_v3 }
 0x47e   :  { %2754 = vmatmul.mubr.msk.f32.vlgmr.msra.gmra.mrb[20].mxu1 %vm268_vm2, %v386_v49 }
 0x47f   :  { %2764 = vmatprep.mubr.msk.bf16.mxu1 %vm3027_vm0, %v3026_v3 }
 0x482   :  { %2763 = vmatpush3.bf16.xpose.msra.mxu1 %v878_v51 }
 0x483   :  { %2773 = vmatprep.subr.mxu1 %v3026_v3 }
 0x489   :  { %2765 = vmatmul.mubr.msk.bf16.vlgmr.msra.gmra.mrb[24].mxu1 %vm268_vm2, %v871_v52 }
 0x48a   :  { %2775 = vmatprep.mubr.msk.f32.mxu1 %vm3027_vm0, %v3026_v3 }
 0x545   :  { %v739_v53 = vpop.f32.mrb[8].mxu0 }
 0x546   :  { %v2750_v54 = vpop.f32.mrb[9].mxu0 }
 0x549   :  { %v584_v55 = vpop.f32.mrb[16].mxu1 }
 0x54a   :  { %v3248_v56 = vadd.f32 %v739_v53, %v584_v55  ;;  %v2740_v57 = vpop.f32.mrb[17].mxu1 }
 0x54d   :  { %v864_v58 = vpop.f32.mrb[12].mxu0  ;;  %v662_v59 = vpop.f32.mrb[18].mxu1 }
 0x54e   :  { %v2760_v60 = vpop.f32.mrb[13].mxu0  ;;  %v920_v61 = vsel %vm364_vm3, %v864_v58, -inf  ;;  %v2745_v62 = vpop.f32.mrb[19].mxu1 }
 0x54f   :  { %921 = vmax.xlane.f32.xlu0 %v920_v61  ;;  %v867_v63 = vpop.f32.mrb[14].mxu0 }
 0x550   :  { %v2761_v0 = vpop.f32.mrb[15].mxu0 }
 0x551   :  { %v816_v1 = vpop.f32.mrb[20].mxu1 }
 0x552   :  { %v3251_v2 = vadd.f32 %v816_v1, %v662_v59  ;;  %v2755_v4 = vpop.f32.mrb[21].mxu1 }
 0x55c   :  { %v914_v5 = vpop.f32.mrb[24].mxu1 }
 0x55d   :  { %v2766_v6 = vpop.f32.mrb[25].mxu1  ;;  %v923_v7 = vsel %vm364_vm3, %v914_v5, -inf }
 0x55e   :  { %924 = vmax.xlane.f32.xlu1 %v923_v7  ;;  %v917_v8 = vpop.f32.mrb[26].mxu1 }
 0x55f   :  { %v2767_v9 = vpop.f32.mrb[27].mxu1 }
 0x56f   :  { %942 = vrot.lane.b32.xlu1 %v3160_v33, %s3035_s14 }
 0x573   :  { %1100 = vrot.lane.b32.xlu1 %v3166_v37, %s3036_s15 }
 0x577   :  { %1150 = vrot.lane.b32.xlu1 %v3172_v39, %s3036_s15 }
 0x57b   :  { %1148 = vrot.lane.b32.xlu1 %v3172_v39, %s3037_s16 }
 0x5dc   :  { %v922_v10 = vpop.xlane.xlu0 %921 }
 0x5dd   :  { %v926_v11 = vsub.f32 %v864_v58, %v922_v10 }
 0x5df   :  { %v928_v12 = vmul.f32 1.442695, %v926_v11 }
 0x5e1   :  { %2952 = vpow2.f32 %v928_v12 }
 0x5eb   :  { %v2953_v13 = vpop.eup %2952  ;;  %v925_v14 = vpop.xlane.xlu1 %924 }
 0x5ec   :  { %v927_v15 = vsub.f32 %v914_v5, %v925_v14  ;;  %v932_v16 = vsel %vm364_vm3, %v2953_v13, 0.0 }
 0x5ed   :  { %933 = vadd.xlane.f32.xlu0 %v932_v16 }
 0x5ee   :  { %v930_v17 = vmul.f32 1.442695, %v927_v15 }
 0x5ef   :  { %v943_v18 = vpop.permute.xlu1 %942 }
 0x5f0   :  { %2954 = vpow2.f32 %v930_v17  ;;  %2769 = vmatpush3.msk.msra.mxu0 %vm515_vm4, %v943_v18 }
 0x5f1   :  { %2778 = vmatprep.subr.bf16.mxu0 %v3026_v3 }
 0x5f3   :  { %v1101_v23 = vpop.permute.xlu1 %1100 }
 0x5f4   :  { %v1106_v25 = vsel %vm268_vm2, %v1101_v23, 0 }
 0x5f7   :  { %v1151_v30 = vpop.permute.xlu1 %1150 }
 0x5f8   :  { %v1156_v32 = vsel %vm268_vm2, %v1151_v30, 0 }
 0x5fa   :  { %v2955_v19 = vpop.eup %2954 }
 0x5fb   :  { %v935_v20 = vsel %vm364_vm3, %v2955_v19, 0.0  ;;  %v1149_v34 = vpop.permute.xlu1 %1148 }
 0x5fc   :  { %936 = vadd.xlane.f32.xlu0 %v935_v20 }
 0x612   :  { %1019 = vrot.lane.b32.xlu0 %v3162_v36, %s3035_s14 }
 0x616   :  { %1098 = vrot.lane.b32.xlu0 %v3166_v37, %s3037_s16 }
 0x67a   :  { %v934_v21 = vpop.xlane.xlu0 %933 }
 0x67b   :  { %2956 = vrcp.f32 %v934_v21 }
 0x685   :  { %v2957_v22 = vpop.eup %2956 }
 0x686   :  { %v939_v24 = vmul.f32 %v2957_v22, %v2953_v13 }
 0x688   :  { %2771 = vmatmul.mubr.msk.f32.vlgmr.msra.gmra.mrb[10].mxu0 %vm268_vm2, %v939_v24 }
 0x689   :  { %2779 = vmatpush3.bf16.xpose.msra.mxu0 %v1106_v25  ;;  %v937_v26 = vpop.xlane.xlu0 %936  ;;  %2780 = vmatprep.mubr.msk.bf16.mxu0 %vm3027_vm0, %v3026_v3 }
 0x68a   :  { %2958 = vrcp.f32 %v937_v26  ;;  %2790 = vmatprep.subr.mxu0 %v3026_v3 }
 0x68d   :  { %v1020_v27 = vpop.permute.xlu0 %1019 }
 0x68e   :  { %2774 = vmatpush3.msk.msra.mxu1 %vm515_vm4, %v1020_v27 }
 0x68f   :  { %2784 = vmatprep.subr.bf16.mxu1 %v3026_v3 }
 0x691   :  { %v1099_v28 = vpop.permute.xlu0 %1098 }
 0x692   :  { %2781 = vmatmul.mubr.msk.bf16.vlgmr.msra.gmra.mrb[16].mxu0 %vm268_vm2, %v1099_v28 }
 0x693   :  { %2792 = vmatprep.mubr.msk.f32.mxu0 %vm3027_vm0, %v3026_v3 }
 0x694   :  { %v2959_v29 = vpop.eup %2958 }
 0x695   :  { %v941_v31 = vmul.f32 %v2959_v29, %v2955_v19 }
 0x697   :  { %2776 = vmatmul.mubr.msk.f32.vlgmr.msra.gmra.mrb[22].mxu1 %vm268_vm2, %v941_v31 }
 0x698   :  { %2785 = vmatpush3.bf16.xpose.msra.mxu1 %v1156_v32  ;;  %2786 = vmatprep.mubr.msk.bf16.mxu1 %vm3027_vm0, %v3026_v3 }
 0x699   :  { %2795 = vmatprep.subr.mxu1 %v3026_v3 }
 0x69f   :  { %2787 = vmatmul.mubr.msk.bf16.vlgmr.msra.gmra.mrb[28].mxu1 %vm268_vm2, %v1149_v34 }
 0x6a0   :  { %2797 = vmatprep.mubr.msk.f32.mxu1 %vm3027_vm0, %v3026_v3 }
 0x75b   :  { %v1015_v35 = vpop.f32.mrb[10].mxu0 }
 0x75c   :  { %v3283_v38 = vadd.f32 %v1015_v35, %v3248_v56  ;;  %v2772_v40 = vpop.f32.mrb[11].mxu0 }
 0x765   :  { %v1142_v41 = vpop.f32.mrb[16].mxu0 }
 0x766   :  { %v2782_v42 = vpop.f32.mrb[17].mxu0  ;;  %v1198_v43 = vsel %vm364_vm3, %v1142_v41, -inf }
 0x767   :  { %1199 = vmax.xlane.f32.xlu0 %v1198_v43  ;;  %v1145_v44 = vpop.f32.mrb[18].mxu0 }
 0x768   :  { %v2783_v45 = vpop.f32.mrb[19].mxu0 }
 0x76a   :  { %v1092_v46 = vpop.f32.mrb[22].mxu1 }
 0x76b   :  { %v3287_v47 = vadd.f32 %v1092_v46, %v3251_v2  ;;  %v2777_v48 = vpop.f32.mrb[23].mxu1 }
 0x772   :  { %v1192_v49 = vpop.f32.mrb[28].mxu1 }
 0x773   :  { %v2788_v50 = vpop.f32.mrb[29].mxu1  ;;  %v1201_v51 = vsel %vm364_vm3, %v1192_v49, -inf }
 0x774   :  { %1202 = vmax.xlane.f32.xlu1 %v1201_v51  ;;  %v1195_v52 = vpop.f32.mrb[30].mxu1 }
 0x775   :  { %v2789_v53 = vpop.f32.mrb[31].mxu1 }
 0x785   :  { %1220 = vrot.lane.b32.xlu1 %v3160_v33, %s3038_s17 }
 0x789   :  { %1378 = vrot.lane.b32.xlu1 %v3166_v37, %s3039_s18 }
 0x78d   :  { %1428 = vrot.lane.b32.xlu1 %v3172_v39, %s3039_s18 }
 0x791   :  { %1426 = vrot.lane.b32.xlu1 %v3172_v39, %s3040_s19 }
 0x7f4   :  { %v1200_v54 = vpop.xlane.xlu0 %1199 }
 0x7f5   :  { %v1204_v55 = vsub.f32 %v1142_v41, %v1200_v54 }
 0x7f7   :  { %v1206_v56 = vmul.f32 1.442695, %v1204_v55 }
 0x7f9   :  { %2960 = vpow2.f32 %v1206_v56 }
 0x801   :  { %v1203_v57 = vpop.xlane.xlu1 %1202 }
 0x802   :  { %v1205_v58 = vsub.f32 %v1192_v49, %v1203_v57 }
 0x803   :  { %v2961_v59 = vpop.eup %2960 }
 0x804   :  { %v1208_v60 = vmul.f32 1.442695, %v1205_v58  ;;  %v1210_v61 = vsel %vm364_vm3, %v2961_v59, 0.0 }
 0x805   :  { %v1221_v62 = vpop.permute.xlu1 %1220  ;;  %1211 = vadd.xlane.f32.xlu0 %v1210_v61 }
 0x806   :  { %2962 = vpow2.f32 %v1208_v60  ;;  %2791 = vmatpush3.msk.msra.mxu0 %vm515_vm4, %v1221_v62 }
 0x807   :  { %2800 = vmatprep.subr.bf16.mxu0 %v3026_v3 }
 0x809   :  { %v1379_v4 = vpop.permute.xlu1 %1378 }
 0x80a   :  { %v1384_v7 = vsel %vm268_vm2, %v1379_v4, 0 }
 0x80d   :  { %v1429_v11 = vpop.permute.xlu1 %1428 }
 0x80e   :  { %v1434_v13 = vsel %vm268_vm2, %v1429_v11, 0 }
 0x810   :  { %v2963_v63 = vpop.eup %2962 }
 0x811   :  { %v1213_v0 = vsel %vm364_vm3, %v2963_v63, 0.0  ;;  %v1427_v14 = vpop.permute.xlu1 %1426 }
 0x812   :  { %1214 = vadd.xlane.f32.xlu0 %v1213_v0 }
 0x828   :  { %1297 = vrot.lane.b32.xlu0 %v3162_v36, %s3038_s17 }
 0x82c   :  { %1376 = vrot.lane.b32.xlu0 %v3166_v37, %s3040_s19 }
 0x892   :  { %v1212_v1 = vpop.xlane.xlu0 %1211 }
 0x893   :  { %2964 = vrcp.f32 %v1212_v1 }
 0x89d   :  { %v2965_v2 = vpop.eup %2964 }
 0x89e   :  { %v1217_v5 = vmul.f32 %v2965_v2, %v2961_v59 }
 0x89f   :  { %v1215_v6 = vpop.xlane.xlu0 %1214 }
 0x8a0   :  { %2966 = vrcp.f32 %v1215_v6  ;;  %2793 = vmatmul.mubr.msk.f32.vlgmr.msra.gmra.mrb[20].mxu0 %vm268_vm2, %v1217_v5 }
 0x8a1   :  { %2801 = vmatpush3.bf16.xpose.msra.mxu0 %v1384_v7  ;;  %2802 = vmatprep.mubr.msk.bf16.mxu0 %vm3027_vm0, %v3026_v3 }
 0x8a2   :  { %2812 = vmatprep.subr.mxu0 %v3026_v3 }
 0x8a3   :  { %v1298_v8 = vpop.permute.xlu0 %1297 }
 0x8a4   :  { %2796 = vmatpush3.msk.msra.mxu1 %vm515_vm4, %v1298_v8 }
 0x8a5   :  { %2806 = vmatprep.subr.bf16.mxu1 %v3026_v3 }
 0x8a7   :  { %v1377_v9 = vpop.permute.xlu0 %1376 }
 0x8a8   :  { %2803 = vmatmul.mubr.msk.bf16.vlgmr.msra.gmra.mrb[24].mxu0 %vm268_vm2, %v1377_v9 }
 0x8a9   :  { %2814 = vmatprep.mubr.msk.f32.mxu0 %vm3027_vm0, %v3026_v3 }
 0x8aa   :  { %v2967_v10 = vpop.eup %2966 }
 0x8ab   :  { %v1219_v12 = vmul.f32 %v2967_v10, %v2963_v63 }
 0x8ad   :  { %2798 = vmatmul.mubr.msk.f32.vlgmr.msra.gmra.mrb[32].mxu1 %vm268_vm2, %v1219_v12 }
 0x8ae   :  { %2807 = vmatpush3.bf16.xpose.msra.mxu1 %v1434_v13  ;;  %2808 = vmatprep.mubr.msk.bf16.mxu1 %vm3027_vm0, %v3026_v3 }
 0x8af   :  { %2817 = vmatprep.subr.mxu1 %v3026_v3 }
 0x8b5   :  { %2809 = vmatmul.mubr.msk.bf16.vlgmr.msra.gmra.mrb[36].mxu1 %vm268_vm2, %v1427_v14 }
 0x8b6   :  { %2819 = vmatprep.mubr.msk.f32.mxu1 %vm3027_vm0, %v3026_v3 }
 0x973   :  { %v1293_v15 = vpop.f32.mrb[20].mxu0 }
 0x974   :  { %v3319_v16 = vadd.f32 %v1293_v15, %v3283_v38  ;;  %v2794_v17 = vpop.f32.mrb[21].mxu0 }
 0x97b   :  { %v1420_v18 = vpop.f32.mrb[24].mxu0 }
 0x97c   :  { %v2804_v19 = vpop.f32.mrb[25].mxu0  ;;  %v1476_v20 = vsel %vm364_vm3, %v1420_v18, -inf }
 0x97d   :  { %1477 = vmax.xlane.f32.xlu0 %v1476_v20  ;;  %v1423_v21 = vpop.f32.mrb[26].mxu0 }
 0x97e   :  { %v2805_v22 = vpop.f32.mrb[27].mxu0 }
 0x980   :  { %v1370_v23 = vpop.f32.mrb[32].mxu1 }
 0x981   :  { %v3323_v24 = vadd.f32 %v1370_v23, %v3287_v47  ;;  %v2799_v25 = vpop.f32.mrb[33].mxu1 }
 0x988   :  { %v1470_v26 = vpop.f32.mrb[36].mxu1 }
 0x989   :  { %v2810_v27 = vpop.f32.mrb[37].mxu1  ;;  %v1479_v28 = vsel %vm364_vm3, %v1470_v26, -inf }
 0x98a   :  { %1480 = vmax.xlane.f32.xlu1 %v1479_v28  ;;  %v1473_v29 = vpop.f32.mrb[38].mxu1 }
 0x98b   :  { %v2811_v30 = vpop.f32.mrb[39].mxu1 }
 0x99b   :  { %1498 = vrot.lane.b32.xlu1 %v3160_v33, %s3041_s20 }
 0x99f   :  { %1656 = vrot.lane.b32.xlu1 %v3166_v37, %s3042_s21 }
 0x9a3   :  { %1706 = vrot.lane.b32.xlu1 %v3172_v39, %s3042_s21 }
 0x9a7   :  { %1704 = vrot.lane.b32.xlu1 %v3172_v39, %s3043_s22 }
 0xa0a   :  { %v1478_v31 = vpop.xlane.xlu0 %1477 }
 0xa0b   :  { %v1482_v32 = vsub.f32 %v1420_v18, %v1478_v31 }
 0xa0d   :  { %v1484_v34 = vmul.f32 1.442695, %v1482_v32 }
 0xa0f   :  { %2968 = vpow2.f32 %v1484_v34 }
 0xa17   :  { %v1481_v35 = vpop.xlane.xlu1 %1480 }
 0xa18   :  { %v1483_v38 = vsub.f32 %v1470_v26, %v1481_v35 }
 0xa19   :  { %v2969_v40 = vpop.eup %2968 }
 0xa1a   :  { %v1486_v41 = vmul.f32 1.442695, %v1483_v38  ;;  %v1488_v42 = vsel %vm364_vm3, %v2969_v40, 0.0 }
 0xa1b   :  { %v1499_v43 = vpop.permute.xlu1 %1498  ;;  %1489 = vadd.xlane.f32.xlu0 %v1488_v42 }
 0xa1c   :  { %2970 = vpow2.f32 %v1486_v41  ;;  %2813 = vmatpush3.msk.msra.mxu0 %vm515_vm4, %v1499_v43 }
 0xa1d   :  { %2822 = vmatprep.subr.bf16.mxu0 %v3026_v3 }
 0xa1f   :  { %v1657_v48 = vpop.permute.xlu1 %1656 }
 0xa20   :  { %v1662_v51 = vsel %vm268_vm2, %v1657_v48, 0 }
 0xa23   :  { %v1707_v55 = vpop.permute.xlu1 %1706 }
 0xa24   :  { %v1712_v57 = vsel %vm268_vm2, %v1707_v55, 0 }
 0xa26   :  { %v2971_v44 = vpop.eup %2970 }
 0xa27   :  { %v1491_v45 = vsel %vm364_vm3, %v2971_v44, 0.0  ;;  %v1705_v58 = vpop.permute.xlu1 %1704 }
 0xa28   :  { %1492 = vadd.xlane.f32.xlu0 %v1491_v45 }
 0xa3e   :  { %1575 = vrot.lane.b32.xlu0 %v3162_v36, %s3041_s20 }
 0xa42   :  { %1654 = vrot.lane.b32.xlu0 %v3166_v37, %s3043_s22 }
 0xaa8   :  { %v1490_v46 = vpop.xlane.xlu0 %1489 }
 0xaa9   :  { %2972 = vrcp.f32 %v1490_v46 }
 0xab3   :  { %v2973_v47 = vpop.eup %2972 }
 0xab4   :  { %v1495_v49 = vmul.f32 %v2973_v47, %v2969_v40 }
 0xab5   :  { %v1493_v50 = vpop.xlane.xlu0 %1492 }
 0xab6   :  { %2974 = vrcp.f32 %v1493_v50  ;;  %2815 = vmatmul.mubr.msk.f32.vlgmr.msra.gmra.mrb[22].mxu0 %vm268_vm2, %v1495_v49 }
 0xab7   :  { %2823 = vmatpush3.bf16.xpose.msra.mxu0 %v1662_v51  ;;  %2824 = vmatprep.mubr.msk.bf16.mxu0 %vm3027_vm0, %v3026_v3 }
 0xab8   :  { %2834 = vmatprep.subr.mxu0 %v3026_v3 }
 0xab9   :  { %v1576_v52 = vpop.permute.xlu0 %1575 }
 0xaba   :  { %2818 = vmatpush3.msk.msra.mxu1 %vm515_vm4, %v1576_v52 }
 0xabb   :  { %2828 = vmatprep.subr.bf16.mxu1 %v3026_v3 }
 0xabd   :  { %v1655_v53 = vpop.permute.xlu0 %1654 }
 0xabe   :  { %2825 = vmatmul.mubr.msk.bf16.vlgmr.msra.gmra.mrb[28].mxu0 %vm268_vm2, %v1655_v53 }
 0xabf   :  { %2836 = vmatprep.mubr.msk.f32.mxu0 %vm3027_vm0, %v3026_v3 }
 0xac0   :  { %v2975_v54 = vpop.eup %2974 }
 0xac1   :  { %v1497_v56 = vmul.f32 %v2975_v54, %v2971_v44 }
 0xac3   :  { %2820 = vmatmul.mubr.msk.f32.vlgmr.msra.gmra.mrb[34].mxu1 %vm268_vm2, %v1497_v56 }
 0xac4   :  { %2829 = vmatpush3.bf16.xpose.msra.mxu1 %v1712_v57  ;;  %2830 = vmatprep.mubr.msk.bf16.mxu1 %vm3027_vm0, %v3026_v3 }
 0xac5   :  { %2839 = vmatprep.subr.mxu1 %v3026_v3 }
 0xacb   :  { %2831 = vmatmul.mubr.msk.bf16.vlgmr.msra.gmra.mrb[40].mxu1 %vm268_vm2, %v1705_v58 }
 0xacc   :  { %2841 = vmatprep.mubr.msk.f32.mxu1 %vm3027_vm0, %v3026_v3 }
 0xb89   :  { %v1571_v59 = vpop.f32.mrb[22].mxu0 }
 0xb8a   :  { %v3355_v60 = vadd.f32 %v1571_v59, %v3319_v16  ;;  %v2816_v61 = vpop.f32.mrb[23].mxu0 }
 0xb91   :  { %v1698_v62 = vpop.f32.mrb[28].mxu0 }
 0xb92   :  { %v2826_v63 = vpop.f32.mrb[29].mxu0  ;;  %v1754_v0 = vsel %vm364_vm3, %v1698_v62, -inf }
 0xb93   :  { %1755 = vmax.xlane.f32.xlu0 %v1754_v0  ;;  %v1701_v1 = vpop.f32.mrb[30].mxu0 }
 0xb94   :  { %v2827_v2 = vpop.f32.mrb[31].mxu0 }
 0xb96   :  { %v1648_v4 = vpop.f32.mrb[34].mxu1 }
 0xb97   :  { %v3359_v5 = vadd.f32 %v1648_v4, %v3323_v24  ;;  %v2821_v6 = vpop.f32.mrb[35].mxu1 }
 0xb9e   :  { %v1748_v7 = vpop.f32.mrb[40].mxu1 }
 0xb9f   :  { %v2832_v8 = vpop.f32.mrb[41].mxu1  ;;  %v1757_v9 = vsel %vm364_vm3, %v1748_v7, -inf }
 0xba0   :  { %1758 = vmax.xlane.f32.xlu1 %v1757_v9  ;;  %v1751_v10 = vpop.f32.mrb[42].mxu1 }
 0xba1   :  { %v2833_v11 = vpop.f32.mrb[43].mxu1 }
 0xbb1   :  { %1776 = vrot.lane.b32.xlu1 %v3160_v33, %s3044_s23 }
 0xbb5   :  { %1934 = vrot.lane.b32.xlu1 %v3166_v37, %s3045_s24 }
 0xbb9   :  { %1984 = vrot.lane.b32.xlu1 %v3172_v39, %s3045_s24 }
 0xbbd   :  { %1982 = vrot.lane.b32.xlu1 %v3172_v39, %s3046_s25 }
 0xc20   :  { %v1756_v12 = vpop.xlane.xlu0 %1755 }
 0xc21   :  { %v1760_v13 = vsub.f32 %v1698_v62, %v1756_v12 }
 0xc23   :  { %v1762_v14 = vmul.f32 1.442695, %v1760_v13 }
 0xc25   :  { %2976 = vpow2.f32 %v1762_v14 }
 0xc2d   :  { %v1759_v15 = vpop.xlane.xlu1 %1758 }
 0xc2e   :  { %v1761_v16 = vsub.f32 %v1748_v7, %v1759_v15 }
 0xc2f   :  { %v2977_v17 = vpop.eup %2976 }
 0xc30   :  { %v1764_v18 = vmul.f32 1.442695, %v1761_v16  ;;  %v1766_v19 = vsel %vm364_vm3, %v2977_v17, 0.0 }
 0xc31   :  { %v1777_v20 = vpop.permute.xlu1 %1776  ;;  %1767 = vadd.xlane.f32.xlu0 %v1766_v19 }
 0xc32   :  { %2978 = vpow2.f32 %v1764_v18  ;;  %2835 = vmatpush3.msk.msra.mxu0 %vm515_vm4, %v1777_v20 }
 0xc33   :  { %2844 = vmatprep.subr.bf16.mxu0 %v3026_v3 }
 0xc35   :  { %v1935_v25 = vpop.permute.xlu1 %1934 }
 0xc36   :  { %v1940_v28 = vsel %vm268_vm2, %v1935_v25, 0 }
 0xc39   :  { %v1985_v32 = vpop.permute.xlu1 %1984 }
 0xc3a   :  { %v1990_v35 = vsel %vm268_vm2, %v1985_v32, 0 }
 0xc3c   :  { %v2979_v21 = vpop.eup %2978 }
 0xc3d   :  { %v1769_v22 = vsel %vm364_vm3, %v2979_v21, 0.0  ;;  %v1983_v38 = vpop.permute.xlu1 %1982 }
 0xc3e   :  { %1770 = vadd.xlane.f32.xlu0 %v1769_v22 }
 0xc54   :  { %1853 = vrot.lane.b32.xlu0 %v3162_v36, %s3044_s23 }
 0xc58   :  { %1932 = vrot.lane.b32.xlu0 %v3166_v37, %s3046_s25 }
 0xcbe   :  { %v1768_v23 = vpop.xlane.xlu0 %1767 }
 0xcbf   :  { %2980 = vrcp.f32 %v1768_v23 }
 0xcc9   :  { %v2981_v24 = vpop.eup %2980 }
 0xcca   :  { %v1773_v26 = vmul.f32 %v2981_v24, %v2977_v17 }
 0xccb   :  { %v1771_v27 = vpop.xlane.xlu0 %1770 }
 0xccc   :  { %2982 = vrcp.f32 %v1771_v27  ;;  %2837 = vmatmul.mubr.msk.f32.vlgmr.msra.gmra.mrb[32].mxu0 %vm268_vm2, %v1773_v26 }
 0xccd   :  { %2845 = vmatpush3.bf16.xpose.msra.mxu0 %v1940_v28  ;;  %2846 = vmatprep.mubr.msk.bf16.mxu0 %vm3027_vm0, %v3026_v3 }
 0xcce   :  { %2856 = vmatprep.subr.mxu0 %v3026_v3 }
 0xccf   :  { %v1854_v29 = vpop.permute.xlu0 %1853 }
 0xcd0   :  { %2840 = vmatpush3.msk.msra.mxu1 %vm515_vm4, %v1854_v29 }
 0xcd1   :  { %2850 = vmatprep.subr.bf16.mxu1 %v3026_v3 }
 0xcd3   :  { %v1933_v30 = vpop.permute.xlu0 %1932 }
 0xcd4   :  { %2847 = vmatmul.mubr.msk.bf16.vlgmr.msra.gmra.mrb[36].mxu0 %vm268_vm2, %v1933_v30 }
 0xcd5   :  { %2858 = vmatprep.mubr.msk.f32.mxu0 %vm3027_vm0, %v3026_v3 }
 0xcd6   :  { %v2983_v31 = vpop.eup %2982 }
 0xcd7   :  { %v1775_v34 = vmul.f32 %v2983_v31, %v2979_v21 }
 0xcd9   :  { %2842 = vmatmul.mubr.msk.f32.vlgmr.msra.gmra.mrb[44].mxu1 %vm268_vm2, %v1775_v34 }
 0xcda   :  { %2851 = vmatpush3.bf16.xpose.msra.mxu1 %v1990_v35  ;;  %2852 = vmatprep.mubr.msk.bf16.mxu1 %vm3027_vm0, %v3026_v3 }
 0xcdb   :  { %2861 = vmatprep.subr.mxu1 %v3026_v3 }
 0xce1   :  { %2853 = vmatmul.mubr.msk.bf16.vlgmr.msra.gmra.mrb[48].mxu1 %vm268_vm2, %v1983_v38 }
 0xce2   :  { %2863 = vmatprep.mubr.msk.f32.mxu1 %vm3027_vm0, %v3026_v3 }
 0xd9f   :  { %v1849_v40 = vpop.f32.mrb[32].mxu0 }
 0xda0   :  { %v3391_v41 = vadd.f32 %v1849_v40, %v3355_v60  ;;  %v2838_v42 = vpop.f32.mrb[33].mxu0 }
 0xda7   :  { %v1976_v43 = vpop.f32.mrb[36].mxu0 }
 0xda8   :  { %v2848_v44 = vpop.f32.mrb[37].mxu0  ;;  %v2032_v45 = vsel %vm364_vm3, %v1976_v43, -inf }
 0xda9   :  { %2033 = vmax.xlane.f32.xlu0 %v2032_v45  ;;  %v1979_v46 = vpop.f32.mrb[38].mxu0 }
 0xdaa   :  { %v2849_v47 = vpop.f32.mrb[39].mxu0 }
 0xdac   :  { %v1926_v48 = vpop.f32.mrb[44].mxu1 }
 0xdad   :  { %v3395_v49 = vadd.f32 %v1926_v48, %v3359_v5  ;;  %v2843_v50 = vpop.f32.mrb[45].mxu1 }
 0xdb4   :  { %v2026_v51 = vpop.f32.mrb[48].mxu1 }
 0xdb5   :  { %v2854_v52 = vpop.f32.mrb[49].mxu1  ;;  %v2035_v53 = vsel %vm364_vm3, %v2026_v51, -inf }
 0xdb6   :  { %2036 = vmax.xlane.f32.xlu1 %v2035_v53  ;;  %v2029_v54 = vpop.f32.mrb[50].mxu1 }
 0xdb7   :  { %v2855_v55 = vpop.f32.mrb[51].mxu1 }
 0xdc7   :  { %2054 = vrot.lane.b32.xlu1 %v3160_v33, %s3047_s26 }
 0xdcb   :  { %2212 = vrot.lane.b32.xlu1 %v3166_v37, %s3048_s4 }
 0xdcf   :  { %2262 = vrot.lane.b32.xlu1 %v3172_v39, %s3048_s4 }
 0xdd3   :  { %2260 = vrot.lane.b32.xlu1 %v3172_v39, %s3049_s27 }
 0xe36   :  { %v2034_v56 = vpop.xlane.xlu0 %2033 }
 0xe37   :  { %v2038_v57 = vsub.f32 %v1976_v43, %v2034_v56 }
 0xe39   :  { %v2040_v58 = vmul.f32 1.442695, %v2038_v57 }
 0xe3b   :  { %2984 = vpow2.f32 %v2040_v58 }
 0xe43   :  { %v2037_v59 = vpop.xlane.xlu1 %2036 }
 0xe44   :  { %v2039_v60 = vsub.f32 %v2026_v51, %v2037_v59  ;;  %v3051_v51 = vmov 0  }
 0xe45   :  { %v2985_v61 = vpop.eup %2984  ;;  %2916 = vset.pattern.permute.xlu1 %v3051_v51  ;;  %2917 = vset.pattern.permute.xlu0 %v3051_v51 }
 0xe46   :  { %v2042_v62 = vmul.f32 1.442695, %v2039_v60  ;;  %v2044_v63 = vsel %vm364_vm3, %v2985_v61, 0.0 }
 0xe47   :  { %v2055_v0 = vpop.permute.xlu1 %2054  ;;  %2045 = vadd.xlane.f32.xlu0 %v2044_v63  ;;  %v2507_v63 = vlaneseq }
 0xe48   :  { %2986 = vpow2.f32 %v2042_v62  ;;  %2857 = vmatpush3.msk.msra.mxu0 %vm515_vm4, %v2055_v0 }
 0xe49   :  { %2866 = vmatprep.subr.bf16.mxu0 %v3026_v3 }
 0xe4b   :  { %v2213_v5 = vpop.permute.xlu1 %2212 }
 0xe4c   :  { %v2218_v8 = vsel %vm268_vm2, %v2213_v5, 0 }
 0xe4f   :  { %v2263_v11 = vpop.permute.xlu1 %2262 }
 0xe50   :  { %v2268_v13 = vsel %vm268_vm2, %v2263_v11, 0 }
 0xe52   :  { %v2987_v1 = vpop.eup %2986 }
 0xe53   :  { %v2047_v39 = vsel %vm364_vm3, %v2987_v1, 0.0  ;;  %v2261_v14 = vpop.permute.xlu1 %2260 }
 0xe54   :  { %2048 = vadd.xlane.f32.xlu0 %v2047_v39 }
 0xe6a   :  { %2131 = vrot.lane.b32.xlu0 %v3162_v36, %s3047_s26 }
 0xe6e   :  { %2210 = vrot.lane.b32.xlu0 %v3166_v37, %s3049_s27 }
 0xed4   :  { %v2046_v2 = vpop.xlane.xlu0 %2045 }
 0xed5   :  { %2988 = vrcp.f32 %v2046_v2 }
 0xedf   :  { %v2989_v4 = vpop.eup %2988 }
 0xee0   :  { %v2051_v6 = vmul.f32 %v2989_v4, %v2985_v61  ;;  %v3052_v61 = vmov 839922192  }
 0xee1   :  { %v2049_v7 = vpop.xlane.xlu0 %2048  ;;  %v2505_v62 = vunpack.c.l.s4 %v3052_v61 }
 0xee2   :  { %2990 = vrcp.f32 %v2049_v7  ;;  %2859 = vmatmul.mubr.msk.f32.vlgmr.msra.gmra.mrb[34].mxu0 %vm268_vm2, %v2051_v6 }
 0xee3   :  { %2867 = vmatpush3.bf16.xpose.msra.mxu0 %v2218_v8  ;;  %2868 = vmatprep.mubr.msk.bf16.mxu0 %vm3027_vm0, %v3026_v3  ;;  %v2506_v0 = vunpack.c.0.s8 %v2505_v62 }
 0xee4   :  { %2878 = vmatprep.subr.mxu0 %v3026_v3 }
 0xee5   :  { %v2132_v9 = vpop.permute.xlu0 %2131 }
 0xee6   :  { %2862 = vmatpush3.msk.msra.mxu1 %vm515_vm4, %v2132_v9  ;;  %v3000_v9 = vld [vmem:[%s3456_s0] sm:$0xff] }
 0xee7   :  { %2872 = vmatprep.subr.bf16.mxu1 %v3026_v3 }
 0xee9   :  { %v2211_v37 = vpop.permute.xlu0 %2210 }
 0xeea   :  { %2869 = vmatmul.mubr.msk.bf16.vlgmr.msra.gmra.mrb[40].mxu0 %vm268_vm2, %v2211_v37 }
 0xeeb   :  { %2880 = vmatprep.mubr.msk.f32.mxu0 %vm3027_vm0, %v3026_v3 }
 0xeec   :  { %v2991_v10 = vpop.eup %2990 }
 0xeed   :  { %v2053_v12 = vmul.f32 %v2991_v10, %v2987_v1  ;;  %v2508_v1 = vshrl.u32 %v2507_v63, 7  ;;  %v3001_v10 = vld [vmem:[%s3456_s0 + $0x8] sm:$0xff] }
 0xeef   :  { %2864 = vmatmul.mubr.msk.f32.vlgmr.msra.gmra.mrb[46].mxu1 %vm268_vm2, %v2053_v12  ;;  %v2509_v2 = vsub.s32 %v2506_v0, %v2508_v1 }
 0xef0   :  { %2873 = vmatpush3.bf16.xpose.msra.mxu1 %v2268_v13  ;;  %2874 = vmatprep.mubr.msk.bf16.mxu1 %vm3027_vm0, %v3026_v3 }
 0xef1   :  { %2883 = vmatprep.subr.mxu1 %v3026_v3 }
 0xef7   :  { %2875 = vmatmul.mubr.msk.bf16.vlgmr.msra.gmra.mrb[52].mxu1 %vm268_vm2, %v2261_v14 }
 0xef8   :  { %2885 = vmatprep.mubr.msk.f32.mxu1 %vm3027_vm0, %v3026_v3 }
 0xfb5   :  { %v2127_v15 = vpop.f32.mrb[34].mxu0 }
 0xfb6   :  { %v2208_v16 = vadd.f32 %v2127_v15, %v3391_v41  ;;  %v2860_v17 = vpop.f32.mrb[35].mxu0 }
 0xfbd   :  { %v2254_v18 = vpop.f32.mrb[40].mxu0 }
 0xfbe   :  { %v2870_v19 = vpop.f32.mrb[41].mxu0  ;;  %v2310_v20 = vsel %vm364_vm3, %v2254_v18, -inf }
 0xfbf   :  { %2311 = vmax.xlane.f32.xlu0 %v2310_v20  ;;  %v2257_v21 = vpop.f32.mrb[42].mxu0 }
 0xfc0   :  { %v2871_v22 = vpop.f32.mrb[43].mxu0 }
 0xfc2   :  { %v2204_v23 = vpop.f32.mrb[46].mxu1 }
 0xfc3   :  { %v2209_v24 = vadd.f32 %v2204_v23, %v3395_v49  ;;  %v2865_v25 = vpop.f32.mrb[47].mxu1 }
 0xfca   :  { %v2304_v26 = vpop.f32.mrb[52].mxu1 }
 0xfcb   :  { %v2876_v27 = vpop.f32.mrb[53].mxu1  ;;  %v2313_v28 = vsel %vm364_vm3, %v2304_v26, -inf }
 0xfcc   :  { %2314 = vmax.xlane.f32.xlu1 %v2313_v28  ;;  %v2307_v3 = vpop.f32.mrb[54].mxu1 }
 0xfcd   :  { %v2877_v29 = vpop.f32.mrb[55].mxu1 }
 0xfdd   :  { %2332 = vrot.lane.b32.xlu1 %v3160_v33, %s3050_s28 }
0x104c   :  { %v2312_v30 = vpop.xlane.xlu0 %2311 }
0x104d   :  { %v2316_v31 = vsub.f32 %v2254_v18, %v2312_v30 }
0x104f   :  { %v2318_v32 = vmul.f32 1.442695, %v2316_v31 }
0x1051   :  { %2992 = vpow2.f32 %v2318_v32 }
0x1059   :  { %v2315_v34 = vpop.xlane.xlu1 %2314 }
0x105a   :  { %v2317_v35 = vsub.f32 %v2304_v26, %v2315_v34 }
0x105b   :  { %v2993_v38 = vpop.eup %2992 }
0x105c   :  { %v2320_v40 = vmul.f32 1.442695, %v2317_v35  ;;  %v2322_v41 = vsel %vm364_vm3, %v2993_v38, 0.0 }
0x105d   :  { %v2333_v42 = vpop.permute.xlu1 %2332  ;;  %2323 = vadd.xlane.f32.xlu0 %v2322_v41 }
0x105e   :  { %2994 = vpow2.f32 %v2320_v40  ;;  %2879 = vmatpush3.msk.msra.mxu0 %vm515_vm4, %v2333_v42 }
0x1068   :  { %v2995_v43 = vpop.eup %2994 }
0x1069   :  { %v2325_v44 = vsel %vm364_vm3, %v2995_v43, 0.0 }
0x106a   :  { %2326 = vadd.xlane.f32.xlu0 %v2325_v44 }
0x1080   :  { %2409 = vrot.lane.b32.xlu0 %v3162_v36, %s3050_s28  ;;  %v2614_v36 = vld [vmem:[#allocation2] ss:$0 sm:$0xff] }
0x1081   :  { %v2495_v56 = vcombine.high %v2614_v36, %v2614_v36 }
0x10ea   :  { %v2324_v33 = vpop.xlane.xlu0 %2323 }
0x10eb   :  { %2996 = vrcp.f32 %v2324_v33 }
0x10f5   :  { %v2997_v45 = vpop.eup %2996 }
0x10f6   :  { %v2329_v46 = vmul.f32 %v2997_v45, %v2993_v38 }
0x10f7   :  { %v2327_v47 = vpop.xlane.xlu0 %2326 }
0x10f8   :  { %2998 = vrcp.f32 %v2327_v47  ;;  %2881 = vmatmul.mubr.msk.f32.vlgmr.msra.gmra.mrb[44].mxu0 %vm268_vm2, %v2329_v46 }
0x10fb   :  { %v2410_v48 = vpop.permute.xlu0 %2409 }
0x10fc   :  { %2884 = vmatpush3.msk.msra.mxu1 %vm515_vm4, %v2410_v48 }
0x1102   :  { %v2999_v49 = vpop.eup %2998 }
0x1103   :  { %v2331_v50 = vmul.f32 %v2999_v49, %v2995_v43 }
0x1105   :  { %2886 = vmatmul.mubr.msk.f32.vlgmr.msra.gmra.mrb[56].mxu1 %vm268_vm2, %v2331_v50 }
0x11cb   :  { %v2405_v52 = vpop.f32.mrb[44].mxu0 }
0x11cc   :  { %v2486_v53 = vadd.f32 %v2405_v52, %v2208_v16  ;;  %v2882_v54 = vpop.f32.mrb[45].mxu0 }
0x11ce   :  { %v2497_v55 = vadd.f32 %v2614_v36, %v2486_v53 }
0x11d0   :  { %2501 = vperm.xlu1 %2916, %v2497_v55  }
0x11d8   :  { %v2482_v57 = vpop.f32.mrb[56].mxu1 }
0x11d9   :  { %v2487_v58 = vadd.f32 %v2482_v57, %v2209_v24  ;;  %v2887_v59 = vpop.f32.mrb[57].mxu1 }
0x11db   :  { %v2498_v60 = vadd.f32 %v2495_v56, %v2487_v58 }
0x11dd   :  { %2513 = vperm.xlu1 %2916, %v2498_v60  }
0x124f   :  { %v2502_v39 = vpop.permute.xlu1 %2501 }
0x1250   :  { %v2510_v5 = vrot.slane %v2502_v39, %v2509_v2 }
0x125c   :  { %v2514_v4 = vpop.permute.xlu1 %2513 }
0x125d   :  { %v2522_v6 = vrot.slane %v2514_v4, %v2509_v2 }
0x125f   :  { %v2525_v7 = vcombine.low %v2510_v5, %v2522_v6  ;;  %v2526_v8 = vcombine.high %v2510_v5, %v2522_v6 }
0x1261   :  { %v2529_v37 = vmul.f32 %v3000_v9, %v2525_v7  ;;  %v2530_v11 = vmul.f32 %v3001_v10, %v2526_v8 }
0x1263   :  { %2531 = vst [vmem:[#allocation3] sm:$0xff] %v2529_v37  ;;  %2532 = vst [vmem:[#allocation3 + $0x8] sm:$0xff] %v2530_v11 }
0x1264   :  { %3013 = shalt.err (!%p3010_p4)
}
0x1265   :  { %s3014_s10 = scalar_lea.hbm %s3461_s5, 256 }
0x1266   :  { %p3015_p5 = scmp.ne.s32.totalorder %s3461_s5, %s3014_s10  ;;  %p3018_p6 = scmp.lt.u32.totalorder %s3014_s10, %s3461_s5 }
0x1268   :  { %p3020_p7 = pnand %p3018_p6, %p3015_p5 }
0x126a   :  { %3023 = shalt.err (!%p3020_p7)
}
0x126b   :  { %2542 = dma.vmem_to_hbm [thread:$0]  %s2540_s30, 256, %s3461_s5, [#allocation4]  }
0x126c   :  { %3024 = dma.done.wait [#allocation4], 256  }
0x126d   :  { %3025 = vsyncadd [#allocation4], 4294967040 }
0x126e   :  { %2546 = vsyncpa [#allocation4], 1 }

// kernel: tpu_custom_call.1
= control target key start
LH: loop header
LB: loop body
LE: loop exit
PB: predicated region body
PF: predicated region fallthrough
CT: control target
= control target key end

     0   :  { %s3456_s0 = inlined_call_operand.vmem [shape: f32[8,256], index: 0, kind: input, shape index: {}]   ;;  %s3457_s1 = inlined_call_operand.vmem [shape: bf16[256,32], index: 1, kind: input, shape index: {}]   ;;  %s3458_s2 = inlined_call_operand.vmem [shape: bf16[32,72], index: 2, kind: input, shape index: {}]   ;;  %s3459_s3 = inlined_call_operand.vmem [shape: f32[4,72], index: 3, kind: input, shape index: {}]   ;;  %s3460_s4 = inlined_call_operand.<no memory space> [shape: f32[1,1], index: 4, kind: input, shape index: {}]   ;;  %s3461_s5 = inlined_call_operand.hbm [shape: f32[8,256], index: 5, kind: output, shape index: {}]  }
   0x1   :  { %v10_v0 = vstv %s3460_s4 }
   0x2   :  { %11 = vst [vmem:[#allocation2] sm:$0x1] %v10_v0 }
   0x3   :  { %v2918_v1 = vld [vmem:[%s3457_s1 + $0x40] sm:$0xff]   ;;  %v3026_v3 = vmov 0.0   ;;  %v2920_v4 = vld [vmem:[%s3457_s1 + $0x48] sm:$0xff]   ;;  %v2922_v6 = vld [vmem:[%s3457_s1 + $0x50] sm:$0xff]  }
   0x4   :  { %v2919_v2 = vld [vmem:[%s3457_s1] sm:$0xff]   ;;  %2704 = vmatprep.subr.bf16.mxu1 %v3026_v3  ;;  %2615 = vmatprep.subr.bf16.mxu0 %v2918_v1  ;;  %v2921_v5 = vld [vmem:[%s3457_s1 + $0x8] sm:$0xff]   ;;  %v2923_v7 = vld [vmem:[%s3457_s1 + $0x10] sm:$0xff]  }
   0x5   :  { %2616 = vmatpush3.bf16.msra.mxu0 %v2919_v2  ;;  %v2924_v8 = vld [vmem:[%s3457_s1 + $0x58] sm:$0xff]   ;;  %v2926_v10 = vld [vmem:[%s3457_s1 + $0x60] sm:$0xff]   ;;  %v2928_v12 = vld [vmem:[%s3457_s1 + $0x68] sm:$0xff]  }
   0x6   :  { %2617 = vmatprep.subr.bf16.mxu0 %v2920_v4  ;;  %v2925_v9 = vld [vmem:[%s3457_s1 + $0x18] sm:$0xff]   ;;  %v2927_v11 = vld [vmem:[%s3457_s1 + $0x20] sm:$0xff]   ;;  %v25_v13 = vld [vmem:[%s3456_s0 + $0x8] sm:$0xff] }
   0x7   :  { %v27_v14 = vpack.c.bf16 %v25_v13, %v25_v13  ;;  %v2934_v15 = vld [vmem:[%s3458_s2] sm:$0xff]  }
   0x9   :  { %2618 = vmatpush3.bf16.msra.mxu0 %v2921_v5 }
   0xa   :  { %2619 = vmatprep.subr.bf16.mxu0 %v2922_v6 }
   0xd   :  { %2620 = vmatpush3.bf16.msra.mxu0 %v2923_v7 }
   0xe   :  { %2621 = vmatprep.subr.bf16.mxu0 %v2924_v8 }
  0x11   :  { %2622 = vmatpush3.bf16.msra.mxu0 %v2925_v9 }
  0x12   :  { %2623 = vmatprep.subr.bf16.mxu0 %v2926_v10 }
  0x13   :  { %12 = vsyncpa [#allocation4], 0  ;;  %v2929_v16 = vld [vmem:[%s3457_s1 + $0x28] sm:$0xff]   ;;  %188 = vmatprep.mubr.bf16.mxu0 %v27_v14  ;;  %v2930_v17 = vld [vmem:[%s3457_s1 + $0x70] sm:$0xff]   ;;  %2705 = vmatpush3.bf16.msra.mxu1 %v2934_v15  ;;  %vm3027_vm0 = vmmov 0   ;;  %vm213_vm1 = vcmask 261120  }
  0x14   :  { %2706 = vmatprep.subr.bf16.mxu1 %v3026_v3  ;;  %v2931_v18 = vld [vmem:[%s3457_s1 + $0x30] sm:$0xff]   ;;  %v2932_v19 = vld [vmem:[%s3457_s1 + $0x78] sm:$0xff]   ;;  %v24_v21 = vld [vmem:[%s3456_s0] sm:$0xff]  ;;  %2708 = vmatprep.mubr.msk.bf16.mxu1 %vm3027_vm0, %v3026_v3  ;;  %s3028_s8 = smov 92   ;;  %s3029_s9 = smov 96   ;;  %vm268_vm2 = vcmask 31744  }
  0x15   :  { %2624 = vmatpush3.bf16.msra.mxu0 %v2927_v11  ;;  %v2933_v20 = vld [vmem:[%s3457_s1 + $0x38] sm:$0xff]   ;;  %v26_v22 = vpack.c.bf16 %v24_v21, %v24_v21  ;;  %v2935_v23 = vld [vmem:[%s3458_s2 + $0x8] sm:$0xff]   ;;  %v260_v30 = vld [vmem:[%s3459_s3] sm:$0xf]  ;;  %s3030_s3 = smov 124   ;;  %vm364_vm3 = vcmask 27648  }
  0x16   :  { %2625 = vmatprep.subr.bf16.mxu0 %v2928_v12  ;;  %s3031_s10 = smov 63   ;;  %s3032_s11 = smov 64   ;;  %vm515_vm4 = vcmask 1043456  }
  0x17   :  { %2707 = vmatpush3.bf16.msra.mxu1 %v2935_v23  ;;  %s3033_s12 = smov 88   ;;  %s3034_s13 = smov 120  }
  0x18   :  { %2712 = vmatprep.subr.bf16.mxu1 %v3026_v3  ;;  %s3035_s14 = smov 62   ;;  %s3036_s15 = smov 84  }
  0x19   :  { %2626 = vmatpush3.bf16.msra.mxu0 %v2929_v16  ;;  %s3037_s16 = smov 116   ;;  %s3038_s17 = smov 61  }
  0x1a   :  { %2627 = vmatprep.subr.bf16.mxu0 %v2930_v17  ;;  %s3039_s18 = smov 80   ;;  %s3040_s19 = smov 112  }
  0x1b   :  { %s3041_s20 = smov 60   ;;  %s3042_s21 = smov 76  }
  0x1c   :  { %s3043_s22 = smov 108   ;;  %s3044_s23 = smov 59  }
  0x1d   :  { %2628 = vmatpush3.bf16.msra.mxu0 %v2931_v18  ;;  %s3045_s24 = smov 72   ;;  %s3046_s25 = smov 104  }
  0x1e   :  { %2629 = vmatprep.subr.bf16.mxu0 %v2932_v19  ;;  %s3047_s26 = smov 58   ;;  %s3048_s4 = smov 68  }
  0x1f   :  { %s3049_s27 = smov 100   ;;  %s3050_s28 = smov 57  }
  0x20   :  { %s3053_s29 = smov [#allocation3]  }
  0x21   :  { %2630 = vmatpush3.bf16.msra.mxu0 %v2933_v20  ;;  %s2539_s30 = sshll.u32 %s3053_s29, 4  ;;  %s2540_s30 = int_to_ptr.vmem [resolvable:$true] %s2539_s30 }
  0x22   :  { %2730 = vmatprep.subr.bf16.mxu0 %v3026_v3  ;;  %p3007_p1 = scmp.lt.s32.totalorder %s2540_s30, %s2540_s30 }
  0x24   :  { %189 = vmatmul.mubr.bf16.vlgmr.msra.gmra.mrb[0].mxu0 %v26_v22 }
  0x25   :  { %2732 = vmatprep.mubr.msk.bf16.mxu0 %vm3027_vm0, %v3026_v3 }
  0xf7   :  { %v2631_v24 = vpop.f32.mrb[0].mxu0 }
  0xf8   :  { %v2632_v25 = vpop.f32.mrb[1].mxu0 }
  0xf9   :  { %v2633_v26 = vadd.f32 %v2632_v25, %v2631_v24  ;;  %v2634_v27 = vpop.f32.mrb[2].mxu0 }
  0xfa   :  { %v2635_v28 = vpop.f32.mrb[3].mxu0 }
  0xfb   :  { %v196_v29 = vpack.c.bf16 %v2633_v26, %v2633_v26 }
  0xfd   :  { %2709 = vmatmul.mubr.msk.bf16.vlgmr.msra.gmra.mrb[0].mxu1 %vm213_vm1, %v196_v29 }
  0xfe   :  { %2714 = vmatprep.mubr.msk.bf16.mxu1 %vm3027_vm0, %v3026_v3 }
 0x1d0   :  { %v251_v31 = vpop.f32.mrb[0].mxu1 }
 0x1d1   :  { %v258_v32 = vcombine.high %v251_v31, %v251_v31  ;;  %v3160_v33 = vadd.f32 %v260_v30, %v251_v31  ;;  %v2710_v34 = vpop.f32.mrb[1].mxu1 }
 0x1d2   :  { %v254_v35 = vpop.f32.mrb[2].mxu1 }
 0x1d3   :  { %v3162_v36 = vadd.f32 %v260_v30, %v258_v32  ;;  %v3166_v37 = vpack.c.bf16 %v3160_v33, %v3160_v33  ;;  %v2711_v38 = vpop.f32.mrb[3].mxu1 }
 0x1d5   :  { %389 = vrot.lane.b32.xlu1 %v3166_v37, %s3028_s8  ;;  %266 = vrot.lane.b32.xlu0 %v3166_v37, %s3029_s9  ;;  %v3172_v39 = vpack.c.bf16 %v3162_v36, %v3162_v36 }
 0x1d9   :  { %439 = vrot.lane.b32.xlu1 %v3172_v39, %s3028_s8  ;;  %316 = vrot.lane.b32.xlu0 %v3172_v39, %s3029_s9  ;;  %s3002_s8 = scalar_lea.vmem %s2540_s30, 256 }
 0x1da   :  { %p3003_p0 = scmp.ne.s32.totalorder %s2540_s30, %s3002_s8  ;;  %p3008_p2 = scmp.lt.s32.totalorder %s3002_s8, %s3002_s8 }
 0x1dc   :  { %p3009_p3 = por %p3008_p2, %p3007_p1 }
 0x1dd   :  { %437 = vrot.lane.b32.xlu1 %v3172_v39, %s3030_s3  ;;  %387 = vrot.lane.b32.xlu0 %v3166_v37, %s3030_s3 }
 0x1de   :  { %p3010_p4 = pnand %p3009_p3, %p3003_p0 }
 0x247   :  { %v390_v40 = vpop.permute.xlu1 %389  ;;  %v267_v41 = vpop.permute.xlu0 %266 }
 0x248   :  { %v273_v42 = vsel %vm268_vm2, %v267_v41, 0  ;;  %v395_v48 = vsel %vm268_vm2, %v390_v40, 0 }
 0x249   :  { %2713 = vmatpush3.bf16.xpose.msra.mxu1 %v273_v42 }
 0x24a   :  { %2718 = vmatprep.subr.bf16.mxu1 %v3026_v3 }
 0x24b   :  { %v440_v43 = vpop.permute.xlu1 %439  ;;  %v317_v45 = vpop.permute.xlu0 %316 }
 0x24c   :  { %v445_v44 = vsel %vm268_vm2, %v440_v43, 0  ;;  %v322_v46 = vsel %vm268_vm2, %v317_v45, 0 }
 0x24d   :  { %2731 = vmatpush3.bf16.xpose.msra.mxu0 %v445_v44 }
 0x24e   :  { %2746 = vmatprep.subr.mxu0 %v3026_v3 }
 0x24f   :  { %v438_v47 = vpop.permute.xlu1 %437  ;;  %v388_v49 = vpop.permute.xlu0 %387 }
 0x250   :  { %2715 = vmatmul.mubr.msk.bf16.vlgmr.msra.gmra.mrb[4].mxu1 %vm268_vm2, %v3166_v37 }
 0x251   :  { %2719 = vmatpush3.bf16.xpose.msra.mxu1 %v322_v46  ;;  %2720 = vmatprep.mubr.msk.bf16.mxu1 %vm3027_vm0, %v3026_v3 }
 0x252   :  { %2724 = vmatprep.subr.bf16.mxu1 %v3026_v3 }
 0x254   :  { %2733 = vmatmul.mubr.msk.bf16.vlgmr.msra.gmra.mrb[4].mxu0 %vm268_vm2, %v438_v47 }
 0x255   :  { %2748 = vmatprep.mubr.msk.f32.mxu0 %vm3027_vm0, %v3026_v3 }
 0x258   :  { %2721 = vmatmul.mubr.msk.bf16.vlgmr.msra.gmra.mrb[8].mxu1 %vm268_vm2, %v3172_v39 }
 0x259   :  { %2725 = vmatpush3.bf16.xpose.msra.mxu1 %v395_v48  ;;  %2726 = vmatprep.mubr.msk.bf16.mxu1 %vm3027_vm0, %v3026_v3 }
 0x25a   :  { %2736 = vmatprep.subr.mxu1 %v3026_v3 }
 0x260   :  { %2727 = vmatmul.mubr.msk.bf16.vlgmr.msra.gmra.mrb[12].mxu1 %vm268_vm2, %v388_v49 }
 0x261   :  { %2738 = vmatprep.mubr.msk.f32.mxu1 %vm3027_vm0, %v3026_v3 }
 0x323   :  { %v309_v50 = vpop.f32.mrb[4].mxu1 }
 0x324   :  { %v2716_v51 = vpop.f32.mrb[5].mxu1  ;;  %v365_v5 = vsel %vm364_vm3, %v309_v50, -inf }
 0x325   :  { %v312_v52 = vpop.f32.mrb[6].mxu1 }
 0x326   :  { %v2717_v53 = vpop.f32.mrb[7].mxu1 }
 0x327   :  { %v481_v54 = vpop.f32.mrb[4].mxu0 }
 0x328   :  { %v2734_v55 = vpop.f32.mrb[5].mxu0  ;;  %v490_v56 = vsel %vm364_vm3, %v481_v54, -inf }
 0x329   :  { %491 = vmax.xlane.f32.xlu1 %v490_v56  ;;  %v484_v57 = vpop.f32.mrb[6].mxu0 }
 0x32a   :  { %v2735_v58 = vpop.f32.mrb[7].mxu0 }
 0x32b   :  { %v358_v59 = vpop.f32.mrb[8].mxu1 }
 0x32c   :  { %v2722_v60 = vpop.f32.mrb[9].mxu1  ;;  %v368_v6 = vsel %vm364_vm3, %v358_v59, -inf }
 0x32d   :  { %v361_v61 = vpop.f32.mrb[10].mxu1 }
 0x32e   :  { %v2723_v62 = vpop.f32.mrb[11].mxu1 }
 0x333   :  { %v431_v63 = vpop.f32.mrb[12].mxu1 }
 0x334   :  { %v2728_v0 = vpop.f32.mrb[13].mxu1  ;;  %v487_v1 = vsel %vm364_vm3, %v431_v63, -inf }
 0x335   :  { %488 = vmax.xlane.f32.xlu0 %v487_v1  ;;  %v434_v2 = vpop.f32.mrb[14].mxu1 }
 0x336   :  { %v2729_v4 = vpop.f32.mrb[15].mxu1 }
 0x339   :  { %366 = vmax.xlane.f32.xlu0 %v365_v5 }
 0x33a   :  { %510 = vrot.lane.b32.xlu1 %v3160_v33, %s3031_s10 }
 0x33d   :  { %369 = vmax.xlane.f32.xlu0 %v368_v6 }
 0x33e   :  { %666 = vrot.lane.b32.xlu1 %v3160_v33, %s3032_s11 }
 0x353   :  { %589 = vrot.lane.b32.xlu0 %v3162_v36, %s3031_s10 }
 0x3b6   :  { %v492_v7 = vpop.xlane.xlu1 %491 }
 0x3b7   :  { %v494_v8 = vsub.f32 %v481_v54, %v492_v7 }
 0x3b9   :  { %v497_v9 = vmul.f32 1.442695, %v494_v8 }
 0x3ba   :  { %v511_v10 = vpop.permute.xlu1 %510 }
 0x3bb   :  { %2936 = vpow2.f32 %v497_v9  ;;  %2737 = vmatpush3.msk.msra.mxu1 %vm515_vm4, %v511_v10 }
 0x3bc   :  { %2741 = vmatprep.subr.mxu1 %v3026_v3 }
 0x3be   :  { %v667_v11 = vpop.permute.xlu1 %666 }
 0x3bf   :  { %2747 = vmatpush3.msk.msra.mxu0 %vm515_vm4, %v667_v11 }
 0x3c0   :  { %2756 = vmatprep.subr.bf16.mxu0 %v3026_v3 }
 0x3c2   :  { %v489_v12 = vpop.xlane.xlu0 %488 }
 0x3c3   :  { %v493_v14 = vsub.f32 %v431_v63, %v489_v12 }
 0x3c5   :  { %v2937_v13 = vpop.eup %2936  ;;  %v495_v18 = vmul.f32 1.442695, %v493_v14 }
 0x3c6   :  { %v367_v15 = vpop.xlane.xlu0 %366  ;;  %v502_v16 = vsel %vm364_vm3, %v2937_v13, 0.0 }
 0x3c7   :  { %v371_v17 = vsub.f32 %v309_v50, %v367_v15  ;;  %503 = vadd.xlane.f32.xlu0 %v502_v16 }
 0x3c9   :  { %v373_v19 = vmul.f32 1.442695, %v371_v17 }
 0x3ca   :  { %v370_v20 = vpop.xlane.xlu0 %369 }
 0x3cb   :  { %2938 = vpow2.f32 %v373_v19  ;;  %v372_v21 = vsub.f32 %v358_v59, %v370_v20 }
 0x3cc   :  { %2940 = vpow2.f32 %v495_v18 }
 0x3cd   :  { %v375_v22 = vmul.f32 1.442695, %v372_v21 }
 0x3ce   :  { %v590_v29 = vpop.permute.xlu0 %589 }
 0x3cf   :  { %2942 = vpow2.f32 %v375_v22 }
 0x3d5   :  { %v2939_v23 = vpop.eup %2938 }
 0x3d6   :  { %v377_v24 = vsel %vm364_vm3, %v2939_v23, 0.0  ;;  %v2941_v25 = vpop.eup %2940 }
 0x3d7   :  { %378 = vadd.xlane.f32.xlu1 %v377_v24  ;;  %v499_v27 = vsel %vm364_vm3, %v2941_v25, 0.0 }
 0x3d9   :  { %v2943_v26 = vpop.eup %2942 }
 0x3da   :  { %v380_v28 = vsel %vm364_vm3, %v2943_v26, 0.0 }
 0x3db   :  { %500 = vadd.xlane.f32.xlu1 %v499_v27  ;;  %381 = vadd.xlane.f32.xlu0 %v380_v28 }
 0x3ec   :  { %743 = vrot.lane.b32.xlu1 %v3162_v36, %s3032_s11 }
 0x3f0   :  { %872 = vrot.lane.b32.xlu1 %v3172_v39, %s3033_s12 }
 0x3f1   :  { %822 = vrot.lane.b32.xlu0 %v3166_v37, %s3033_s12 }
 0x3f4   :  { %870 = vrot.lane.b32.xlu1 %v3172_v39, %s3034_s13 }
 0x3f5   :  { %820 = vrot.lane.b32.xlu0 %v3166_v37, %s3034_s13 }
 0x454   :  { %v504_v31 = vpop.xlane.xlu0 %503 }
 0x464   :  { %v379_v30 = vpop.xlane.xlu1 %378 }
 0x465   :  { %2944 = vrcp.f32 %v379_v30 }
 0x468   :  { %v501_v32 = vpop.xlane.xlu1 %500  ;;  %v382_v34 = vpop.xlane.xlu0 %381 }
 0x469   :  { %2946 = vrcp.f32 %v501_v32 }
 0x46a   :  { %2948 = vrcp.f32 %v504_v31 }
 0x46b   :  { %2950 = vrcp.f32 %v382_v34 }
 0x46c   :  { %v823_v38 = vpop.permute.xlu0 %822  ;;  %v744_v46 = vpop.permute.xlu1 %743 }
 0x46d   :  { %v828_v41 = vsel %vm268_vm2, %v823_v38, 0 }
 0x46f   :  { %v2945_v35 = vpop.eup %2944 }
 0x470   :  { %v384_v40 = vmul.f32 %v2945_v35, %v2939_v23  ;;  %v821_v48 = vpop.permute.xlu0 %820  ;;  %v873_v50 = vpop.permute.xlu1 %872 }
 0x471   :  { %v878_v51 = vsel %vm268_vm2, %v873_v50, 0 }
 0x472   :  { %2749 = vmatmul.mubr.msk.f32.vlgmr.msra.gmra.mrb[8].mxu0 %vm268_vm2, %v384_v40 }
 0x473   :  { %v2947_v42 = vpop.eup %2946  ;;  %2757 = vmatpush3.bf16.xpose.msra.mxu0 %v828_v41  ;;  %2758 = vmatprep.mubr.msk.bf16.mxu0 %vm3027_vm0, %v3026_v3 }
 0x474   :  { %v506_v43 = vmul.f32 %v2947_v42, %v2941_v25  ;;  %2768 = vmatprep.subr.mxu0 %v3026_v3  ;;  %v2949_v44 = vpop.eup %2948  ;;  %v871_v52 = vpop.permute.xlu1 %870 }
 0x475   :  { %v508_v45 = vmul.f32 %v2949_v44, %v2937_v13  ;;  %v2951_v47 = vpop.eup %2950 }
 0x476   :  { %2739 = vmatmul.mubr.msk.f32.vlgmr.msra.gmra.mrb[16].mxu1 %vm268_vm2, %v506_v43  ;;  %v386_v49 = vmul.f32 %v2951_v47, %v2943_v26 }
 0x477   :  { %2742 = vmatpush3.msk.msra.mxu1 %vm515_vm4, %v590_v29  ;;  %2743 = vmatprep.mubr.msk.f32.mxu1 %vm3027_vm0, %v3026_v3 }
 0x478   :  { %2751 = vmatprep.subr.mxu1 %v3026_v3 }
 0x47a   :  { %2759 = vmatmul.mubr.msk.bf16.vlgmr.msra.gmra.mrb[12].mxu0 %vm268_vm2, %v821_v48  ;;  %2744 = vmatmul.mubr.msk.f32.vlgmr.msra.gmra.mrb[18].mxu1 %vm268_vm2, %v508_v45 }
 0x47b   :  { %2752 = vmatpush3.msk.msra.mxu1 %vm515_vm4, %v744_v46  ;;  %2753 = vmatprep.mubr.msk.f32.mxu1 %vm3027_vm0, %v3026_v3 }
 0x47c   :  { %2762 = vmatprep.subr.bf16.mxu1 %v3026_v3  ;;  %2770 = vmatprep.mubr.msk.f32.mxu0 %vm3027_vm0, %v3026_v3 }
 0x47e   :  { %2754 = vmatmul.mubr.msk.f32.vlgmr.msra.gmra.mrb[20].mxu1 %vm268_vm2, %v386_v49 }
 0x47f   :  { %2764 = vmatprep.mubr.msk.bf16.mxu1 %vm3027_vm0, %v3026_v3 }
 0x482   :  { %2763 = vmatpush3.bf16.xpose.msra.mxu1 %v878_v51 }
 0x483   :  { %2773 = vmatprep.subr.mxu1 %v3026_v3 }
 0x489   :  { %2765 = vmatmul.mubr.msk.bf16.vlgmr.msra.gmra.mrb[24].mxu1 %vm268_vm2, %v871_v52 }
 0x48a   :  { %2775 = vmatprep.mubr.msk.f32.mxu1 %vm3027_vm0, %v3026_v3 }
 0x545   :  { %v739_v53 = vpop.f32.mrb[8].mxu0 }
 0x546   :  { %v2750_v54 = vpop.f32.mrb[9].mxu0 }
 0x549   :  { %v584_v55 = vpop.f32.mrb[16].mxu1 }
 0x54a   :  { %v3248_v56 = vadd.f32 %v739_v53, %v584_v55  ;;  %v2740_v57 = vpop.f32.mrb[17].mxu1 }
 0x54d   :  { %v864_v58 = vpop.f32.mrb[12].mxu0  ;;  %v662_v59 = vpop.f32.mrb[18].mxu1 }
 0x54e   :  { %v2760_v60 = vpop.f32.mrb[13].mxu0  ;;  %v920_v61 = vsel %vm364_vm3, %v864_v58, -inf  ;;  %v2745_v62 = vpop.f32.mrb[19].mxu1 }
 0x54f   :  { %921 = vmax.xlane.f32.xlu0 %v920_v61  ;;  %v867_v63 = vpop.f32.mrb[14].mxu0 }
 0x550   :  { %v2761_v0 = vpop.f32.mrb[15].mxu0 }
 0x551   :  { %v816_v1 = vpop.f32.mrb[20].mxu1 }
 0x552   :  { %v3251_v2 = vadd.f32 %v816_v1, %v662_v59  ;;  %v2755_v4 = vpop.f32.mrb[21].mxu1 }
 0x55c   :  { %v914_v5 = vpop.f32.mrb[24].mxu1 }
 0x55d   :  { %v2766_v6 = vpop.f32.mrb[25].mxu1  ;;  %v923_v7 = vsel %vm364_vm3, %v914_v5, -inf }
 0x55e   :  { %924 = vmax.xlane.f32.xlu1 %v923_v7  ;;  %v917_v8 = vpop.f32.mrb[26].mxu1 }
 0x55f   :  { %v2767_v9 = vpop.f32.mrb[27].mxu1 }
 0x56f   :  { %942 = vrot.lane.b32.xlu1 %v3160_v33, %s3035_s14 }
 0x573   :  { %1100 = vrot.lane.b32.xlu1 %v3166_v37, %s3036_s15 }
 0x577   :  { %1150 = vrot.lane.b32.xlu1 %v3172_v39, %s3036_s15 }
 0x57b   :  { %1148 = vrot.lane.b32.xlu1 %v3172_v39, %s3037_s16 }
 0x5dc   :  { %v922_v10 = vpop.xlane.xlu0 %921 }
 0x5dd   :  { %v926_v11 = vsub.f32 %v864_v58, %v922_v10 }
 0x5df   :  { %v928_v12 = vmul.f32 1.442695, %v926_v11 }
 0x5e1   :  { %2952 = vpow2.f32 %v928_v12 }
 0x5eb   :  { %v2953_v13 = vpop.eup %2952  ;;  %v925_v14 = vpop.xlane.xlu1 %924 }
 0x5ec   :  { %v927_v15 = vsub.f32 %v914_v5, %v925_v14  ;;  %v932_v16 = vsel %vm364_vm3, %v2953_v13, 0.0 }
 0x5ed   :  { %933 = vadd.xlane.f32.xlu0 %v932_v16 }
 0x5ee   :  { %v930_v17 = vmul.f32 1.442695, %v927_v15 }
 0x5ef   :  { %v943_v18 = vpop.permute.xlu1 %942 }
 0x5f0   :  { %2954 = vpow2.f32 %v930_v17  ;;  %2769 = vmatpush3.msk.msra.mxu0 %vm515_vm4, %v943_v18 }
 0x5f1   :  { %2778 = vmatprep.subr.bf16.mxu0 %v3026_v3 }
 0x5f3   :  { %v1101_v23 = vpop.permute.xlu1 %1100 }
 0x5f4   :  { %v1106_v25 = vsel %vm268_vm2, %v1101_v23, 0 }
 0x5f7   :  { %v1151_v30 = vpop.permute.xlu1 %1150 }
 0x5f8   :  { %v1156_v32 = vsel %vm268_vm2, %v1151_v30, 0 }
 0x5fa   :  { %v2955_v19 = vpop.eup %2954 }
 0x5fb   :  { %v935_v20 = vsel %vm364_vm3, %v2955_v19, 0.0  ;;  %v1149_v34 = vpop.permute.xlu1 %1148 }
 0x5fc   :  { %936 = vadd.xlane.f32.xlu0 %v935_v20 }
 0x612   :  { %1019 = vrot.lane.b32.xlu0 %v3162_v36, %s3035_s14 }
 0x616   :  { %1098 = vrot.lane.b32.xlu0 %v3166_v37, %s3037_s16 }
 0x67a   :  { %v934_v21 = vpop.xlane.xlu0 %933 }
 0x67b   :  { %2956 = vrcp.f32 %v934_v21 }
 0x685   :  { %v2957_v22 = vpop.eup %2956 }
 0x686   :  { %v939_v24 = vmul.f32 %v2957_v22, %v2953_v13 }
 0x688   :  { %2771 = vmatmul.mubr.msk.f32.vlgmr.msra.gmra.mrb[10].mxu0 %vm268_vm2, %v939_v24 }
 0x689   :  { %2779 = vmatpush3.bf16.xpose.msra.mxu0 %v1106_v25  ;;  %v937_v26 = vpop.xlane.xlu0 %936  ;;  %2780 = vmatprep.mubr.msk.bf16.mxu0 %vm3027_vm0, %v3026_v3 }
 0x68a   :  { %2958 = vrcp.f32 %v937_v26  ;;  %2790 = vmatprep.subr.mxu0 %v3026_v3 }
 0x68d   :  { %v1020_v27 = vpop.permute.xlu0 %1019 }
 0x68e   :  { %2774 = vmatpush3.msk.msra.mxu1 %vm515_vm4, %v1020_v27 }
 0x68f   :  { %2784 = vmatprep.subr.bf16.mxu1 %v3026_v3 }
 0x691   :  { %v1099_v28 = vpop.permute.xlu0 %1098 }
 0x692   :  { %2781 = vmatmul.mubr.msk.bf16.vlgmr.msra.gmra.mrb[16].mxu0 %vm268_vm2, %v1099_v28 }
 0x693   :  { %2792 = vmatprep.mubr.msk.f32.mxu0 %vm3027_vm0, %v3026_v3 }
 0x694   :  { %v2959_v29 = vpop.eup %2958 }
 0x695   :  { %v941_v31 = vmul.f32 %v2959_v29, %v2955_v19 }
 0x697   :  { %2776 = vmatmul.mubr.msk.f32.vlgmr.msra.gmra.mrb[22].mxu1 %vm268_vm2, %v941_v31 }
 0x698   :  { %2785 = vmatpush3.bf16.xpose.msra.mxu1 %v1156_v32  ;;  %2786 = vmatprep.mubr.msk.bf16.mxu1 %vm3027_vm0, %v3026_v3 }
 0x699   :  { %2795 = vmatprep.subr.mxu1 %v3026_v3 }
 0x69f   :  { %2787 = vmatmul.mubr.msk.bf16.vlgmr.msra.gmra.mrb[28].mxu1 %vm268_vm2, %v1149_v34 }
 0x6a0   :  { %2797 = vmatprep.mubr.msk.f32.mxu1 %vm3027_vm0, %v3026_v3 }
 0x75b   :  { %v1015_v35 = vpop.f32.mrb[10].mxu0 }
 0x75c   :  { %v3283_v38 = vadd.f32 %v1015_v35, %v3248_v56  ;;  %v2772_v40 = vpop.f32.mrb[11].mxu0 }
 0x765   :  { %v1142_v41 = vpop.f32.mrb[16].mxu0 }
 0x766   :  { %v2782_v42 = vpop.f32.mrb[17].mxu0  ;;  %v1198_v43 = vsel %vm364_vm3, %v1142_v41, -inf }
 0x767   :  { %1199 = vmax.xlane.f32.xlu0 %v1198_v43  ;;  %v1145_v44 = vpop.f32.mrb[18].mxu0 }
 0x768   :  { %v2783_v45 = vpop.f32.mrb[19].mxu0 }
 0x76a   :  { %v1092_v46 = vpop.f32.mrb[22].mxu1 }
 0x76b   :  { %v3287_v47 = vadd.f32 %v1092_v46, %v3251_v2  ;;  %v2777_v48 = vpop.f32.mrb[23].mxu1 }
 0x772   :  { %v1192_v49 = vpop.f32.mrb[28].mxu1 }
 0x773   :  { %v2788_v50 = vpop.f32.mrb[29].mxu1  ;;  %v1201_v51 = vsel %vm364_vm3, %v1192_v49, -inf }
 0x774   :  { %1202 = vmax.xlane.f32.xlu1 %v1201_v51  ;;  %v1195_v52 = vpop.f32.mrb[30].mxu1 }
 0x775   :  { %v2789_v53 = vpop.f32.mrb[31].mxu1 }
 0x785   :  { %1220 = vrot.lane.b32.xlu1 %v3160_v33, %s3038_s17 }
 0x789   :  { %1378 = vrot.lane.b32.xlu1 %v3166_v37, %s3039_s18 }
 0x78d   :  { %1428 = vrot.lane.b32.xlu1 %v3172_v39, %s3039_s18 }
 0x791   :  { %1426 = vrot.lane.b32.xlu1 %v3172_v39, %s3040_s19 }
 0x7f4   :  { %v1200_v54 = vpop.xlane.xlu0 %1199 }
 0x7f5   :  { %v1204_v55 = vsub.f32 %v1142_v41, %v1200_v54 }
 0x7f7   :  { %v1206_v56 = vmul.f32 1.442695, %v1204_v55 }
 0x7f9   :  { %2960 = vpow2.f32 %v1206_v56 }
 0x801   :  { %v1203_v57 = vpop.xlane.xlu1 %1202 }
 0x802   :  { %v1205_v58 = vsub.f32 %v1192_v49, %v1203_v57 }
 0x803   :  { %v2961_v59 = vpop.eup %2960 }
 0x804   :  { %v1208_v60 = vmul.f32 1.442695, %v1205_v58  ;;  %v1210_v61 = vsel %vm364_vm3, %v2961_v59, 0.0 }
 0x805   :  { %v1221_v62 = vpop.permute.xlu1 %1220  ;;  %1211 = vadd.xlane.f32.xlu0 %v1210_v61 }
 0x806   :  { %2962 = vpow2.f32 %v1208_v60  ;;  %2791 = vmatpush3.msk.msra.mxu0 %vm515_vm4, %v1221_v62 }
 0x807   :  { %2800 = vmatprep.subr.bf16.mxu0 %v3026_v3 }
 0x809   :  { %v1379_v4 = vpop.permute.xlu1 %1378 }
 0x80a   :  { %v1384_v7 = vsel %vm268_vm2, %v1379_v4, 0 }
 0x80d   :  { %v1429_v11 = vpop.permute.xlu1 %1428 }
 0x80e   :  { %v1434_v13 = vsel %vm268_vm2, %v1429_v11, 0 }
 0x810   :  { %v2963_v63 = vpop.eup %2962 }
 0x811   :  { %v1213_v0 = vsel %vm364_vm3, %v2963_v63, 0.0  ;;  %v1427_v14 = vpop.permute.xlu1 %1426 }
 0x812   :  { %1214 = vadd.xlane.f32.xlu0 %v1213_v0 }
 0x828   :  { %1297 = vrot.lane.b32.xlu0 %v3162_v36, %s3038_s17 }
 0x82c   :  { %1376 = vrot.lane.b32.xlu0 %v3166_v37, %s3040_s19 }
 0x892   :  { %v1212_v1 = vpop.xlane.xlu0 %1211 }
 0x893   :  { %2964 = vrcp.f32 %v1212_v1 }
 0x89d   :  { %v2965_v2 = vpop.eup %2964 }
 0x89e   :  { %v1217_v5 = vmul.f32 %v2965_v2, %v2961_v59 }
 0x89f   :  { %v1215_v6 = vpop.xlane.xlu0 %1214 }
 0x8a0   :  { %2966 = vrcp.f32 %v1215_v6  ;;  %2793 = vmatmul.mubr.msk.f32.vlgmr.msra.gmra.mrb[20].mxu0 %vm268_vm2, %v1217_v5 }
 0x8a1   :  { %2801 = vmatpush3.bf16.xpose.msra.mxu0 %v1384_v7  ;;  %2802 = vmatprep.mubr.msk.bf16.mxu0 %vm3027_vm0, %v3026_v3 }
 0x8a2   :  { %2812 = vmatprep.subr.mxu0 %v3026_v3 }
 0x8a3   :  { %v1298_v8 = vpop.permute.xlu0 %1297 }
 0x8a4   :  { %2796 = vmatpush3.msk.msra.mxu1 %vm515_vm4, %v1298_v8 }
 0x8a5   :  { %2806 = vmatprep.subr.bf16.mxu1 %v3026_v3 }
 0x8a7   :  { %v1377_v9 = vpop.permute.xlu0 %1376 }
 0x8a8   :  { %2803 = vmatmul.mubr.msk.bf16.vlgmr.msra.gmra.mrb[24].mxu0 %vm268_vm2, %v1377_v9 }
 0x8a9   :  { %2814 = vmatprep.mubr.msk.f32.mxu0 %vm3027_vm0, %v3026_v3 }
 0x8aa   :  { %v2967_v10 = vpop.eup %2966 }
 0x8ab   :  { %v1219_v12 = vmul.f32 %v2967_v10, %v2963_v63 }
 0x8ad   :  { %2798 = vmatmul.mubr.msk.f32.vlgmr.msra.gmra.mrb[32].mxu1 %vm268_vm2, %v1219_v12 }
 0x8ae   :  { %2807 = vmatpush3.bf16.xpose.msra.mxu1 %v1434_v13  ;;  %2808 = vmatprep.mubr.msk.bf16.mxu1 %vm3027_vm0, %v3026_v3 }
 0x8af   :  { %2817 = vmatprep.subr.mxu1 %v3026_v3 }
 0x8b5   :  { %2809 = vmatmul.mubr.msk.bf16.vlgmr.msra.gmra.mrb[36].mxu1 %vm268_vm2, %v1427_v14 }
 0x8b6   :  { %2819 = vmatprep.mubr.msk.f32.mxu1 %vm3027_vm0, %v3026_v3 }
 0x973   :  { %v1293_v15 = vpop.f32.mrb[20].mxu0 }
 0x974   :  { %v3319_v16 = vadd.f32 %v1293_v15, %v3283_v38  ;;  %v2794_v17 = vpop.f32.mrb[21].mxu0 }
 0x97b   :  { %v1420_v18 = vpop.f32.mrb[24].mxu0 }
 0x97c   :  { %v2804_v19 = vpop.f32.mrb[25].mxu0  ;;  %v1476_v20 = vsel %vm364_vm3, %v1420_v18, -inf }
 0x97d   :  { %1477 = vmax.xlane.f32.xlu0 %v1476_v20  ;;  %v1423_v21 = vpop.f32.mrb[26].mxu0 }
 0x97e   :  { %v2805_v22 = vpop.f32.mrb[27].mxu0 }
 0x980   :  { %v1370_v23 = vpop.f32.mrb[32].mxu1 }
 0x981   :  { %v3323_v24 = vadd.f32 %v1370_v23, %v3287_v47  ;;  %v2799_v25 = vpop.f32.mrb[33].mxu1 }
 0x988   :  { %v1470_v26 = vpop.f32.mrb[36].mxu1 }
 0x989   :  { %v2810_v27 = vpop.f32.mrb[37].mxu1  ;;  %v1479_v28 = vsel %vm364_vm3, %v1470_v26, -inf }
 0x98a   :  { %1480 = vmax.xlane.f32.xlu1 %v1479_v28  ;;  %v1473_v29 = vpop.f32.mrb[38].mxu1 }
 0x98b   :  { %v2811_v30 = vpop.f32.mrb[39].mxu1 }
 0x99b   :  { %1498 = vrot.lane.b32.xlu1 %v3160_v33, %s3041_s20 }
 0x99f   :  { %1656 = vrot.lane.b32.xlu1 %v3166_v37, %s3042_s21 }
 0x9a3   :  { %1706 = vrot.lane.b32.xlu1 %v3172_v39, %s3042_s21 }
 0x9a7   :  { %1704 = vrot.lane.b32.xlu1 %v3172_v39, %s3043_s22 }
 0xa0a   :  { %v1478_v31 = vpop.xlane.xlu0 %1477 }
 0xa0b   :  { %v1482_v32 = vsub.f32 %v1420_v18, %v1478_v31 }
 0xa0d   :  { %v1484_v34 = vmul.f32 1.442695, %v1482_v32 }
 0xa0f   :  { %2968 = vpow2.f32 %v1484_v34 }
 0xa17   :  { %v1481_v35 = vpop.xlane.xlu1 %1480 }
 0xa18   :  { %v1483_v38 = vsub.f32 %v1470_v26, %v1481_v35 }
 0xa19   :  { %v2969_v40 = vpop.eup %2968 }
 0xa1a   :  { %v1486_v41 = vmul.f32 1.442695, %v1483_v38  ;;  %v1488_v42 = vsel %vm364_vm3, %v2969_v40, 0.0 }
 0xa1b   :  { %v1499_v43 = vpop.permute.xlu1 %1498  ;;  %1489 = vadd.xlane.f32.xlu0 %v1488_v42 }
 0xa1c   :  { %2970 = vpow2.f32 %v1486_v41  ;;  %2813 = vmatpush3.msk.msra.mxu0 %vm515_vm4, %v1499_v43 }
 0xa1d   :  { %2822 = vmatprep.subr.bf16.mxu0 %v3026_v3 }
 0xa1f   :  { %v1657_v48 = vpop.permute.xlu1 %1656 }
 0xa20   :  { %v1662_v51 = vsel %vm268_vm2, %v1657_v48, 0 }
 0xa23   :  { %v1707_v55 = vpop.permute.xlu1 %1706 }
 0xa24   :  { %v1712_v57 = vsel %vm268_vm2, %v1707_v55, 0 }
 0xa26   :  { %v2971_v44 = vpop.eup %2970 }
 0xa27   :  { %v1491_v45 = vsel %vm364_vm3, %v2971_v44, 0.0  ;;  %v1705_v58 = vpop.permute.xlu1 %1704 }
 0xa28   :  { %1492 = vadd.xlane.f32.xlu0 %v1491_v45 }
 0xa3e   :  { %1575 = vrot.lane.b32.xlu0 %v3162_v36, %s3041_s20 }
 0xa42   :  { %1654 = vrot.lane.b32.xlu0 %v3166_v37, %s3043_s22 }
 0xaa8   :  { %v1490_v46 = vpop.xlane.xlu0 %1489 }
 0xaa9   :  { %2972 = vrcp.f32 %v1490_v46 }
 0xab3   :  { %v2973_v47 = vpop.eup %2972 }
 0xab4   :  { %v1495_v49 = vmul.f32 %v2973_v47, %v2969_v40 }
 0xab5   :  { %v1493_v50 = vpop.xlane.xlu0 %1492 }
 0xab6   :  { %2974 = vrcp.f32 %v1493_v50  ;;  %2815 = vmatmul.mubr.msk.f32.vlgmr.msra.gmra.mrb[22].mxu0 %vm268_vm2, %v1495_v49 }
 0xab7   :  { %2823 = vmatpush3.bf16.xpose.msra.mxu0 %v1662_v51  ;;  %2824 = vmatprep.mubr.msk.bf16.mxu0 %vm3027_vm0, %v3026_v3 }
 0xab8   :  { %2834 = vmatprep.subr.mxu0 %v3026_v3 }
 0xab9   :  { %v1576_v52 = vpop.permute.xlu0 %1575 }
 0xaba   :  { %2818 = vmatpush3.msk.msra.mxu1 %vm515_vm4, %v1576_v52 }
 0xabb   :  { %2828 = vmatprep.subr.bf16.mxu1 %v3026_v3 }
 0xabd   :  { %v1655_v53 = vpop.permute.xlu0 %1654 }
 0xabe   :  { %2825 = vmatmul.mubr.msk.bf16.vlgmr.msra.gmra.mrb[28].mxu0 %vm268_vm2, %v1655_v53 }
 0xabf   :  { %2836 = vmatprep.mubr.msk.f32.mxu0 %vm3027_vm0, %v3026_v3 }
 0xac0   :  { %v2975_v54 = vpop.eup %2974 }
 0xac1   :  { %v1497_v56 = vmul.f32 %v2975_v54, %v2971_v44 }
 0xac3   :  { %2820 = vmatmul.mubr.msk.f32.vlgmr.msra.gmra.mrb[34].mxu1 %vm268_vm2, %v1497_v56 }
 0xac4   :  { %2829 = vmatpush3.bf16.xpose.msra.mxu1 %v1712_v57  ;;  %2830 = vmatprep.mubr.msk.bf16.mxu1 %vm3027_vm0, %v3026_v3 }
 0xac5   :  { %2839 = vmatprep.subr.mxu1 %v3026_v3 }
 0xacb   :  { %2831 = vmatmul.mubr.msk.bf16.vlgmr.msra.gmra.mrb[40].mxu1 %vm268_vm2, %v1705_v58 }
 0xacc   :  { %2841 = vmatprep.mubr.msk.f32.mxu1 %vm3027_vm0, %v3026_v3 }
 0xb89   :  { %v1571_v59 = vpop.f32.mrb[22].mxu0 }
 0xb8a   :  { %v3355_v60 = vadd.f32 %v1571_v59, %v3319_v16  ;;  %v2816_v61 = vpop.f32.mrb[23].mxu0 }
 0xb91   :  { %v1698_v62 = vpop.f32.mrb[28].mxu0 }
 0xb92   :  { %v2826_v63 = vpop.f32.mrb[29].mxu0  ;;  %v1754_v0 = vsel %vm364_vm3, %v1698_v62, -inf }
 0xb93   :  { %1755 = vmax.xlane.f32.xlu0 %v1754_v0  ;;  %v1701_v1 = vpop.f32.mrb[30].mxu0 }
 0xb94   :  { %v2827_v2 = vpop.f32.mrb[31].mxu0 }
 0xb96   :  { %v1648_v4 = vpop.f32.mrb[34].mxu1 }
 0xb97   :  { %v3359_v5 = vadd.f32 %v1648_v4, %v3323_v24  ;;  %v2821_v6 = vpop.f32.mrb[35].mxu1 }
 0xb9e   :  { %v1748_v7 = vpop.f32.mrb[40].mxu1 }
 0xb9f   :  { %v2832_v8 = vpop.f32.mrb[41].mxu1  ;;  %v1757_v9 = vsel %vm364_vm3, %v1748_v7, -inf }
 0xba0   :  { %1758 = vmax.xlane.f32.xlu1 %v1757_v9  ;;  %v1751_v10 = vpop.f32.mrb[42].mxu1 }
 0xba1   :  { %v2833_v11 = vpop.f32.mrb[43].mxu1 }
 0xbb1   :  { %1776 = vrot.lane.b32.xlu1 %v3160_v33, %s3044_s23 }
 0xbb5   :  { %1934 = vrot.lane.b32.xlu1 %v3166_v37, %s3045_s24 }
 0xbb9   :  { %1984 = vrot.lane.b32.xlu1 %v3172_v39, %s3045_s24 }
 0xbbd   :  { %1982 = vrot.lane.b32.xlu1 %v3172_v39, %s3046_s25 }
 0xc20   :  { %v1756_v12 = vpop.xlane.xlu0 %1755 }
 0xc21   :  { %v1760_v13 = vsub.f32 %v1698_v62, %v1756_v12 }
 0xc23   :  { %v1762_v14 = vmul.f32 1.442695, %v1760_v13 }
 0xc25   :  { %2976 = vpow2.f32 %v1762_v14 }
 0xc2d   :  { %v1759_v15 = vpop.xlane.xlu1 %1758 }
 0xc2e   :  { %v1761_v16 = vsub.f32 %v1748_v7, %v1759_v15 }
 0xc2f   :  { %v2977_v17 = vpop.eup %2976 }
 0xc30   :  { %v1764_v18 = vmul.f32 1.442695, %v1761_v16  ;;  %v1766_v19 = vsel %vm364_vm3, %v2977_v17, 0.0 }
 0xc31   :  { %v1777_v20 = vpop.permute.xlu1 %1776  ;;  %1767 = vadd.xlane.f32.xlu0 %v1766_v19 }
 0xc32   :  { %2978 = vpow2.f32 %v1764_v18  ;;  %2835 = vmatpush3.msk.msra.mxu0 %vm515_vm4, %v1777_v20 }
 0xc33   :  { %2844 = vmatprep.subr.bf16.mxu0 %v3026_v3 }
 0xc35   :  { %v1935_v25 = vpop.permute.xlu1 %1934 }
 0xc36   :  { %v1940_v28 = vsel %vm268_vm2, %v1935_v25, 0 }
 0xc39   :  { %v1985_v32 = vpop.permute.xlu1 %1984 }
 0xc3a   :  { %v1990_v35 = vsel %vm268_vm2, %v1985_v32, 0 }
 0xc3c   :  { %v2979_v21 = vpop.eup %2978 }
 0xc3d   :  { %v1769_v22 = vsel %vm364_vm3, %v2979_v21, 0.0  ;;  %v1983_v38 = vpop.permute.xlu1 %1982 }
 0xc3e   :  { %1770 = vadd.xlane.f32.xlu0 %v1769_v22 }
 0xc54   :  { %1853 = vrot.lane.b32.xlu0 %v3162_v36, %s3044_s23 }
 0xc58   :  { %1932 = vrot.lane.b32.xlu0 %v3166_v37, %s3046_s25 }
 0xcbe   :  { %v1768_v23 = vpop.xlane.xlu0 %1767 }
 0xcbf   :  { %2980 = vrcp.f32 %v1768_v23 }
 0xcc9   :  { %v2981_v24 = vpop.eup %2980 }
 0xcca   :  { %v1773_v26 = vmul.f32 %v2981_v24, %v2977_v17 }
 0xccb   :  { %v1771_v27 = vpop.xlane.xlu0 %1770 }
 0xccc   :  { %2982 = vrcp.f32 %v1771_v27  ;;  %2837 = vmatmul.mubr.msk.f32.vlgmr.msra.gmra.mrb[32].mxu0 %vm268_vm2, %v1773_v26 }
 0xccd   :  { %2845 = vmatpush3.bf16.xpose.msra.mxu0 %v1940_v28  ;;  %2846 = vmatprep.mubr.msk.bf16.mxu0 %vm3027_vm0, %v3026_v3 }
 0xcce   :  { %2856 = vmatprep.subr.mxu0 %v3026_v3 }
 0xccf   :  { %v1854_v29 = vpop.permute.xlu0 %1853 }
 0xcd0   :  { %2840 = vmatpush3.msk.msra.mxu1 %vm515_vm4, %v1854_v29 }
 0xcd1   :  { %2850 = vmatprep.subr.bf16.mxu1 %v3026_v3 }
 0xcd3   :  { %v1933_v30 = vpop.permute.xlu0 %1932 }
 0xcd4   :  { %2847 = vmatmul.mubr.msk.bf16.vlgmr.msra.gmra.mrb[36].mxu0 %vm268_vm2, %v1933_v30 }
 0xcd5   :  { %2858 = vmatprep.mubr.msk.f32.mxu0 %vm3027_vm0, %v3026_v3 }
 0xcd6   :  { %v2983_v31 = vpop.eup %2982 }
 0xcd7   :  { %v1775_v34 = vmul.f32 %v2983_v31, %v2979_v21 }
 0xcd9   :  { %2842 = vmatmul.mubr.msk.f32.vlgmr.msra.gmra.mrb[44].mxu1 %vm268_vm2, %v1775_v34 }
 0xcda   :  { %2851 = vmatpush3.bf16.xpose.msra.mxu1 %v1990_v35  ;;  %2852 = vmatprep.mubr.msk.bf16.mxu1 %vm3027_vm0, %v3026_v3 }
 0xcdb   :  { %2861 = vmatprep.subr.mxu1 %v3026_v3 }
 0xce1   :  { %2853 = vmatmul.mubr.msk.bf16.vlgmr.msra.gmra.mrb[48].mxu1 %vm268_vm2, %v1983_v38 }
 0xce2   :  { %2863 = vmatprep.mubr.msk.f32.mxu1 %vm3027_vm0, %v3026_v3 }
 0xd9f   :  { %v1849_v40 = vpop.f32.mrb[32].mxu0 }
 0xda0   :  { %v3391_v41 = vadd.f32 %v1849_v40, %v3355_v60  ;;  %v2838_v42 = vpop.f32.mrb[33].mxu0 }
 0xda7   :  { %v1976_v43 = vpop.f32.mrb[36].mxu0 }
 0xda8   :  { %v2848_v44 = vpop.f32.mrb[37].mxu0  ;;  %v2032_v45 = vsel %vm364_vm3, %v1976_v43, -inf }
 0xda9   :  { %2033 = vmax.xlane.f32.xlu0 %v2032_v45  ;;  %v1979_v46 = vpop.f32.mrb[38].mxu0 }
 0xdaa   :  { %v2849_v47 = vpop.f32.mrb[39].mxu0 }
 0xdac   :  { %v1926_v48 = vpop.f32.mrb[44].mxu1 }
 0xdad   :  { %v3395_v49 = vadd.f32 %v1926_v48, %v3359_v5  ;;  %v2843_v50 = vpop.f32.mrb[45].mxu1 }
 0xdb4   :  { %v2026_v51 = vpop.f32.mrb[48].mxu1 }
 0xdb5   :  { %v2854_v52 = vpop.f32.mrb[49].mxu1  ;;  %v2035_v53 = vsel %vm364_vm3, %v2026_v51, -inf }
 0xdb6   :  { %2036 = vmax.xlane.f32.xlu1 %v2035_v53  ;;  %v2029_v54 = vpop.f32.mrb[50].mxu1 }
 0xdb7   :  { %v2855_v55 = vpop.f32.mrb[51].mxu1 }
 0xdc7   :  { %2054 = vrot.lane.b32.xlu1 %v3160_v33, %s3047_s26 }
 0xdcb   :  { %2212 = vrot.lane.b32.xlu1 %v3166_v37, %s3048_s4 }
 0xdcf   :  { %2262 = vrot.lane.b32.xlu1 %v3172_v39, %s3048_s4 }
 0xdd3   :  { %2260 = vrot.lane.b32.xlu1 %v3172_v39, %s3049_s27 }
 0xe36   :  { %v2034_v56 = vpop.xlane.xlu0 %2033 }
 0xe37   :  { %v2038_v57 = vsub.f32 %v1976_v43, %v2034_v56 }
 0xe39   :  { %v2040_v58 = vmul.f32 1.442695, %v2038_v57 }
 0xe3b   :  { %2984 = vpow2.f32 %v2040_v58 }
 0xe43   :  { %v2037_v59 = vpop.xlane.xlu1 %2036 }
 0xe44   :  { %v2039_v60 = vsub.f32 %v2026_v51, %v2037_v59  ;;  %v3051_v51 = vmov 0  }
 0xe45   :  { %v2985_v61 = vpop.eup %2984  ;;  %2916 = vset.pattern.permute.xlu1 %v3051_v51  ;;  %2917 = vset.pattern.permute.xlu0 %v3051_v51 }
 0xe46   :  { %v2042_v62 = vmul.f32 1.442695, %v2039_v60  ;;  %v2044_v63 = vsel %vm364_vm3, %v2985_v61, 0.0 }
 0xe47   :  { %v2055_v0 = vpop.permute.xlu1 %2054  ;;  %2045 = vadd.xlane.f32.xlu0 %v2044_v63  ;;  %v2507_v63 = vlaneseq }
 0xe48   :  { %2986 = vpow2.f32 %v2042_v62  ;;  %2857 = vmatpush3.msk.msra.mxu0 %vm515_vm4, %v2055_v0 }
 0xe49   :  { %2866 = vmatprep.subr.bf16.mxu0 %v3026_v3 }
 0xe4b   :  { %v2213_v5 = vpop.permute.xlu1 %2212 }
 0xe4c   :  { %v2218_v8 = vsel %vm268_vm2, %v2213_v5, 0 }
 0xe4f   :  { %v2263_v11 = vpop.permute.xlu1 %2262 }
 0xe50   :  { %v2268_v13 = vsel %vm268_vm2, %v2263_v11, 0 }
 0xe52   :  { %v2987_v1 = vpop.eup %2986 }
 0xe53   :  { %v2047_v39 = vsel %vm364_vm3, %v2987_v1, 0.0  ;;  %v2261_v14 = vpop.permute.xlu1 %2260 }
 0xe54   :  { %2048 = vadd.xlane.f32.xlu0 %v2047_v39 }
 0xe6a   :  { %2131 = vrot.lane.b32.xlu0 %v3162_v36, %s3047_s26 }
 0xe6e   :  { %2210 = vrot.lane.b32.xlu0 %v3166_v37, %s3049_s27 }
 0xed4   :  { %v2046_v2 = vpop.xlane.xlu0 %2045 }
 0xed5   :  { %2988 = vrcp.f32 %v2046_v2 }
 0xedf   :  { %v2989_v4 = vpop.eup %2988 }
 0xee0   :  { %v2051_v6 = vmul.f32 %v2989_v4, %v2985_v61  ;;  %v3052_v61 = vmov 839922192  }
 0xee1   :  { %v2049_v7 = vpop.xlane.xlu0 %2048  ;;  %v2505_v62 = vunpack.c.l.s4 %v3052_v61 }
 0xee2   :  { %2990 = vrcp.f32 %v2049_v7  ;;  %2859 = vmatmul.mubr.msk.f32.vlgmr.msra.gmra.mrb[34].mxu0 %vm268_vm2, %v2051_v6 }
 0xee3   :  { %2867 = vmatpush3.bf16.xpose.msra.mxu0 %v2218_v8  ;;  %2868 = vmatprep.mubr.msk.bf16.mxu0 %vm3027_vm0, %v3026_v3  ;;  %v2506_v0 = vunpack.c.0.s8 %v2505_v62 }
 0xee4   :  { %2878 = vmatprep.subr.mxu0 %v3026_v3 }
 0xee5   :  { %v2132_v9 = vpop.permute.xlu0 %2131 }
 0xee6   :  { %2862 = vmatpush3.msk.msra.mxu1 %vm515_vm4, %v2132_v9  ;;  %v3000_v9 = vld [vmem:[%s3456_s0] sm:$0xff] }
 0xee7   :  { %2872 = vmatprep.subr.bf16.mxu1 %v3026_v3 }
 0xee9   :  { %v2211_v37 = vpop.permute.xlu0 %2210 }
 0xeea   :  { %2869 = vmatmul.mubr.msk.bf16.vlgmr.msra.gmra.mrb[40].mxu0 %vm268_vm2, %v2211_v37 }
 0xeeb   :  { %2880 = vmatprep.mubr.msk.f32.mxu0 %vm3027_vm0, %v3026_v3 }
 0xeec   :  { %v2991_v10 = vpop.eup %2990 }
 0xeed   :  { %v2053_v12 = vmul.f32 %v2991_v10, %v2987_v1  ;;  %v2508_v1 = vshrl.u32 %v2507_v63, 7  ;;  %v3001_v10 = vld [vmem:[%s3456_s0 + $0x8] sm:$0xff] }
 0xeef   :  { %2864 = vmatmul.mubr.msk.f32.vlgmr.msra.gmra.mrb[46].mxu1 %vm268_vm2, %v2053_v12  ;;  %v2509_v2 = vsub.s32 %v2506_v0, %v2508_v1 }
 0xef0   :  { %2873 = vmatpush3.bf16.xpose.msra.mxu1 %v2268_v13  ;;  %2874 = vmatprep.mubr.msk.bf16.mxu1 %vm3027_vm0, %v3026_v3 }
 0xef1   :  { %2883 = vmatprep.subr.mxu1 %v3026_v3 }
 0xef7   :  { %2875 = vmatmul.mubr.msk.bf16.vlgmr.msra.gmra.mrb[52].mxu1 %vm268_vm2, %v2261_v14 }
 0xef8   :  { %2885 = vmatprep.mubr.msk.f32.mxu1 %vm3027_vm0, %v3026_v3 }
 0xfb5   :  { %v2127_v15 = vpop.f32.mrb[34].mxu0 }
 0xfb6   :  { %v2208_v16 = vadd.f32 %v2127_v15, %v3391_v41  ;;  %v2860_v17 = vpop.f32.mrb[35].mxu0 }
 0xfbd   :  { %v2254_v18 = vpop.f32.mrb[40].mxu0 }
 0xfbe   :  { %v2870_v19 = vpop.f32.mrb[41].mxu0  ;;  %v2310_v20 = vsel %vm364_vm3, %v2254_v18, -inf }
 0xfbf   :  { %2311 = vmax.xlane.f32.xlu0 %v2310_v20  ;;  %v2257_v21 = vpop.f32.mrb[42].mxu0 }
 0xfc0   :  { %v2871_v22 = vpop.f32.mrb[43].mxu0 }
 0xfc2   :  { %v2204_v23 = vpop.f32.mrb[46].mxu1 }
 0xfc3   :  { %v2209_v24 = vadd.f32 %v2204_v23, %v3395_v49  ;;  %v2865_v25 = vpop.f32.mrb[47].mxu1 }
 0xfca   :  { %v2304_v26 = vpop.f32.mrb[52].mxu1 }
 0xfcb   :  { %v2876_v27 = vpop.f32.mrb[53].mxu1  ;;  %v2313_v28 = vsel %vm364_vm3, %v2304_v26, -inf }
 0xfcc   :  { %2314 = vmax.xlane.f32.xlu1 %v2313_v28  ;;  %v2307_v3 = vpop.f32.mrb[54].mxu1 }
 0xfcd   :  { %v2877_v29 = vpop.f32.mrb[55].mxu1 }
 0xfdd   :  { %2332 = vrot.lane.b32.xlu1 %v3160_v33, %s3050_s28 }
0x104c   :  { %v2312_v30 = vpop.xlane.xlu0 %2311 }
0x104d   :  { %v2316_v31 = vsub.f32 %v2254_v18, %v2312_v30 }
0x104f   :  { %v2318_v32 = vmul.f32 1.442695, %v2316_v31 }
0x1051   :  { %2992 = vpow2.f32 %v2318_v32 }
0x1059   :  { %v2315_v34 = vpop.xlane.xlu1 %2314 }
0x105a   :  { %v2317_v35 = vsub.f32 %v2304_v26, %v2315_v34 }
0x105b   :  { %v2993_v38 = vpop.eup %2992 }
0x105c   :  { %v2320_v40 = vmul.f32 1.442695, %v2317_v35  ;;  %v2322_v41 = vsel %vm364_vm3, %v2993_v38, 0.0 }
0x105d   :  { %v2333_v42 = vpop.permute.xlu1 %2332  ;;  %2323 = vadd.xlane.f32.xlu0 %v2322_v41 }
0x105e   :  { %2994 = vpow2.f32 %v2320_v40  ;;  %2879 = vmatpush3.msk.msra.mxu0 %vm515_vm4, %v2333_v42 }
0x1068   :  { %v2995_v43 = vpop.eup %2994 }
0x1069   :  { %v2325_v44 = vsel %vm364_vm3, %v2995_v43, 0.0 }
0x106a   :  { %2326 = vadd.xlane.f32.xlu0 %v2325_v44 }
0x1080   :  { %2409 = vrot.lane.b32.xlu0 %v3162_v36, %s3050_s28  ;;  %v2614_v36 = vld [vmem:[#allocation2] ss:$0 sm:$0xff] }
0x1081   :  { %v2495_v56 = vcombine.high %v2614_v36, %v2614_v36 }
0x10ea   :  { %v2324_v33 = vpop.xlane.xlu0 %2323 }
0x10eb   :  { %2996 = vrcp.f32 %v2324_v33 }
0x10f5   :  { %v2997_v45 = vpop.eup %2996 }
0x10f6   :  { %v2329_v46 = vmul.f32 %v2997_v45, %v2993_v38 }
0x10f7   :  { %v2327_v47 = vpop.xlane.xlu0 %2326 }
0x10f8   :  { %2998 = vrcp.f32 %v2327_v47  ;;  %2881 = vmatmul.mubr.msk.f32.vlgmr.msra.gmra.mrb[44].mxu0 %vm268_vm2, %v2329_v46 }
0x10fb   :  { %v2410_v48 = vpop.permute.xlu0 %2409 }
0x10fc   :  { %2884 = vmatpush3.msk.msra.mxu1 %vm515_vm4, %v2410_v48 }
0x1102   :  { %v2999_v49 = vpop.eup %2998 }
0x1103   :  { %v2331_v50 = vmul.f32 %v2999_v49, %v2995_v43 }
0x1105   :  { %2886 = vmatmul.mubr.msk.f32.vlgmr.msra.gmra.mrb[56].mxu1 %vm268_vm2, %v2331_v50 }
0x11cb   :  { %v2405_v52 = vpop.f32.mrb[44].mxu0 }
0x11cc   :  { %v2486_v53 = vadd.f32 %v2405_v52, %v2208_v16  ;;  %v2882_v54 = vpop.f32.mrb[45].mxu0 }
0x11ce   :  { %v2497_v55 = vadd.f32 %v2614_v36, %v2486_v53 }
0x11d0   :  { %2501 = vperm.xlu1 %2916, %v2497_v55  }
0x11d8   :  { %v2482_v57 = vpop.f32.mrb[56].mxu1 }
0x11d9   :  { %v2487_v58 = vadd.f32 %v2482_v57, %v2209_v24  ;;  %v2887_v59 = vpop.f32.mrb[57].mxu1 }
0x11db   :  { %v2498_v60 = vadd.f32 %v2495_v56, %v2487_v58 }
0x11dd   :  { %2513 = vperm.xlu1 %2916, %v2498_v60  }
0x124f   :  { %v2502_v39 = vpop.permute.xlu1 %2501 }
0x1250   :  { %v2510_v5 = vrot.slane %v2502_v39, %v2509_v2 }
0x125c   :  { %v2514_v4 = vpop.permute.xlu1 %2513 }
0x125d   :  { %v2522_v6 = vrot.slane %v2514_v4, %v2509_v2 }
0x125f   :  { %v2525_v7 = vcombine.low %v2510_v5, %v2522_v6  ;;  %v2526_v8 = vcombine.high %v2510_v5, %v2522_v6 }
0x1261   :  { %v2529_v37 = vmul.f32 %v3000_v9, %v2525_v7  ;;  %v2530_v11 = vmul.f32 %v3001_v10, %v2526_v8 }
0x1263   :  { %2531 = vst [vmem:[#allocation3] sm:$0xff] %v2529_v37  ;;  %2532 = vst [vmem:[#allocation3 + $0x8] sm:$0xff] %v2530_v11 }
0x1264   :  { %3013 = shalt.err (!%p3010_p4)
}
0x1265   :  { %s3014_s10 = scalar_lea.hbm %s3461_s5, 256 }
0x1266   :  { %p3015_p5 = scmp.ne.s32.totalorder %s3461_s5, %s3014_s10  ;;  %p3018_p6 = scmp.lt.u32.totalorder %s3014_s10, %s3461_s5 }
0x1268   :  { %p3020_p7 = pnand %p3018_p6, %p3015_p5 }
0x126a   :  { %3023 = shalt.err (!%p3020_p7)
}
0x126b   :  { %2542 = dma.vmem_to_hbm [thread:$0]  %s2540_s30, 256, %s3461_s5, [#allocation4]  }
0x126c   :  { %3024 = dma.done.wait [#allocation4], 256  }
0x126d   :  { %3025 = vsyncadd [#allocation4], 4294967040 }
0x126e   :  { %2546 = vsyncpa [#allocation4], 1 }

</bundles_post_ra>
